<compile_context>
chip_gen: v7x
topology: tpu7x:2x2x1
jax: 0.10.0
libtpu: 0.0.40
codegen_flags: <defaults>
</compile_context>

<pallas_src>
import functools

import jax
import jax.numpy as jnp
from jax.experimental import pallas as pl
from jax.experimental.pallas import tpu as pltpu

FC1_DIMS = 1024
FC2_DIMS = 1024
LANE = 128


def _round_up(x, m):
    return ((x + m - 1) // m) * m


def _detect_chip():
    """Best-effort TPU generation detection; safe fallbacks if queries fail."""
    kind = ""
    try:
        kind = jax.devices()[0].device_kind.lower()
    except Exception:
        pass
    vmem_bytes = 128 * 1024 * 1024
    try:
        vmem_bytes = int(pltpu.get_tpu_info().vmem_capacity_bytes)
    except Exception:
        pass
    is_v7x = ("v7" in kind) or (vmem_bytes <= 96 * 1024 * 1024)
    is_v5e = ("v5 lite" in kind) or ("v5e" in kind) or ("v5litepod" in kind)
    return is_v7x, is_v5e


_IS_V7X, _IS_V5E = _detect_chip()

# v7x: 2 TensorCores share the chip, 64 MiB VMEM per TC -> smaller tiles and
#      >=2 grid steps so megacore sharding can use both cores.
# v5e/v6e: single TC, 128 MiB VMEM -> one big tile, minimal per-step overhead.
MAX_TILE_B = 256 if _IS_V7X else 1024
VMEM_LIMIT_BYTES = (32 if _IS_V7X else 64) * 1024 * 1024
# bf16 VALU exists on v6e/v7x; keep the f32-order ReLU on v5e.
BF16_ACTIVATIONS = not _IS_V5E


def actor_kernel(x_ref, w1_ref, b1_ref, w2_ref, b2_ref, w3_ref, b3_ref, mu_ref,
                 *, bf16_activations):
    # One batch tile per grid step; weights are VMEM-resident across steps.
    x = x_ref[...].astype(jnp.bfloat16)

    # fc1 + ReLU (bf16 operands, f32 accumulation on the MXU)
    h1 = jnp.dot(x, w1_ref[...], preferred_element_type=jnp.float32) + b1_ref[...]
    if bf16_activations:
        h1 = jnp.maximum(h1.astype(jnp.bfloat16), 0.0)   # bf16 VALU, half the vregs
    else:
        h1 = jnp.maximum(h1, 0.0).astype(jnp.bfloat16)    # f32 VALU path (v5e)

    # fc2 + ReLU
    h2 = jnp.dot(h1, w2_ref[...], preferred_element_type=jnp.float32) + b2_ref[...]
    if bf16_activations:
        h2 = jnp.maximum(h2.astype(jnp.bfloat16), 0.0)
    else:
        h2 = jnp.maximum(h2, 0.0).astype(jnp.bfloat16)

    # fc3 -> mu (lane-padded to a multiple of 128; padding columns are zero)
    mu_ref[...] = (jnp.dot(h2, w3_ref[...], preferred_element_type=jnp.float32)
                   + b3_ref[...])


def init_actor_params(key, input_dims, num_actions, std=0.0):
    """Deterministic synthetic init (PyTorch-Linear-style uniform bounds).

    Weights are stored in bfloat16 (halves HBM traffic of this DMA-bound
    kernel); biases and lg_std stay f32.  w1's rows and w3/b3's columns are
    zero-padded to the next multiple of 128 lanes once, here.
    NOTE: bf16 weight storage is an intentional numerics change vs the f32
    PyTorch ActorNetwork (tolerance ~1e-2).
    """
    ks = jax.random.split(key, 6)
    in_pad = _round_up(input_dims, LANE)
    out_pad = _round_up(num_actions, LANE)

    def linear(kw, kb, fan_in, fan_out, pad_in=0, pad_out=0):
        bound = 1.0 / jnp.sqrt(jnp.float32(fan_in))
        w = jax.random.uniform(kw, (fan_in, fan_out), jnp.float32, -bound, bound)
        b = jax.random.uniform(kb, (1, fan_out), jnp.float32, -bound, bound)
        w = jnp.pad(w, ((0, pad_in), (0, pad_out)))   # zero padding
        b = jnp.pad(b, ((0, 0), (0, pad_out)))
        return w.astype(jnp.bfloat16), b

    w1, b1 = linear(ks[0], ks[1], input_dims, FC1_DIMS, pad_in=in_pad - input_dims)
    w2, b2 = linear(ks[2], ks[3], FC1_DIMS, FC2_DIMS)
    w3, b3 = linear(ks[4], ks[5], FC2_DIMS, num_actions,
                    pad_out=out_pad - num_actions)
    lg_std = jnp.ones((1, num_actions), jnp.float32) * std
    return dict(w1=w1, b1=b1, w2=w2, b2=b2, w3=w3, b3=b3, lg_std=lg_std)


@jax.jit
def actor_forward(x, params):
    batch, input_dims = x.shape
    in_pad = params["w1"].shape[0]        # lane-padded input dim
    out_pad = params["w3"].shape[1]       # lane-padded action dim
    num_actions = params["lg_std"].shape[1]

    # TODO(synk): K-tile fc1 instead of asserting if the observation dim ever
    # grows large enough that w1 no longer fits comfortably in VMEM with w2.
    assert in_pad * FC1_DIMS * 2 <= 16 * 1024 * 1024, (
        "fc1 weight too large for the VMEM-resident single-block path")

    # Lane-pad x's feature dim with zeros (matches w1's zero-padded rows).
    if input_dims != in_pad:
        x = jnp.pad(x, ((0, 0), (0, in_pad - input_dims)))

    # Batch tiling (generation-gated).
    padded = _round_up(batch, 8)
    if _IS_V7X and batch >= 16:
        # >=2 grid steps so both v7x TensorCores get work ("parallel" axis).
        tile_b = min(MAX_TILE_B, _round_up(pl.cdiv(padded, 2), 8))
        padded = _round_up(padded, tile_b)
    elif padded <= MAX_TILE_B:
        tile_b = padded
    else:
        tile_b = MAX_TILE_B
        padded = _round_up(padded, tile_b)
    if padded != batch:
        x = jnp.pad(x, ((0, padded - batch), (0, 0)))

    flops = 2 * padded * (in_pad * FC1_DIMS
                          + FC1_DIMS * FC2_DIMS
                          + FC2_DIMS * out_pad)
    bytes_accessed = (
        params["w1"].size * 2 + params["w2"].size * 2 + params["w3"].size * 2
        + (params["b1"].size + params["b2"].size + params["b3"].size) * 4
        + padded * in_pad * 4            # x read
        + padded * out_pad * 4           # mu write
    )

    # Constant (0,0) blocks: single buffer -> no wasted double-buffer VMEM.
    resident = pl.Buffered(1)

    mu = pl.pallas_call(
        functools.partial(actor_kernel, bf16_activations=BF16_ACTIVATIONS),
        out_shape=jax.ShapeDtypeStruct((padded, out_pad), jnp.float32),
        grid_spec=pltpu.PrefetchScalarGridSpec(
            num_scalar_prefetch=0,
            grid=(padded // tile_b,),
            in_specs=[
                pl.BlockSpec((tile_b, in_pad), lambda i: (i, 0)),               # x
                pl.BlockSpec((in_pad, FC1_DIMS), lambda i: (0, 0),
                             pipeline_mode=resident),                           # w1
                pl.BlockSpec((1, FC1_DIMS), lambda i: (0, 0),
                             pipeline_mode=resident),                           # b1
                pl.BlockSpec((FC1_DIMS, FC2_DIMS), lambda i: (0, 0),
                             pipeline_mode=resident),                           # w2
                pl.BlockSpec((1, FC2_DIMS), lambda i: (0, 0),
                             pipeline_mode=resident),                           # b2
                pl.BlockSpec((FC2_DIMS, out_pad), lambda i: (0, 0),
                             pipeline_mode=resident),                           # w3
                pl.BlockSpec((1, out_pad), lambda i: (0, 0),
                             pipeline_mode=resident),                           # b3
            ],
            out_specs=pl.BlockSpec((tile_b, out_pad), lambda i: (i, 0)),
        ),
        compiler_params=pltpu.CompilerParams(
            dimension_semantics=("parallel",),
            vmem_limit_bytes=VMEM_LIMIT_BYTES,
        ),
        cost_estimate=pl.CostEstimate(
            flops=flops, transcendentals=0, bytes_accessed=bytes_accessed),
    )(x, params["w1"], params["b1"], params["w2"], params["b2"],
      params["w3"], params["b3"])

    mu = mu[:batch, :num_actions]
    # scale = exp(lg_std).expand_as(mu) — x-independent, computed outside the
    # kernel. dist = Normal(mu, std) is represented as the (loc, scale) pair.
    std = jnp.broadcast_to(jnp.exp(params["lg_std"]), (batch, num_actions))
    return mu, std


def actor_forward_ref(x, params):
    """Plain-JAX reference using the same bf16 weights / f32 accumulation."""
    in_pad = params["w1"].shape[0]
    num_actions = params["lg_std"].shape[1]
    if x.shape[1] != in_pad:
        x = jnp.pad(x, ((0, 0), (0, in_pad - x.shape[1])))
    h1 = jnp.maximum(
        jnp.dot(x.astype(jnp.bfloat16), params["w1"],
                preferred_element_type=jnp.float32) + params["b1"], 0.0)
    h2 = jnp.maximum(
        jnp.dot(h1.astype(jnp.bfloat16), params["w2"],
                preferred_element_type=jnp.float32) + params["b2"], 0.0)
    mu = (jnp.dot(h2.astype(jnp.bfloat16), params["w3"],
                  preferred_element_type=jnp.float32)
          + params["b3"])[:, :num_actions]
    std = jnp.broadcast_to(jnp.exp(params["lg_std"]), mu.shape)
    return mu, std


if __name__ == "__main__":
    key = jax.random.PRNGKey(0)
    k_param, k_x = jax.random.split(key)

    batch = 8
    input_dims = 32
    num_actions = 8

    params = init_actor_params(k_param, input_dims, num_actions, std=0.0)
    x = jax.random.normal(k_x, (batch, input_dims), jnp.float32)

    mu, std = actor_forward(x, params)
    jax.block_until_ready((mu, std))

    mu_ref, std_ref = actor_forward_ref(x, params)
    assert mu.shape == (batch, num_actions)
    assert std.shape == (batch, num_actions)
    # bf16 matmul operands with f32 accumulation -> loosened tolerance.
    assert jnp.allclose(mu, mu_ref, atol=1e-2, rtol=1e-2)
    assert jnp.allclose(std, std_ref, atol=1e-6, rtol=1e-6)

    print("KERNEL_OK")
</pallas_src>

<mosaic_0001>
module attributes {stable_mosaic.version = 11 : i64} {
  func.func @actor_kernel(%arg0: i32, %arg1: memref<8x128xf32, #tpu.memory_space<vmem>>, %arg2: memref<128x1024xbf16, #tpu.memory_space<vmem>>, %arg3: memref<1x1024xf32, #tpu.memory_space<vmem>>, %arg4: memref<1024x1024xbf16, #tpu.memory_space<vmem>>, %arg5: memref<1x1024xf32, #tpu.memory_space<vmem>>, %arg6: memref<1024x128xbf16, #tpu.memory_space<vmem>>, %arg7: memref<1x128xf32, #tpu.memory_space<vmem>>, %arg8: memref<8x128xf32, #tpu.memory_space<vmem>>) attributes {dimension_semantics = [#tpu.dimension_semantics<parallel>], iteration_bounds = array<i64: 1>, scalar_prefetch = 0 : i64, scratch_operands = 0 : i64, tpu.core_type = #tpu.core_type<tc>, window_params = [{transform_indices = @transform_0, window_bounds = array<i64: 8, 128>}, {pipeline_mode = #tpu.pipeline_mode<synchronous>, transform_indices = @transform_1, window_bounds = array<i64: 128, 1024>}, {pipeline_mode = #tpu.pipeline_mode<synchronous>, transform_indices = @transform_2, window_bounds = array<i64: 1, 1024>}, {pipeline_mode = #tpu.pipeline_mode<synchronous>, transform_indices = @transform_3, window_bounds = array<i64: 1024, 1024>}, {pipeline_mode = #tpu.pipeline_mode<synchronous>, transform_indices = @transform_4, window_bounds = array<i64: 1, 1024>}, {pipeline_mode = #tpu.pipeline_mode<synchronous>, transform_indices = @transform_5, window_bounds = array<i64: 1024, 128>}, {pipeline_mode = #tpu.pipeline_mode<synchronous>, transform_indices = @transform_6, window_bounds = array<i64: 1, 128>}, {transform_indices = @transform_7, window_bounds = array<i64: 8, 128>}]} {
    %c0 = arith.constant 0 : index
    %c0_0 = arith.constant 0 : index
    %0 = vector.load %arg1[%c0, %c0_0] : memref<8x128xf32, #tpu.memory_space<vmem>>, vector<8x128xf32>
    %1 = arith.truncf %0 : vector<8x128xf32> to vector<8x128xbf16>
    %c0_1 = arith.constant 0 : index
    %c0_2 = arith.constant 0 : index
    %2 = vector.load %arg2[%c0_1, %c0_2] : memref<128x1024xbf16, #tpu.memory_space<vmem>>, vector<128x1024xbf16>
    %cst = arith.constant dense<0.000000e+00> : vector<8x1024xf32>
    %3 = tpu.matmul %1, %2, %cst {dimension_numbers = #tpu.dot_dimension_numbers<[1], [0], [0], [1], [0, 0, 1, 1], [], []>} : vector<8x128xbf16>, vector<128x1024xbf16>, vector<8x1024xf32> -> vector<8x1024xf32>
    %c0_3 = arith.constant 0 : index
    %c0_4 = arith.constant 0 : index
    %4 = vector.load %arg3[%c0_3, %c0_4] : memref<1x1024xf32, #tpu.memory_space<vmem>>, vector<1x1024xf32>
    %5 = vector.broadcast %4 : vector<1x1024xf32> to vector<8x1024xf32>
    %6 = arith.addf %3, %5 : vector<8x1024xf32>
    %7 = arith.truncf %6 : vector<8x1024xf32> to vector<8x1024xbf16>
    %cst_5 = arith.constant 0.000000e+00 : bf16
    %8 = vector.broadcast %cst_5 : bf16 to vector<8x1024xbf16>
    %9 = arith.maximumf %7, %8 : vector<8x1024xbf16>
    %c0_6 = arith.constant 0 : index
    %c0_7 = arith.constant 0 : index
    %10 = vector.load %arg4[%c0_6, %c0_7] : memref<1024x1024xbf16, #tpu.memory_space<vmem>>, vector<1024x1024xbf16>
    %cst_8 = arith.constant dense<0.000000e+00> : vector<8x1024xf32>
    %11 = tpu.matmul %9, %10, %cst_8 {dimension_numbers = #tpu.dot_dimension_numbers<[1], [0], [0], [1], [0, 0, 1, 1], [], []>} : vector<8x1024xbf16>, vector<1024x1024xbf16>, vector<8x1024xf32> -> vector<8x1024xf32>
    %c0_9 = arith.constant 0 : index
    %c0_10 = arith.constant 0 : index
    %12 = vector.load %arg5[%c0_9, %c0_10] : memref<1x1024xf32, #tpu.memory_space<vmem>>, vector<1x1024xf32>
    %13 = vector.broadcast %12 : vector<1x1024xf32> to vector<8x1024xf32>
    %14 = arith.addf %11, %13 : vector<8x1024xf32>
    %15 = arith.truncf %14 : vector<8x1024xf32> to vector<8x1024xbf16>
    %cst_11 = arith.constant 0.000000e+00 : bf16
    %16 = vector.broadcast %cst_11 : bf16 to vector<8x1024xbf16>
    %17 = arith.maximumf %15, %16 : vector<8x1024xbf16>
    %c0_12 = arith.constant 0 : index
    %c0_13 = arith.constant 0 : index
    %18 = vector.load %arg6[%c0_12, %c0_13] : memref<1024x128xbf16, #tpu.memory_space<vmem>>, vector<1024x128xbf16>
    %cst_14 = arith.constant dense<0.000000e+00> : vector<8x128xf32>
    %19 = tpu.matmul %17, %18, %cst_14 {dimension_numbers = #tpu.dot_dimension_numbers<[1], [0], [0], [1], [0, 0, 1, 1], [], []>} : vector<8x1024xbf16>, vector<1024x128xbf16>, vector<8x128xf32> -> vector<8x128xf32>
    %c0_15 = arith.constant 0 : index
    %c0_16 = arith.constant 0 : index
    %20 = vector.load %arg7[%c0_15, %c0_16] : memref<1x128xf32, #tpu.memory_space<vmem>>, vector<1x128xf32>
    %21 = vector.broadcast %20 : vector<1x128xf32> to vector<8x128xf32>
    %22 = arith.addf %19, %21 : vector<8x128xf32>
    %c0_17 = arith.constant 0 : index
    %c0_18 = arith.constant 0 : index
    %23 = vector.load %arg8[%c0_17, %c0_18] : memref<8x128xf32, #tpu.memory_space<vmem>>, vector<8x128xf32>
    tpu.vector_store %arg8[%c0_17, %c0_18], %22 {strides = array<i32>} : memref<8x128xf32, #tpu.memory_space<vmem>>, vector<8x128xf32>,
    return
  }
  func.func @transform_0(%arg0: i32) -> (i32, i32) {
    %c0_i32 = arith.constant 0 : i32
    %c0_i32_0 = arith.constant 0 : i32
    return %arg0, %c0_i32 : i32, i32
  }
  func.func @transform_1(%arg0: i32) -> (i32, i32) {
    %c0_i32 = arith.constant 0 : i32
    %c0_i32_0 = arith.constant 0 : i32
    %c0_i32_1 = arith.constant 0 : i32
    return %c0_i32, %c0_i32_0 : i32, i32
  }
  func.func @transform_2(%arg0: i32) -> (i32, i32) {
    %c0_i32 = arith.constant 0 : i32
    %c0_i32_0 = arith.constant 0 : i32
    %c0_i32_1 = arith.constant 0 : i32
    return %c0_i32, %c0_i32_0 : i32, i32
  }
  func.func @transform_3(%arg0: i32) -> (i32, i32) {
    %c0_i32 = arith.constant 0 : i32
    %c0_i32_0 = arith.constant 0 : i32
    %c0_i32_1 = arith.constant 0 : i32
    return %c0_i32, %c0_i32_0 : i32, i32
  }
  func.func @transform_4(%arg0: i32) -> (i32, i32) {
    %c0_i32 = arith.constant 0 : i32
    %c0_i32_0 = arith.constant 0 : i32
    %c0_i32_1 = arith.constant 0 : i32
    return %c0_i32, %c0_i32_0 : i32, i32
  }
  func.func @transform_5(%arg0: i32) -> (i32, i32) {
    %c0_i32 = arith.constant 0 : i32
    %c0_i32_0 = arith.constant 0 : i32
    %c0_i32_1 = arith.constant 0 : i32
    return %c0_i32, %c0_i32_0 : i32, i32
  }
  func.func @transform_6(%arg0: i32) -> (i32, i32) {
    %c0_i32 = arith.constant 0 : i32
    %c0_i32_0 = arith.constant 0 : i32
    %c0_i32_1 = arith.constant 0 : i32
    return %c0_i32, %c0_i32_0 : i32, i32
  }
  func.func @transform_7(%arg0: i32) -> (i32, i32) {
    %c0_i32 = arith.constant 0 : i32
    %c0_i32_0 = arith.constant 0 : i32
    return %arg0, %c0_i32 : i32, i32
  }
}

</mosaic_0001>

<bundles_post_ra>
// kernel: actor_forward.1
= control target key start
LH: loop header
LB: loop body
LE: loop exit
PB: predicated region body
PF: predicated region fallthrough
CT: control target
= control target key end

     0   :  { %12 = vsyncpa [#allocation3], 0  ;;  %s6567_s0 = inlined_call_operand.hbm [shape: f32[8,128], index: 0, kind: input, shape index: {}]   ;;  %s6568_s1 = inlined_call_operand.hbm [shape: bf16[128,1024], index: 1, kind: input, shape index: {}]   ;;  %s6569_s2 = inlined_call_operand.hbm [shape: f32[1,1024], index: 2, kind: input, shape index: {}]   ;;  %s6570_s3 = inlined_call_operand.hbm [shape: bf16[1024,1024], index: 3, kind: input, shape index: {}]   ;;  %s6571_s4 = inlined_call_operand.hbm [shape: f32[1,1024], index: 4, kind: input, shape index: {}]   ;;  %s6572_s5 = inlined_call_operand.hbm [shape: bf16[1024,128], index: 5, kind: input, shape index: {}]   ;;  %s6573_s6 = inlined_call_operand.hbm [shape: f32[1,128], index: 6, kind: input, shape index: {}]   ;;  %s6574_s7 = inlined_call_operand.hbm [shape: f32[8,128], index: 7, kind: output, shape index: {}]  }
   0x1   :  { %13 = vsyncpa [#allocation6], 0 }
   0x2   :  { %14 = vsyncpa [#allocation9], 0 }
   0x3   :  { %15 = vsyncpa [#allocation12], 0 }
   0x4   :  { %16 = vsyncpa [#allocation4], 0  ;;  %s6256_s24 = smov [#allocation5]   ;;  %s6070_s28 = scalar_lea.hbm %s6568_s1, 8192 }
   0x5   :  { %s32_s25 = sshll.u32 %s6256_s24, 4  ;;  %p6071_p0 = scmp.ne.s32.totalorder %s6568_s1, %s6070_s28  ;;  %s33_s25 = int_to_ptr.vmem [resolvable:$true] %s32_s25 }
   0x6   :  { %p6074_p1 = scmp.lt.u32.totalorder %s6070_s28, %s6568_s1 }
   0x8   :  { %p6076_p2 = pnand %p6074_p1, %p6071_p0 }
   0xa   :  { %6079 = shalt.err (!%p6076_p2)
}
   0xb   :  { %s6080_s10 = scalar_lea.vmem %s33_s25, 8192  ;;  %p6085_p4 = scmp.lt.s32.totalorder %s33_s25, %s33_s25 }
   0xc   :  { %p6081_p3 = scmp.ne.s32.totalorder %s33_s25, %s6080_s10  ;;  %p6086_p5 = scmp.lt.s32.totalorder %s6080_s10, %s6080_s10 }
   0xe   :  { %p6087_p6 = por %p6086_p5, %p6085_p4 }
  0x10   :  { %p6088_p7 = pnand %p6087_p6, %p6081_p3 }
  0x12   :  { %6091 = shalt.err (!%p6088_p7)
}
  0x13   :  { %s6257_s11 = smov 512   ;;  %s6258_s12 = smov 32  }
  0x14   :  { %38 = dma.hbm_to_vmem [thread:$0]  %s6568_s1, 8192, %s33_s25, [#allocation6], %s6257_s11, %s6257_s11, %s6258_s12  }
  0x15   :  { %s6259_s15 = smov [#allocation8]   ;;  %s6260_s17 = smov [#allocation11]  }
  0x16   :  { %s54_s16 = sshll.u32 %s6259_s15, 4  ;;  %s76_s18 = sshll.u32 %s6260_s17, 4  ;;  %s55_s16 = int_to_ptr.vmem [resolvable:$true] %s54_s16  ;;  %s77_s18 = int_to_ptr.vmem [resolvable:$true] %s76_s18 }
  0x17   :  { %s6092_s21 = scalar_lea.hbm %s6570_s3, 65536 }
  0x18   :  { %p6093_p8 = scmp.ne.s32.totalorder %s6570_s3, %s6092_s21  ;;  %p6096_p9 = scmp.lt.u32.totalorder %s6092_s21, %s6570_s3 }
  0x1a   :  { %p6098_p10 = pnand %p6096_p9, %p6093_p8 }
  0x1c   :  { %6101 = shalt.err (!%p6098_p10)
}
  0x1d   :  { %s6102_s1 = scalar_lea.vmem %s55_s16, 65536  ;;  %p6107_p12 = scmp.lt.s32.totalorder %s55_s16, %s55_s16 }
  0x1e   :  { %p6103_p11 = scmp.ne.s32.totalorder %s55_s16, %s6102_s1  ;;  %p6108_p13 = scmp.lt.s32.totalorder %s6102_s1, %s6102_s1 }
  0x20   :  { %p6109_p0 = por %p6108_p13, %p6107_p12 }
  0x22   :  { %p6110_p1 = pnand %p6109_p0, %p6103_p11 }
  0x24   :  { %6113 = shalt.err (!%p6110_p1)
}
  0x25   :  { %60 = dma.hbm_to_vmem [thread:$0]  %s6570_s3, 65536, %s55_s16, [#allocation9], %s6257_s11, %s6257_s11, %s6258_s12  }
  0x26   :  { %s6114_s30 = scalar_lea.hbm %s6572_s5, 8192 }
  0x27   :  { %p6115_p2 = scmp.ne.s32.totalorder %s6572_s5, %s6114_s30  ;;  %p6118_p3 = scmp.lt.u32.totalorder %s6114_s30, %s6572_s5 }
  0x29   :  { %p6120_p4 = pnand %p6118_p3, %p6115_p2 }
  0x2b   :  { %6123 = shalt.err (!%p6120_p4)
}
  0x2c   :  { %s6124_s14 = scalar_lea.vmem %s77_s18, 8192  ;;  %p6129_p6 = scmp.lt.s32.totalorder %s77_s18, %s77_s18 }
  0x2d   :  { %p6125_p5 = scmp.ne.s32.totalorder %s77_s18, %s6124_s14  ;;  %p6130_p7 = scmp.lt.s32.totalorder %s6124_s14, %s6124_s14 }
  0x2f   :  { %p6131_p8 = por %p6130_p7, %p6129_p6 }
  0x31   :  { %p6132_p9 = pnand %p6131_p8, %p6125_p5 }
  0x33   :  { %6135 = shalt.err (!%p6132_p9)
}
  0x34   :  { %s6261_s3 = smov 64   ;;  %s6262_s11 = smov 4  }
  0x35   :  { %82 = dma.hbm_to_vmem [thread:$0]  %s6572_s5, 8192, %s77_s18, [#allocation12], %s6261_s3, %s6261_s3, %s6262_s11  }
  0x36   :  { %s6263_s16 = smov [#allocation2]   ;;  %s6264_s19 = smov [#allocation7]  }
  0x37   :  { %s23_s17 = sshll.u32 %s6263_s16, 4  ;;  %s45_s20 = sshll.u32 %s6264_s19, 4  ;;  %s24_s17 = int_to_ptr.vmem [resolvable:$true] %s23_s17  ;;  %s46_s20 = int_to_ptr.vmem [resolvable:$true] %s45_s20 }
  0x38   :  { %s6136_s23 = scalar_lea.hbm %s6567_s0, 128 }
  0x39   :  { %p6137_p10 = scmp.ne.s32.totalorder %s6567_s0, %s6136_s23  ;;  %p6140_p11 = scmp.lt.u32.totalorder %s6136_s23, %s6567_s0 }
  0x3b   :  { %p6142_p12 = pnand %p6140_p11, %p6137_p10 }
  0x3d   :  { %6145 = shalt.err (!%p6142_p12)
}
  0x3e   :  { %s6146_s5 = scalar_lea.vmem %s24_s17, 128  ;;  %p6151_p0 = scmp.lt.s32.totalorder %s24_s17, %s24_s17 }
  0x3f   :  { %p6147_p13 = scmp.ne.s32.totalorder %s24_s17, %s6146_s5  ;;  %p6152_p1 = scmp.lt.s32.totalorder %s6146_s5, %s6146_s5 }
  0x41   :  { %p6153_p2 = por %p6152_p1, %p6151_p0 }
  0x43   :  { %p6154_p3 = pnand %p6153_p2, %p6147_p13 }
  0x45   :  { %6157 = shalt.err (!%p6154_p3)
}
  0x46   :  { %26 = dma.hbm_to_vmem [thread:$0]  %s6567_s0, 128, %s24_s17, [#allocation3]  }
  0x47   :  { %s6158_s30 = scalar_lea.hbm %s6569_s2, 128 }
  0x48   :  { %p6159_p4 = scmp.ne.s32.totalorder %s6569_s2, %s6158_s30  ;;  %p6162_p5 = scmp.lt.u32.totalorder %s6158_s30, %s6569_s2 }
  0x4a   :  { %p6164_p6 = pnand %p6162_p5, %p6159_p4 }
  0x4c   :  { %6167 = shalt.err (!%p6164_p6)
}
  0x4d   :  { %s6168_s14 = scalar_lea.vmem %s46_s20, 128  ;;  %p6173_p8 = scmp.lt.s32.totalorder %s46_s20, %s46_s20 }
  0x4e   :  { %p6169_p7 = scmp.ne.s32.totalorder %s46_s20, %s6168_s14  ;;  %p6174_p9 = scmp.lt.s32.totalorder %s6168_s14, %s6168_s14 }
  0x50   :  { %p6175_p10 = por %p6174_p9, %p6173_p8 }
  0x52   :  { %p6176_p11 = pnand %p6175_p10, %p6169_p7 }
  0x54   :  { %6179 = shalt.err (!%p6176_p11)
}
  0x55   :  { %48 = dma.hbm_to_vmem [thread:$0]  %s6569_s2, 128, %s46_s20, [#allocation6]  }
  0x56   :  { %s6265_s11 = smov [#allocation10]   ;;  %s6266_s15 = smov [#allocation13]  }
  0x57   :  { %s67_s12 = sshll.u32 %s6265_s11, 4  ;;  %s89_s16 = sshll.u32 %s6266_s15, 4  ;;  %s68_s12 = int_to_ptr.vmem [resolvable:$true] %s67_s12  ;;  %s90_s16 = int_to_ptr.vmem [resolvable:$true] %s89_s16 }
  0x58   :  { %s6180_s21 = scalar_lea.hbm %s6571_s4, 128 }
  0x59   :  { %p6181_p12 = scmp.ne.s32.totalorder %s6571_s4, %s6180_s21  ;;  %p6184_p13 = scmp.lt.u32.totalorder %s6180_s21, %s6571_s4 }
  0x5b   :  { %p6186_p0 = pnand %p6184_p13, %p6181_p12 }
  0x5d   :  { %6189 = shalt.err (!%p6186_p0)
}
  0x5e   :  { %s6190_s2 = scalar_lea.vmem %s68_s12, 128  ;;  %p6195_p2 = scmp.lt.s32.totalorder %s68_s12, %s68_s12 }
  0x5f   :  { %p6191_p1 = scmp.ne.s32.totalorder %s68_s12, %s6190_s2  ;;  %p6196_p3 = scmp.lt.s32.totalorder %s6190_s2, %s6190_s2 }
  0x61   :  { %p6197_p4 = por %p6196_p3, %p6195_p2 }
  0x63   :  { %p6198_p5 = pnand %p6197_p4, %p6191_p1 }
  0x65   :  { %6201 = shalt.err (!%p6198_p5)
}
  0x66   :  { %70 = dma.hbm_to_vmem [thread:$0]  %s6571_s4, 128, %s68_s12, [#allocation9]  }
  0x67   :  { %s6202_s18 = scalar_lea.hbm %s6573_s6, 16 }
  0x68   :  { %p6203_p6 = scmp.ne.s32.totalorder %s6573_s6, %s6202_s18  ;;  %p6206_p7 = scmp.lt.u32.totalorder %s6202_s18, %s6573_s6 }
  0x6a   :  { %p6208_p8 = pnand %p6206_p7, %p6203_p6 }
  0x6c   :  { %6211 = shalt.err (!%p6208_p8)
}
  0x6d   :  { %s6212_s8 = scalar_lea.vmem %s90_s16, 16  ;;  %s6216_s9 = scalar_lea.vmem %s90_s16, 32 }
  0x6e   :  { %p6213_p9 = scmp.ne.s32.totalorder %s90_s16, %s6212_s8  ;;  %p6217_p10 = scmp.lt.s32.totalorder %s90_s16, %s90_s16 }
  0x6f   :  { %p6218_p11 = scmp.lt.s32.totalorder %s6216_s9, %s6212_s8 }
  0x71   :  { %p6219_p12 = por %p6218_p11, %p6217_p10 }
  0x73   :  { %p6220_p13 = pnand %p6219_p12, %p6213_p9 }
  0x75   :  { %6223 = shalt.err (!%p6220_p13)
}
  0x76   :  { %92 = dma.hbm_to_vmem [thread:$0]  %s6573_s6, 16, %s90_s16, [#allocation12]  }
  0x77   :  { %6246 = dma.done.wait [#allocation3], 128  }
  0x78   :  { %6247 = vsyncadd [#allocation3], 4294967168 }
  0x79   :  { %6248 = dma.done.wait [#allocation6], 8320  }
  0x7a   :  { %6249 = vsyncadd [#allocation6], 4294958976 }
  0x7b   :  { %6250 = dma.done.wait [#allocation9], 65664  }
  0x7c   :  { %6251 = vsyncadd [#allocation9], 4294901632 }
  0x7d   :  { %6252 = dma.done.wait [#allocation12], 8208  }
  0x7e   :  { %6253 = vsyncadd [#allocation12], 4294959088  ;;  %v6267_v0 = vmov 0   ;;  %v117_v1 = vld [vmem:[#allocation5] sm:$0xff]  ;;  %v118_v14 = vld [vmem:[#allocation5 + $0x8] sm:$0xff]  ;;  %s6268_s6 = smov [#allocation14]  }
  0x7f   :  { %575 = vmatprep.mubr.bf16.mxu0 %v6267_v0  ;;  %616 = vmatprep.mubr.bf16.mxu1 %v6267_v0  ;;  %v121_v2 = vld [vmem:[#allocation5 + $0x20] sm:$0xff]  ;;  %v122_v15 = vld [vmem:[#allocation5 + $0x28] sm:$0xff]  ;;  %v119_v58 = vld [vmem:[#allocation5 + $0x10] sm:$0xff]  ;;  %s5195_s13 = sshll.u32 %s6268_s6, 4  ;;  %s5196_s13 = int_to_ptr.vmem [resolvable:$true] %s5195_s13 }
  0x80   :  { %v125_v3 = vld [vmem:[#allocation5 + $0x40] sm:$0xff]  ;;  %v5208_v4 = vcombine.high %v117_v1, %v121_v2  ;;  %v5207_v5 = vcombine.low %v117_v1, %v121_v2  ;;  %v126_v16 = vld [vmem:[#allocation5 + $0x48] sm:$0xff]  ;;  %v5210_v18 = vcombine.high %v118_v14, %v122_v15  ;;  %v5209_v19 = vcombine.low %v118_v14, %v122_v15  ;;  %v123_v59 = vld [vmem:[#allocation5 + $0x30] sm:$0xff]  ;;  %s6224_s14 = scalar_lea.vmem %s5196_s13, 128  ;;  %p6229_p1 = scmp.lt.s32.totalorder %s5196_s13, %s5196_s13 }
  0x81   :  { %v129_v6 = vld [vmem:[#allocation5 + $0x60] sm:$0xff]  ;;  %v130_v17 = vld [vmem:[#allocation5 + $0x68] sm:$0xff]  ;;  %v115_v62 = vld [vmem:[#allocation2] sm:$0xff]  ;;  %v5212_v2 = vcombine.high %v119_v58, %v123_v59  ;;  %p6225_p0 = scmp.ne.s32.totalorder %s5196_s13, %s6224_s14  ;;  %p6230_p2 = scmp.lt.s32.totalorder %s6224_s14, %s6224_s14 }
  0x82   :  { %v5216_v7 = vcombine.high %v125_v3, %v129_v6  ;;  %v133_v8 = vld [vmem:[#allocation5 + $0x80] sm:$0xff]  ;;  %543 = vmatprep.subr.bf16.mxu0 %v5208_v4  ;;  %v5215_v10 = vcombine.low %v125_v3, %v129_v6  ;;  %v5218_v20 = vcombine.high %v126_v16, %v130_v17  ;;  %v134_v22 = vld [vmem:[#allocation5 + $0x88] sm:$0xff]  ;;  %584 = vmatprep.subr.bf16.mxu1 %v5210_v18  ;;  %v127_v4 = vld [vmem:[#allocation5 + $0x50] sm:$0xff] }
  0x83   :  { %v137_v9 = vld [vmem:[#allocation5 + $0xa0] sm:$0xff]  ;;  %544 = vmatpush1.bf16.msra.mxu0 %v5207_v5  ;;  %v138_v23 = vld [vmem:[#allocation5 + $0xa8] sm:$0xff]  ;;  %585 = vmatpush1.bf16.msra.mxu1 %v5209_v19  ;;  %v5217_v27 = vcombine.low %v126_v16, %v130_v17  ;;  %v131_v5 = vld [vmem:[#allocation5 + $0x70] sm:$0xff]  ;;  %v6395_v6 = vpack.c.bf16 %v115_v62, %v115_v62  ;;  %p6231_p3 = por %p6230_p2, %p6229_p1 }
  0x84   :  { %545 = vmatprep.subr.bf16.mxu0 %v5216_v7  ;;  %v5224_v11 = vcombine.high %v133_v8, %v137_v9  ;;  %v141_v12 = vld [vmem:[#allocation5 + $0xc0] sm:$0xff]  ;;  %v5223_v21 = vcombine.low %v133_v8, %v137_v9  ;;  %586 = vmatprep.subr.bf16.mxu1 %v5218_v20  ;;  %v5226_v28 = vcombine.high %v134_v22, %v138_v23  ;;  %v142_v30 = vld [vmem:[#allocation5 + $0xc8] sm:$0xff]  ;;  %v120_v9 = vld [vmem:[#allocation5 + $0x18] sm:$0xff] }
  0x85   :  { %v145_v13 = vld [vmem:[#allocation5 + $0xe0] sm:$0xff]  ;;  %v146_v31 = vld [vmem:[#allocation5 + $0xe8] sm:$0xff]  ;;  %v5225_v35 = vcombine.low %v134_v22, %v138_v23  ;;  %v5211_v8 = vcombine.low %v119_v58, %v123_v59  ;;  %v139_v14 = vld [vmem:[#allocation5 + $0xb0] sm:$0xff]  ;;  %v5219_v16 = vcombine.low %v127_v4, %v131_v5  ;;  %p6232_p4 = pnand %p6231_p3, %p6225_p0 }
  0x86   :  { %v5232_v24 = vcombine.high %v141_v12, %v145_v13  ;;  %v149_v25 = vld [vmem:[#allocation5 + $0x100] sm:$0xff]  ;;  %v5231_v29 = vcombine.low %v141_v12, %v145_v13  ;;  %v5234_v36 = vcombine.high %v142_v30, %v146_v31  ;;  %v150_v38 = vld [vmem:[#allocation5 + $0x108] sm:$0xff]  ;;  %v5233_v43 = vcombine.low %v142_v30, %v146_v31  ;;  %v135_v13 = vld [vmem:[#allocation5 + $0x90] sm:$0xff] }
  0x87   :  { %546 = vmatpush1.bf16.msra.mxu0 %v5215_v10  ;;  %v153_v26 = vld [vmem:[#allocation5 + $0x120] sm:$0xff]  ;;  %587 = vmatpush1.bf16.msra.mxu1 %v5217_v27  ;;  %v154_v39 = vld [vmem:[#allocation5 + $0x128] sm:$0xff]  ;;  %v124_v10 = vld [vmem:[#allocation5 + $0x38] sm:$0xff]  ;;  %v5228_v19 = vcombine.high %v135_v13, %v139_v14 }
  0x88   :  { %547 = vmatprep.subr.bf16.mxu0 %v5224_v11  ;;  %v5240_v32 = vcombine.high %v149_v25, %v153_v26  ;;  %v157_v33 = vld [vmem:[#allocation5 + $0x140] sm:$0xff]  ;;  %588 = vmatprep.subr.bf16.mxu1 %v5226_v28  ;;  %v5239_v37 = vcombine.low %v149_v25, %v153_v26  ;;  %v5242_v44 = vcombine.high %v150_v38, %v154_v39  ;;  %v158_v46 = vld [vmem:[#allocation5 + $0x148] sm:$0xff]  ;;  %v128_v17 = vld [vmem:[#allocation5 + $0x58] sm:$0xff] }
  0x89   :  { %v161_v34 = vld [vmem:[#allocation5 + $0x160] sm:$0xff]  ;;  %v162_v47 = vld [vmem:[#allocation5 + $0x168] sm:$0xff]  ;;  %v5241_v51 = vcombine.low %v150_v38, %v154_v39  ;;  %v5220_v11 = vcombine.high %v127_v4, %v131_v5  ;;  %v5214_v15 = vcombine.high %v120_v9, %v124_v10  ;;  %v132_v18 = vld [vmem:[#allocation5 + $0x78] sm:$0xff]  ;;  %v5213_v22 = vcombine.low %v120_v9, %v124_v10 }
  0x8a   :  { %v5248_v40 = vcombine.high %v157_v33, %v161_v34  ;;  %v165_v41 = vld [vmem:[#allocation5 + $0x180] sm:$0xff]  ;;  %v5247_v45 = vcombine.low %v157_v33, %v161_v34  ;;  %v5250_v52 = vcombine.high %v158_v46, %v162_v47  ;;  %v166_v54 = vld [vmem:[#allocation5 + $0x188] sm:$0xff]  ;;  %v5249_v57 = vcombine.low %v158_v46, %v162_v47  ;;  %v143_v20 = vld [vmem:[#allocation5 + $0xd0] sm:$0xff] }
  0x8b   :  { %548 = vmatpush1.bf16.msra.mxu0 %v5223_v21  ;;  %v169_v42 = vld [vmem:[#allocation5 + $0x1a0] sm:$0xff]  ;;  %589 = vmatpush1.bf16.msra.mxu1 %v5225_v35  ;;  %v170_v55 = vld [vmem:[#allocation5 + $0x1a8] sm:$0xff]  ;;  %v147_v21 = vld [vmem:[#allocation5 + $0xf0] sm:$0xff]  ;;  %v5222_v23 = vcombine.high %v128_v17, %v132_v18  ;;  %v5221_v30 = vcombine.low %v128_v17, %v132_v18 }
  0x8c   :  { %549 = vmatprep.subr.bf16.mxu0 %v5232_v24  ;;  %590 = vmatprep.subr.bf16.mxu1 %v5234_v36  ;;  %v5256_v48 = vcombine.high %v165_v41, %v169_v42  ;;  %v173_v49 = vld [vmem:[#allocation5 + $0x1c0] sm:$0xff]  ;;  %v5255_v53 = vcombine.low %v165_v41, %v169_v42  ;;  %v5258_v60 = vcombine.high %v166_v54, %v170_v55  ;;  %v174_v63 = vld [vmem:[#allocation5 + $0x1c8] sm:$0xff]  ;;  %v151_v25 = vld [vmem:[#allocation5 + $0x110] sm:$0xff] }
  0x8d   :  { %v177_v50 = vld [vmem:[#allocation5 + $0x1e0] sm:$0xff]  ;;  %v178_v1 = vld [vmem:[#allocation5 + $0x1e8] sm:$0xff]  ;;  %v5257_v3 = vcombine.low %v166_v54, %v170_v55  ;;  %v5227_v24 = vcombine.low %v135_v13, %v139_v14  ;;  %v155_v26 = vld [vmem:[#allocation5 + $0x130] sm:$0xff]  ;;  %v5235_v34 = vcombine.low %v143_v20, %v147_v21 }
  0x8e   :  { %v5264_v56 = vcombine.high %v173_v49, %v177_v50  ;;  %v5263_v61 = vcombine.low %v173_v49, %v177_v50  ;;  %v5266_v7 = vcombine.high %v174_v63, %v178_v1  ;;  %v5265_v12 = vcombine.low %v174_v63, %v178_v1  ;;  %v136_v27 = vld [vmem:[#allocation5 + $0x98] sm:$0xff]  ;;  %v159_v35 = vld [vmem:[#allocation5 + $0x150] sm:$0xff]  ;;  %v723_v59 = vld [vmem:[#allocation8] sm:$0xff] }
  0x8f   :  { %550 = vmatpush1.bf16.msra.mxu0 %v5231_v29  ;;  %591 = vmatpush1.bf16.msra.mxu1 %v5233_v43  ;;  %v140_v28 = vld [vmem:[#allocation5 + $0xb8] sm:$0xff]  ;;  %v5236_v29 = vcombine.high %v143_v20, %v147_v21  ;;  %v163_v36 = vld [vmem:[#allocation5 + $0x170] sm:$0xff]  ;;  %v5243_v42 = vcombine.low %v151_v25, %v155_v26  ;;  %v731_v4 = vld [vmem:[#allocation8 + $0x40] sm:$0xff] }
  0x90   :  { %551 = vmatprep.subr.bf16.mxu0 %v5240_v32  ;;  %592 = vmatprep.subr.bf16.mxu1 %v5242_v44  ;;  %v144_v31 = vld [vmem:[#allocation5 + $0xd8] sm:$0xff]  ;;  %v5230_v33 = vcombine.high %v136_v27, %v140_v28  ;;  %v5229_v38 = vcombine.low %v136_v27, %v140_v28  ;;  %v167_v43 = vld [vmem:[#allocation5 + $0x190] sm:$0xff]  ;;  %v5251_v50 = vcombine.low %v159_v35, %v163_v36  ;;  %v735_v5 = vld [vmem:[#allocation8 + $0x60] sm:$0xff] }
  0x91   :  { %v148_v32 = vld [vmem:[#allocation5 + $0xf8] sm:$0xff]  ;;  %v171_v44 = vld [vmem:[#allocation5 + $0x1b0] sm:$0xff]  ;;  %v739_v13 = vld [vmem:[#allocation8 + $0x80] sm:$0xff]  ;;  %v5279_v20 = vcombine.low %v731_v4, %v735_v5 }
  0x92   :  { %v152_v39 = vld [vmem:[#allocation5 + $0x118] sm:$0xff]  ;;  %v5238_v41 = vcombine.high %v144_v31, %v148_v32  ;;  %v5237_v46 = vcombine.low %v144_v31, %v148_v32  ;;  %v5259_v58 = vcombine.low %v167_v43, %v171_v44  ;;  %v724_v9 = vld [vmem:[#allocation8 + $0x8] sm:$0xff]  ;;  %v743_v14 = vld [vmem:[#allocation8 + $0xa0] sm:$0xff] }
  0x93   :  { %552 = vmatpush1.bf16.msra.mxu0 %v5239_v37  ;;  %593 = vmatpush1.bf16.msra.mxu1 %v5241_v51  ;;  %v5244_v37 = vcombine.high %v151_v25, %v155_v26  ;;  %v160_v47 = vld [vmem:[#allocation5 + $0x158] sm:$0xff]  ;;  %v175_v51 = vld [vmem:[#allocation5 + $0x1d0] sm:$0xff]  ;;  %v747_v21 = vld [vmem:[#allocation8 + $0xc0] sm:$0xff]  ;;  %v5287_v28 = vcombine.low %v739_v13, %v743_v14 }
  0x94   :  { %553 = vmatprep.subr.bf16.mxu0 %v5248_v40  ;;  %594 = vmatprep.subr.bf16.mxu1 %v5250_v52  ;;  %v156_v40 = vld [vmem:[#allocation5 + $0x138] sm:$0xff]  ;;  %v179_v52 = vld [vmem:[#allocation5 + $0x1f0] sm:$0xff] }
  0x95   :  { %v5246_v49 = vcombine.high %v152_v39, %v156_v40  ;;  %v5245_v54 = vcombine.low %v152_v39, %v156_v40  ;;  %v168_v55 = vld [vmem:[#allocation5 + $0x198] sm:$0xff]  ;;  %v728_v10 = vld [vmem:[#allocation8 + $0x28] sm:$0xff] }
  0x96   :  { %v176_v63 = vld [vmem:[#allocation5 + $0x1d8] sm:$0xff]  ;;  %v732_v17 = vld [vmem:[#allocation8 + $0x48] sm:$0xff] }
  0x97   :  { %554 = vmatpush1.bf16.msra.mxu0 %v5247_v45  ;;  %595 = vmatpush1.bf16.msra.mxu1 %v5249_v57  ;;  %v5252_v45 = vcombine.high %v159_v35, %v163_v36  ;;  %v180_v1 = vld [vmem:[#allocation5 + $0x1f8] sm:$0xff]  ;;  %v736_v18 = vld [vmem:[#allocation8 + $0x68] sm:$0xff] }
  0x98   :  { %555 = vmatprep.subr.bf16.mxu0 %v5256_v48  ;;  %596 = vmatprep.subr.bf16.mxu1 %v5258_v60  ;;  %v164_v48 = vld [vmem:[#allocation5 + $0x178] sm:$0xff]  ;;  %v727_v60 = vld [vmem:[#allocation8 + $0x20] sm:$0xff]  ;;  %v740_v25 = vld [vmem:[#allocation8 + $0x88] sm:$0xff]  ;;  %v5282_v27 = vcombine.high %v732_v17, %v736_v18  ;;  %v5281_v32 = vcombine.low %v732_v17, %v736_v18 }
  0x99   :  { %v5254_v57 = vcombine.high %v160_v47, %v164_v48  ;;  %v5253_v62 = vcombine.low %v160_v47, %v164_v48  ;;  %v744_v26 = vld [vmem:[#allocation8 + $0xa8] sm:$0xff]  ;;  %v807_v17 = vld [vmem:[#allocation8 + $0x2a0] sm:$0xff] }
  0x9a   :  { %v5290_v35 = vcombine.high %v740_v25, %v744_v26  ;;  %v5289_v40 = vcombine.low %v740_v25, %v744_v26  ;;  %v815_v25 = vld [vmem:[#allocation8 + $0x2e0] sm:$0xff] }
  0x9b   :  { %556 = vmatpush1.bf16.msra.mxu0 %v5255_v53  ;;  %597 = vmatpush1.bf16.msra.mxu1 %v5257_v3  ;;  %v5260_v53 = vcombine.high %v167_v43, %v171_v44  ;;  %v5267_v3 = vcombine.low %v175_v51, %v179_v52  ;;  %v771_v44 = vld [vmem:[#allocation8 + $0x180] sm:$0xff] }
  0x9c   :  { %557 = vmatprep.subr.bf16.mxu0 %v5264_v56  ;;  %598 = vmatprep.subr.bf16.mxu1 %v5266_v7  ;;  %v172_v56 = vld [vmem:[#allocation5 + $0x1b8] sm:$0xff]  ;;  %v5272_v7 = vcombine.high %v723_v59, %v727_v60 }
  0x9f   :  { %558 = vmatpush1.bf16.msra.mxu0 %v5263_v61  ;;  %599 = vmatpush1.bf16.msra.mxu1 %v5265_v12  ;;  %v5268_v61 = vcombine.high %v175_v51, %v179_v52  ;;  %v5271_v12 = vcombine.low %v723_v59, %v727_v60  ;;  %v768_v51 = vld [vmem:[#allocation8 + $0x168] sm:$0xff] }
  0xa0   :  { %625 = vmatprep.subr.bf16.mxu0 %v5212_v2  ;;  %666 = vmatprep.subr.bf16.mxu1 %v5214_v15  ;;  %v5262_v2 = vcombine.high %v168_v55, %v172_v56  ;;  %v5280_v15 = vcombine.high %v731_v4, %v735_v5  ;;  %v776_v59 = vld [vmem:[#allocation8 + $0x1a8] sm:$0xff] }
  0xa1   :  { %v784_v4 = vld [vmem:[#allocation8 + $0x1e8] sm:$0xff] }
  0xa2   :  { %576 = vmatmul.mubr.bf16.vlgmr.msra.gmra.mrb[0].mxu0 %v6395_v6  ;;  %617 = vmatmul.mubr.bf16.vlgmr.msra.gmra.mrb[0].mxu1 %v6395_v6 }
  0xa3   :  { %626 = vmatpush1.bf16.msra.mxu0 %v5211_v8  ;;  %657 = vmatprep.mubr.bf16.mxu0 %v6267_v0  ;;  %v5261_v8 = vcombine.low %v168_v55, %v172_v56  ;;  %v783_v55 = vld [vmem:[#allocation8 + $0x1e0] sm:$0xff] }
  0xa4   :  { %627 = vmatprep.subr.bf16.mxu0 %v5220_v11  ;;  %667 = vmatpush1.bf16.msra.mxu1 %v5213_v22  ;;  %v5270_v11 = vcombine.high %v176_v63, %v180_v1  ;;  %v751_v22 = vld [vmem:[#allocation8 + $0xe0] sm:$0xff] }
  0xa5   :  { %698 = vmatprep.mubr.bf16.mxu1 %v6267_v0  ;;  %668 = vmatprep.subr.bf16.mxu1 %v5222_v23  ;;  %v5288_v23 = vcombine.high %v739_v13, %v743_v14  ;;  %v5296_v31 = vcombine.high %v747_v21, %v751_v22  ;;  %v5295_v36 = vcombine.low %v747_v21, %v751_v22  ;;  %v792_v13 = vld [vmem:[#allocation8 + $0x228] sm:$0xff] }
  0xa6   :  { %v800_v21 = vld [vmem:[#allocation8 + $0x268] sm:$0xff] }
  0xa7   :  { %628 = vmatpush1.bf16.msra.mxu0 %v5219_v16  ;;  %v5269_v16 = vcombine.low %v176_v63, %v180_v1  ;;  %v791_v63 = vld [vmem:[#allocation8 + $0x220] sm:$0xff] }
  0xa8   :  { %629 = vmatprep.subr.bf16.mxu0 %v5228_v19  ;;  %669 = vmatpush1.bf16.msra.mxu1 %v5221_v30  ;;  %v5274_v19 = vcombine.high %v724_v9, %v728_v10  ;;  %v759_v30 = vld [vmem:[#allocation8 + $0x120] sm:$0xff] }
  0xa9   :  { %670 = vmatprep.subr.bf16.mxu1 %v5230_v33  ;;  %v748_v33 = vld [vmem:[#allocation8 + $0xc8] sm:$0xff] }
  0xab   :  { %630 = vmatpush1.bf16.msra.mxu0 %v5227_v24  ;;  %v5273_v24 = vcombine.low %v724_v9, %v728_v10  ;;  %v799_v9 = vld [vmem:[#allocation8 + $0x260] sm:$0xff] }
  0xac   :  { %631 = vmatprep.subr.bf16.mxu0 %v5236_v29  ;;  %671 = vmatpush1.bf16.msra.mxu1 %v5229_v38  ;;  %v755_v29 = vld [vmem:[#allocation8 + $0x100] sm:$0xff] }
  0xad   :  { %672 = vmatprep.subr.bf16.mxu1 %v5238_v41  ;;  %v767_v38 = vld [vmem:[#allocation8 + $0x160] sm:$0xff]  ;;  %v5304_v39 = vcombine.high %v755_v29, %v759_v30  ;;  %v756_v41 = vld [vmem:[#allocation8 + $0x108] sm:$0xff]  ;;  %v5303_v43 = vcombine.low %v755_v29, %v759_v30 }
  0xae   :  { %v808_v29 = vld [vmem:[#allocation8 + $0x2a8] sm:$0xff] }
  0xaf   :  { %632 = vmatpush1.bf16.msra.mxu0 %v5235_v34  ;;  %v752_v34 = vld [vmem:[#allocation8 + $0xe8] sm:$0xff] }
  0xb0   :  { %633 = vmatprep.subr.bf16.mxu0 %v5244_v37  ;;  %673 = vmatpush1.bf16.msra.mxu1 %v5237_v46  ;;  %v763_v37 = vld [vmem:[#allocation8 + $0x140] sm:$0xff]  ;;  %v5297_v47 = vcombine.low %v748_v33, %v752_v34 }
  0xb1   :  { %674 = vmatprep.subr.bf16.mxu1 %v5246_v49  ;;  %v5312_v46 = vcombine.high %v763_v37, %v767_v38  ;;  %v5311_v49 = vcombine.low %v763_v37, %v767_v38  ;;  %v816_v37 = vld [vmem:[#allocation8 + $0x2e8] sm:$0xff] }
  0xb3   :  { %634 = vmatpush1.bf16.msra.mxu0 %v5243_v42  ;;  %v760_v42 = vld [vmem:[#allocation8 + $0x128] sm:$0xff] }
  0xb4   :  { %635 = vmatprep.subr.bf16.mxu0 %v5252_v45  ;;  %675 = vmatpush1.bf16.msra.mxu1 %v5245_v54  ;;  %v775_v45 = vld [vmem:[#allocation8 + $0x1a0] sm:$0xff]  ;;  %v5306_v48 = vcombine.high %v756_v41, %v760_v42 }
  0xb5   :  { %676 = vmatprep.subr.bf16.mxu1 %v5254_v57  ;;  %v5320_v52 = vcombine.high %v771_v44, %v775_v45  ;;  %v779_v54 = vld [vmem:[#allocation8 + $0x1c0] sm:$0xff]  ;;  %v5319_v57 = vcombine.low %v771_v44, %v775_v45  ;;  %v824_v44 = vld [vmem:[#allocation8 + $0x328] sm:$0xff] }
  0xb6   :  { %v5328_v60 = vcombine.high %v779_v54, %v783_v55 }
  0xb7   :  { %636 = vmatpush1.bf16.msra.mxu0 %v5251_v50  ;;  %v764_v50 = vld [vmem:[#allocation8 + $0x148] sm:$0xff] }
  0xb8   :  { %637 = vmatprep.subr.bf16.mxu0 %v5260_v53  ;;  %677 = vmatpush1.bf16.msra.mxu1 %v5253_v62  ;;  %v5305_v53 = vcombine.low %v756_v41, %v760_v42  ;;  %v5314_v56 = vcombine.high %v764_v50, %v768_v51  ;;  %v787_v62 = vld [vmem:[#allocation8 + $0x200] sm:$0xff] }
  0xb9   :  { %678 = vmatprep.subr.bf16.mxu1 %v5262_v2  ;;  %v5327_v2 = vcombine.low %v779_v54, %v783_v55  ;;  %v5336_v5 = vcombine.high %v787_v62, %v791_v63  ;;  %v831_v41 = vld [vmem:[#allocation8 + $0x360] sm:$0xff] }
  0xbb   :  { %638 = vmatpush1.bf16.msra.mxu0 %v5259_v58  ;;  %v772_v58 = vld [vmem:[#allocation8 + $0x188] sm:$0xff] }
  0xbc   :  { %639 = vmatprep.subr.bf16.mxu0 %v5268_v61  ;;  %679 = vmatpush1.bf16.msra.mxu1 %v5261_v8  ;;  %v5313_v61 = vcombine.low %v764_v50, %v768_v51  ;;  %v5322_v1 = vcombine.high %v772_v58, %v776_v59  ;;  %v795_v8 = vld [vmem:[#allocation8 + $0x240] sm:$0xff]  ;;  %v828_v51 = vld [vmem:[#allocation8 + $0x348] sm:$0xff] }
  0xbd   :  { %680 = vmatprep.subr.bf16.mxu1 %v5270_v11  ;;  %v5335_v11 = vcombine.low %v787_v62, %v791_v63  ;;  %v5344_v14 = vcombine.high %v795_v8, %v799_v9 }
  0xbf   :  { %640 = vmatpush1.bf16.msra.mxu0 %v5267_v3  ;;  %v780_v3 = vld [vmem:[#allocation8 + $0x1c8] sm:$0xff] }
  0xc0   :  { %3837 = vmatprep.subr.bf16.mxu0 %v5272_v7  ;;  %681 = vmatpush1.bf16.msra.mxu1 %v5269_v16  ;;  %v5321_v7 = vcombine.low %v772_v58, %v776_v59  ;;  %v5330_v10 = vcombine.high %v780_v3, %v784_v4  ;;  %v803_v16 = vld [vmem:[#allocation8 + $0x280] sm:$0xff]  ;;  %v836_v59 = vld [vmem:[#allocation8 + $0x388] sm:$0xff] }
  0xc1   :  { %4001 = vmatprep.subr.bf16.mxu1 %v5274_v19  ;;  %v5343_v19 = vcombine.low %v795_v8, %v799_v9  ;;  %v5352_v22 = vcombine.high %v803_v16, %v807_v17  ;;  %v856_v8 = vld [vmem:[#allocation8 + $0x428] sm:$0xff] }
  0xc2   :  { %658 = vmatmul.mubr.bf16.vlgmr.msra.gmra.mrb[4].mxu0 %v6395_v6 }
  0xc3   :  { %3838 = vmatpush1.bf16.msra.mxu0 %v5271_v12  ;;  %699 = vmatmul.mubr.bf16.vlgmr.msra.gmra.mrb[4].mxu1 %v6395_v6  ;;  %v5298_v6 = vcombine.high %v748_v33, %v752_v34  ;;  %v788_v12 = vld [vmem:[#allocation8 + $0x208] sm:$0xff]  ;;  %v823_v33 = vld [vmem:[#allocation8 + $0x320] sm:$0xff] }
  0xc4   :  { %3839 = vmatprep.subr.bf16.mxu0 %v5280_v15  ;;  %4002 = vmatpush1.bf16.msra.mxu1 %v5273_v24  ;;  %v5329_v15 = vcombine.low %v780_v3, %v784_v4  ;;  %v5338_v18 = vcombine.high %v788_v12, %v792_v13  ;;  %v811_v24 = vld [vmem:[#allocation8 + $0x2c0] sm:$0xff]  ;;  %v852_v3 = vld [vmem:[#allocation8 + $0x408] sm:$0xff] }
  0xc5   :  { %4003 = vmatprep.subr.bf16.mxu1 %v5282_v27  ;;  %v5351_v27 = vcombine.low %v803_v16, %v807_v17  ;;  %v5360_v30 = vcombine.high %v811_v24, %v815_v25  ;;  %v183_v16 = vlaneseq }
  0xc7   :  { %3840 = vmatpush1.bf16.msra.mxu0 %v5279_v20  ;;  %v796_v20 = vld [vmem:[#allocation8 + $0x248] sm:$0xff]  ;;  %v6403_v17 = vshrl.u32 %v183_v16, 7 }
  0xc8   :  { %3841 = vmatprep.subr.bf16.mxu0 %v5288_v23  ;;  %4004 = vmatpush1.bf16.msra.mxu1 %v5281_v32  ;;  %v5337_v23 = vcombine.low %v788_v12, %v792_v13  ;;  %v5346_v26 = vcombine.high %v796_v20, %v800_v21  ;;  %v819_v32 = vld [vmem:[#allocation8 + $0x300] sm:$0xff] }
  0xc9   :  { %4005 = vmatprep.subr.bf16.mxu1 %v5290_v35  ;;  %v5359_v35 = vcombine.low %v811_v24, %v815_v25  ;;  %v5368_v38 = vcombine.high %v819_v32, %v823_v33  ;;  %v197_v24 = vsub.s32 3, %v6403_v17 }
  0xcb   :  { %3842 = vmatpush1.bf16.msra.mxu0 %v5287_v28  ;;  %v804_v28 = vld [vmem:[#allocation8 + $0x288] sm:$0xff] }
  0xcc   :  { %3843 = vmatprep.subr.bf16.mxu0 %v5296_v31  ;;  %4006 = vmatpush1.bf16.msra.mxu1 %v5289_v40  ;;  %v5345_v31 = vcombine.low %v796_v20, %v800_v21  ;;  %v5354_v34 = vcombine.high %v804_v28, %v808_v29  ;;  %v827_v40 = vld [vmem:[#allocation8 + $0x340] sm:$0xff]  ;;  %v189_v20 = vsub.s32 1, %v6403_v17 }
  0xcd   :  { %4007 = vmatprep.subr.bf16.mxu1 %v5298_v6  ;;  %v5367_v6 = vcombine.low %v819_v32, %v823_v33  ;;  %v5376_v45 = vcombine.high %v827_v40, %v831_v41  ;;  %v5375_v50 = vcombine.low %v827_v40, %v831_v41  ;;  %v863_v33 = vld [vmem:[#allocation8 + $0x460] sm:$0xff] }
  0xcf   :  { %3844 = vmatpush1.bf16.msra.mxu0 %v5295_v36  ;;  %v812_v36 = vld [vmem:[#allocation8 + $0x2c8] sm:$0xff] }
  0xd0   :  { %3845 = vmatprep.subr.bf16.mxu0 %v5304_v39  ;;  %4008 = vmatpush1.bf16.msra.mxu1 %v5297_v47  ;;  %v5353_v39 = vcombine.low %v804_v28, %v808_v29  ;;  %v5362_v42 = vcombine.high %v812_v36, %v816_v37 }
  0xd1   :  { %4009 = vmatprep.subr.bf16.mxu1 %v5306_v48  ;;  %v835_v48 = vld [vmem:[#allocation8 + $0x380] sm:$0xff] }
  0xd3   :  { %3846 = vmatpush1.bf16.msra.mxu0 %v5303_v43  ;;  %v820_v43 = vld [vmem:[#allocation8 + $0x308] sm:$0xff] }
  0xd4   :  { %3847 = vmatprep.subr.bf16.mxu0 %v5312_v46  ;;  %4010 = vmatpush1.bf16.msra.mxu1 %v5305_v53  ;;  %v5361_v46 = vcombine.low %v812_v36, %v816_v37  ;;  %v5370_v47 = vcombine.high %v820_v43, %v824_v44  ;;  %v5369_v54 = vcombine.low %v820_v43, %v824_v44  ;;  %v871_v43 = vld [vmem:[#allocation8 + $0x4a0] sm:$0xff]  ;;  %v868_v44 = vld [vmem:[#allocation8 + $0x488] sm:$0xff] }
  0xd5   :  { %4011 = vmatprep.subr.bf16.mxu1 %v5314_v56  ;;  %v843_v56 = vld [vmem:[#allocation8 + $0x3c0] sm:$0xff] }
  0xd7   :  { %3848 = vmatpush1.bf16.msra.mxu0 %v5311_v49  ;;  %v839_v49 = vld [vmem:[#allocation8 + $0x3a0] sm:$0xff] }
  0xd8   :  { %3849 = vmatprep.subr.bf16.mxu0 %v5320_v52  ;;  %4012 = vmatpush1.bf16.msra.mxu1 %v5313_v61  ;;  %v832_v52 = vld [vmem:[#allocation8 + $0x368] sm:$0xff]  ;;  %v5384_v53 = vcombine.high %v835_v48, %v839_v49  ;;  %v5383_v58 = vcombine.low %v835_v48, %v839_v49 }
  0xd9   :  { %4013 = vmatprep.subr.bf16.mxu1 %v5322_v1  ;;  %v5378_v55 = vcombine.high %v828_v51, %v832_v52  ;;  %v5377_v62 = vcombine.low %v828_v51, %v832_v52  ;;  %v851_v1 = vld [vmem:[#allocation8 + $0x400] sm:$0xff] }
  0xdb   :  { %3850 = vmatpush1.bf16.msra.mxu0 %v5319_v57  ;;  %v847_v57 = vld [vmem:[#allocation8 + $0x3e0] sm:$0xff] }
  0xdc   :  { %3851 = vmatprep.subr.bf16.mxu0 %v5328_v60  ;;  %4014 = vmatpush1.bf16.msra.mxu1 %v5321_v7  ;;  %v840_v60 = vld [vmem:[#allocation8 + $0x3a8] sm:$0xff]  ;;  %v5392_v61 = vcombine.high %v843_v56, %v847_v57  ;;  %v5391_v4 = vcombine.low %v843_v56, %v847_v57 }
  0xdd   :  { %4015 = vmatprep.subr.bf16.mxu1 %v5330_v10  ;;  %v5386_v63 = vcombine.high %v836_v59, %v840_v60  ;;  %v848_v7 = vld [vmem:[#allocation8 + $0x3e8] sm:$0xff]  ;;  %v5385_v12 = vcombine.low %v836_v59, %v840_v60 }
  0xde   :  { %v876_v56 = vld [vmem:[#allocation8 + $0x4c8] sm:$0xff] }
  0xdf   :  { %3852 = vmatpush1.bf16.msra.mxu0 %v5327_v2  ;;  %v855_v2 = vld [vmem:[#allocation8 + $0x420] sm:$0xff]  ;;  %v880_v57 = vld [vmem:[#allocation8 + $0x4e8] sm:$0xff] }
  0xe0   :  { %3853 = vmatprep.subr.bf16.mxu0 %v5336_v5  ;;  %4016 = vmatpush1.bf16.msra.mxu1 %v5329_v15  ;;  %v844_v5 = vld [vmem:[#allocation8 + $0x3c8] sm:$0xff]  ;;  %v5399_v9 = vcombine.low %v851_v1, %v855_v2  ;;  %v5400_v10 = vcombine.high %v851_v1, %v855_v2  ;;  %v5402_v15 = vcombine.high %v852_v3, %v856_v8  ;;  %v887_v1 = vld [vmem:[#allocation8 + $0x520] sm:$0xff] }
  0xe1   :  { %4017 = vmatprep.subr.bf16.mxu1 %v5338_v18  ;;  %v5394_v13 = vcombine.high %v844_v5, %v848_v7  ;;  %v185_v18 = vsub.s32 0, %v6403_v17  ;;  %v884_v2 = vld [vmem:[#allocation8 + $0x508] sm:$0xff] }
  0xe3   :  { %3854 = vmatpush1.bf16.msra.mxu0 %v5335_v11  ;;  %v5401_v11 = vcombine.low %v852_v3, %v856_v8  ;;  %v888_v3 = vld [vmem:[#allocation8 + $0x528] sm:$0xff] }
  0xe4   :  { %3855 = vmatprep.subr.bf16.mxu0 %v5344_v14  ;;  %4018 = vmatpush1.bf16.msra.mxu1 %v5337_v23  ;;  %v5393_v14 = vcombine.low %v844_v5, %v848_v7  ;;  %v5425_v5 = vcombine.low %v876_v56, %v880_v57  ;;  %v5434_v8 = vcombine.high %v884_v2, %v888_v3 }
  0xe5   :  { %4019 = vmatprep.subr.bf16.mxu1 %v5346_v26 }
  0xe7   :  { %3856 = vmatpush1.bf16.msra.mxu0 %v5343_v19  ;;  %v6406_v19 = vld [vmem:[#allocation7] sm:$0xff] }
  0xe8   :  { %3857 = vmatprep.subr.bf16.mxu0 %v5352_v22  ;;  %4020 = vmatpush1.bf16.msra.mxu1 %v5345_v31  ;;  %v186_v21 = vrot.slane %v6406_v19, %v185_v18  ;;  %v190_v22 = vrot.slane %v6406_v19, %v189_v20  ;;  %v859_v31 = vld [vmem:[#allocation8 + $0x440] sm:$0xff]  ;;  %v198_v36 = vrot.slane %v6406_v19, %v197_v24 }
  0xe9   :  { %4021 = vmatprep.subr.bf16.mxu1 %v5354_v34  ;;  %v860_v34 = vld [vmem:[#allocation8 + $0x448] sm:$0xff]  ;;  %v5408_v40 = vcombine.high %v859_v31, %v863_v33  ;;  %v5407_v49 = vcombine.low %v859_v31, %v863_v33  ;;  %v911_v31 = vld [vmem:[#allocation8 + $0x5e0] sm:$0xff] }
  0xea   :  { %v912_v33 = vld [vmem:[#allocation8 + $0x5e8] sm:$0xff] }
  0xeb   :  { %3858 = vmatpush1.bf16.msra.mxu0 %v5351_v27 }
  0xec   :  { %3859 = vmatprep.subr.bf16.mxu0 %v5360_v30  ;;  %4022 = vmatpush1.bf16.msra.mxu1 %v5353_v39 }
  0xed   :  { %4023 = vmatprep.subr.bf16.mxu1 %v5362_v42  ;;  %v867_v42 = vld [vmem:[#allocation8 + $0x480] sm:$0xff] }
  0xee   :  { %v5416_v52 = vcombine.high %v867_v42, %v871_v43  ;;  %v5415_v59 = vcombine.low %v867_v42, %v871_v43  ;;  %v919_v42 = vld [vmem:[#allocation8 + $0x620] sm:$0xff]  ;;  %v920_v43 = vld [vmem:[#allocation8 + $0x628] sm:$0xff] }
  0xef   :  { %3860 = vmatpush1.bf16.msra.mxu0 %v5359_v35  ;;  %v864_v35 = vld [vmem:[#allocation8 + $0x468] sm:$0xff] }
  0xf0   :  { %3861 = vmatprep.subr.bf16.mxu0 %v5368_v38  ;;  %4024 = vmatpush1.bf16.msra.mxu1 %v5361_v46  ;;  %v5410_v41 = vcombine.high %v860_v34, %v864_v35 }
  0xf1   :  { %4025 = vmatprep.subr.bf16.mxu1 %v5370_v47 }
  0xf3   :  { %3862 = vmatpush1.bf16.msra.mxu0 %v5367_v6 }
  0xf4   :  { %3863 = vmatprep.subr.bf16.mxu0 %v5376_v45  ;;  %4026 = vmatpush1.bf16.msra.mxu1 %v5369_v54  ;;  %v872_v45 = vld [vmem:[#allocation8 + $0x4a8] sm:$0xff]  ;;  %v875_v54 = vld [vmem:[#allocation8 + $0x4c0] sm:$0xff] }
  0xf5   :  { %4027 = vmatprep.subr.bf16.mxu1 %v5378_v55  ;;  %v879_v55 = vld [vmem:[#allocation8 + $0x4e0] sm:$0xff]  ;;  %v5417_v60 = vcombine.low %v868_v44, %v872_v45 }
  0xf7   :  { %3864 = vmatpush1.bf16.msra.mxu0 %v5375_v50  ;;  %v5409_v50 = vcombine.low %v860_v34, %v864_v35 }
  0xf8   :  { %3865 = vmatprep.subr.bf16.mxu0 %v5384_v53  ;;  %4028 = vmatpush1.bf16.msra.mxu1 %v5377_v62  ;;  %v5418_v53 = vcombine.high %v868_v44, %v872_v45  ;;  %v5426_v62 = vcombine.high %v876_v56, %v880_v57 }
  0xf9   :  { %4029 = vmatprep.subr.bf16.mxu1 %v5386_v63  ;;  %v883_v63 = vld [vmem:[#allocation8 + $0x500] sm:$0xff] }
  0xfa   :  { %v5432_v7 = vcombine.high %v883_v63, %v887_v1 }
  0xfb   :  { %3866 = vmatpush1.bf16.msra.mxu0 %v5383_v58 }
  0xfc   :  { %3867 = vmatprep.subr.bf16.mxu0 %v5392_v61  ;;  %4030 = vmatpush1.bf16.msra.mxu1 %v5385_v12  ;;  %v5424_v61 = vcombine.high %v875_v54, %v879_v55  ;;  %v896_v12 = vld [vmem:[#allocation8 + $0x568] sm:$0xff] }
  0xfd   :  { %4031 = vmatprep.subr.bf16.mxu1 %v5394_v13  ;;  %v5431_v13 = vcombine.low %v883_v63, %v887_v1  ;;  %v935_v1 = vld [vmem:[#allocation8 + $0x6a0] sm:$0xff] }
  0xff   :  { %3868 = vmatpush1.bf16.msra.mxu0 %v5391_v4  ;;  %v5423_v4 = vcombine.low %v875_v54, %v879_v55  ;;  %v924_v54 = vld [vmem:[#allocation8 + $0x648] sm:$0xff] }
 0x100   :  { %3878 = vmatprep.subr.bf16.mxu0 %v5400_v10  ;;  %4032 = vmatpush1.bf16.msra.mxu1 %v5393_v14  ;;  %v895_v10 = vld [vmem:[#allocation8 + $0x560] sm:$0xff]  ;;  %v5433_v14 = vcombine.low %v884_v2, %v888_v3  ;;  %v928_v55 = vld [vmem:[#allocation8 + $0x668] sm:$0xff] }
 0x101   :  { %4042 = vmatprep.subr.bf16.mxu1 %v5402_v15  ;;  %v932_v2 = vld [vmem:[#allocation8 + $0x688] sm:$0xff] }
 0x102   :  { %v936_v3 = vld [vmem:[#allocation8 + $0x6a8] sm:$0xff] }
 0x175   :  { %v577_v23 = vpop.f32.mrb[0].mxu0  ;;  %v6422_v38 = vpop.f32.mrb[0].mxu1 }
 0x176   :  { %v578_v25 = vadd.f32 %v577_v23, %v186_v21  ;;  %v579_v26 = vpop.f32.mrb[1].mxu0  ;;  %v620_v6 = vpop.f32.mrb[1].mxu1  ;;  %v899_v21 = vld [vmem:[#allocation8 + $0x580] sm:$0xff]  ;;  %v900_v23 = vld [vmem:[#allocation8 + $0x588] sm:$0xff] }
 0x177   :  { %v580_v27 = vadd.f32 %v579_v26, %v190_v22  ;;  %v581_v28 = vpop.f32.mrb[2].mxu0  ;;  %v621_v46 = vadd.f32 %v620_v6, %v198_v36  ;;  %v622_v47 = vpop.f32.mrb[2].mxu1  ;;  %v903_v22 = vld [vmem:[#allocation8 + $0x5a0] sm:$0xff]  ;;  %v916_v6 = vld [vmem:[#allocation8 + $0x608] sm:$0xff] }
 0x178   :  { %v707_v29 = vpack.c.bf16 %v578_v25, %v578_v25  ;;  %v582_v30 = vpop.f32.mrb[3].mxu0  ;;  %v623_v48 = vpop.f32.mrb[3].mxu1  ;;  %v904_v25 = vld [vmem:[#allocation8 + $0x5a8] sm:$0xff]  ;;  %v5448_v28 = vcombine.high %v899_v21, %v903_v22  ;;  %v5447_v34 = vcombine.low %v899_v21, %v903_v22  ;;  %v5465_v57 = vcombine.low %v916_v6, %v920_v43 }
 0x179   :  { %v708_v32 = vpack.c.bf16 %v580_v27, %v580_v27  ;;  %v710_v51 = vpack.c.bf16 %v621_v46, %v621_v46  ;;  %v907_v30 = vld [vmem:[#allocation8 + $0x5c0] sm:$0xff]  ;;  %v5449_v35 = vcombine.low %v900_v23, %v904_v25 }
 0x17a   :  { %v6425_v39 = vmax.bf16 %v6267_v0, %v707_v29  ;;  %v5450_v29 = vcombine.high %v900_v23, %v904_v25  ;;  %v5456_v36 = vcombine.high %v907_v30, %v911_v31  ;;  %v5455_v46 = vcombine.low %v907_v30, %v911_v31  ;;  %v947_v23 = vld [vmem:[#allocation8 + $0x700] sm:$0xff] }
 0x17b   :  { %v6420_v37 = vmax.bf16 %v6267_v0, %v708_v32  ;;  %v6432_v58 = vmax.bf16 %v6267_v0, %v710_v51  ;;  %v908_v32 = vld [vmem:[#allocation8 + $0x5c8] sm:$0xff]  ;;  %v923_v51 = vld [vmem:[#allocation8 + $0x640] sm:$0xff] }
 0x17c   :  { %v5457_v47 = vcombine.low %v908_v32, %v912_v33  ;;  %v951_v25 = vld [vmem:[#allocation8 + $0x720] sm:$0xff] }
 0x17d   :  { %3869 = vmatprep.mubr.bf16.mxu0 %v6420_v37  ;;  %4033 = vmatprep.mubr.bf16.mxu1 %v6420_v37  ;;  %v5496_v30 = vcombine.high %v947_v23, %v951_v25 }
 0x17e   :  { %3870 = vmatmul.mubr.bf16.vlgmr.msra.gmra.mrb[8].mxu0 %v6425_v39  ;;  %4034 = vmatmul.mubr.bf16.vlgmr.msra.gmra.mrb[8].mxu1 %v6425_v39 }
 0x17f   :  { %3879 = vmatpush1.bf16.msra.mxu0 %v5399_v9  ;;  %4043 = vmatpush1.bf16.msra.mxu1 %v5401_v11  ;;  %v891_v9 = vld [vmem:[#allocation8 + $0x540] sm:$0xff]  ;;  %v892_v11 = vld [vmem:[#allocation8 + $0x548] sm:$0xff] }
 0x180   :  { %3880 = vmatprep.subr.bf16.mxu0 %v5408_v40  ;;  %4044 = vmatprep.subr.bf16.mxu1 %v5410_v41  ;;  %v5440_v15 = vcombine.high %v891_v9, %v895_v10  ;;  %v5442_v16 = vcombine.high %v892_v11, %v896_v12  ;;  %v5439_v26 = vcombine.low %v891_v9, %v895_v10  ;;  %v915_v41 = vld [vmem:[#allocation8 + $0x600] sm:$0xff] }
 0x181   :  { %3910 = vmatprep.mubr.bf16.mxu0 %v6432_v58  ;;  %4074 = vmatprep.mubr.bf16.mxu1 %v6432_v58  ;;  %v5441_v27 = vcombine.low %v892_v11, %v896_v12  ;;  %v5458_v40 = vcombine.high %v908_v32, %v912_v33  ;;  %v5463_v56 = vcombine.low %v915_v41, %v919_v42  ;;  %v939_v11 = vld [vmem:[#allocation8 + $0x6c0] sm:$0xff] }
 0x182   :  { %v5482_v10 = vcombine.high %v932_v2, %v936_v3  ;;  %v943_v12 = vld [vmem:[#allocation8 + $0x6e0] sm:$0xff] }
 0x183   :  { %3881 = vmatpush1.bf16.msra.mxu0 %v5407_v49  ;;  %4045 = vmatpush1.bf16.msra.mxu1 %v5409_v50  ;;  %v5464_v49 = vcombine.high %v915_v41, %v919_v42  ;;  %v5466_v50 = vcombine.high %v916_v6, %v920_v43  ;;  %v5488_v21 = vcombine.high %v939_v11, %v943_v12  ;;  %v955_v32 = vld [vmem:[#allocation8 + $0x740] sm:$0xff] }
 0x184   :  { %3882 = vmatprep.subr.bf16.mxu0 %v5416_v52  ;;  %4046 = vmatprep.subr.bf16.mxu1 %v5418_v53  ;;  %v927_v53 = vld [vmem:[#allocation8 + $0x660] sm:$0xff] }
 0x185   :  { %v959_v33 = vld [vmem:[#allocation8 + $0x760] sm:$0xff] }
 0x186   :  { %v5504_v42 = vcombine.high %v955_v32, %v959_v33  ;;  %v963_v43 = vld [vmem:[#allocation8 + $0x780] sm:$0xff] }
 0x187   :  { %3883 = vmatpush1.bf16.msra.mxu0 %v5415_v59  ;;  %4047 = vmatpush1.bf16.msra.mxu1 %v5417_v60  ;;  %v5472_v60 = vcombine.high %v923_v51, %v927_v53 }
 0x188   :  { %3884 = vmatprep.subr.bf16.mxu0 %v5424_v61  ;;  %4048 = vmatprep.subr.bf16.mxu1 %v5426_v62  ;;  %v5474_v61 = vcombine.high %v924_v54, %v928_v55  ;;  %v931_v62 = vld [vmem:[#allocation8 + $0x680] sm:$0xff] }
 0x189   :  { %v5480_v9 = vcombine.high %v931_v62, %v935_v1 }
 0x18b   :  { %3885 = vmatpush1.bf16.msra.mxu0 %v5423_v4  ;;  %4049 = vmatpush1.bf16.msra.mxu1 %v5425_v5 }
 0x18c   :  { %3886 = vmatprep.subr.bf16.mxu0 %v5432_v7  ;;  %4050 = vmatprep.subr.bf16.mxu1 %v5434_v8  ;;  %v5471_v7 = vcombine.low %v923_v51, %v927_v53  ;;  %v5473_v8 = vcombine.low %v924_v54, %v928_v55  ;;  %v5503_v51 = vcombine.low %v955_v32, %v959_v33  ;;  %v971_v55 = vld [vmem:[#allocation8 + $0x7c0] sm:$0xff]  ;;  %v1000_v32 = vld [vmem:[#allocation8 + $0x8a8] sm:$0xff] }
 0x18f   :  { %3887 = vmatpush1.bf16.msra.mxu0 %v5431_v13  ;;  %4051 = vmatpush1.bf16.msra.mxu1 %v5433_v14  ;;  %v940_v13 = vld [vmem:[#allocation8 + $0x6c8] sm:$0xff] }
 0x190   :  { %3888 = vmatprep.subr.bf16.mxu0 %v5440_v15  ;;  %4052 = vmatprep.subr.bf16.mxu1 %v5442_v16  ;;  %v944_v14 = vld [vmem:[#allocation8 + $0x6e8] sm:$0xff]  ;;  %v5479_v15 = vcombine.low %v931_v62, %v935_v1  ;;  %v5481_v16 = vcombine.low %v932_v2, %v936_v3 }
 0x191   :  { %v5490_v22 = vcombine.high %v940_v13, %v944_v14 }
 0x193   :  { %3889 = vmatpush1.bf16.msra.mxu0 %v5439_v26  ;;  %4053 = vmatpush1.bf16.msra.mxu1 %v5441_v27  ;;  %v948_v26 = vld [vmem:[#allocation8 + $0x708] sm:$0xff] }
 0x194   :  { %3890 = vmatprep.subr.bf16.mxu0 %v5448_v28  ;;  %4054 = vmatprep.subr.bf16.mxu1 %v5450_v29  ;;  %v952_v27 = vld [vmem:[#allocation8 + $0x728] sm:$0xff]  ;;  %v5487_v28 = vcombine.low %v939_v11, %v943_v12  ;;  %v5489_v29 = vcombine.low %v940_v13, %v944_v14 }
 0x195   :  { %v6436_v44 = vpop.f32.mrb[4].mxu0  ;;  %v5498_v31 = vcombine.high %v948_v26, %v952_v27  ;;  %v5497_v41 = vcombine.low %v948_v26, %v952_v27 }
 0x196   :  { %v6438_v45 = vpop.f32.mrb[5].mxu0  ;;  %v6440_v59 = vpop.f32.mrb[4].mxu1 }
 0x197   :  { %3891 = vmatpush1.bf16.msra.mxu0 %v5447_v34  ;;  %4055 = vmatpush1.bf16.msra.mxu1 %v5449_v35  ;;  %v663_v48 = vpop.f32.mrb[6].mxu0  ;;  %v6442_v63 = vpop.f32.mrb[5].mxu1  ;;  %v956_v34 = vld [vmem:[#allocation8 + $0x748] sm:$0xff] }
 0x198   :  { %3892 = vmatprep.subr.bf16.mxu0 %v5456_v36  ;;  %4056 = vmatprep.subr.bf16.mxu1 %v5458_v40  ;;  %v664_v52 = vpop.f32.mrb[7].mxu0  ;;  %v704_v4 = vpop.f32.mrb[6].mxu1  ;;  %v960_v35 = vld [vmem:[#allocation8 + $0x768] sm:$0xff]  ;;  %v193_v36 = vsub.s32 2, %v6403_v17  ;;  %v5495_v40 = vcombine.low %v947_v23, %v951_v25 }
 0x199   :  { %v705_v5 = vpop.f32.mrb[7].mxu1  ;;  %v5506_v6 = vcombine.high %v956_v34, %v960_v35  ;;  %v968_v48 = vld [vmem:[#allocation8 + $0x7a8] sm:$0xff]  ;;  %v5505_v52 = vcombine.low %v956_v34, %v960_v35 }
 0x19a   :  { %v979_v5 = vld [vmem:[#allocation8 + $0x800] sm:$0xff] }
 0x19b   :  { %3893 = vmatpush1.bf16.msra.mxu0 %v5455_v46  ;;  %4057 = vmatpush1.bf16.msra.mxu1 %v5457_v47  ;;  %v967_v46 = vld [vmem:[#allocation8 + $0x7a0] sm:$0xff]  ;;  %v964_v47 = vld [vmem:[#allocation8 + $0x788] sm:$0xff] }
 0x19c   :  { %3894 = vmatprep.subr.bf16.mxu0 %v5464_v49  ;;  %4058 = vmatprep.subr.bf16.mxu1 %v5466_v50  ;;  %v205_v49 = vsub.s32 5, %v6403_v17  ;;  %v194_v50 = vrot.slane %v6406_v19, %v193_v36  ;;  %v5512_v53 = vcombine.high %v963_v43, %v967_v46  ;;  %v5514_v54 = vcombine.high %v964_v47, %v968_v48 }
 0x19d   :  { %v5511_v1 = vcombine.low %v963_v43, %v967_v46  ;;  %v5513_v2 = vcombine.low %v964_v47, %v968_v48  ;;  %v1004_v43 = vld [vmem:[#allocation8 + $0x8c8] sm:$0xff] }
 0x19e   :  { %v619_v62 = vadd.f32 %v6422_v38, %v194_v50  ;;  %v1008_v46 = vld [vmem:[#allocation8 + $0x8e8] sm:$0xff] }
 0x19f   :  { %3895 = vmatpush1.bf16.msra.mxu0 %v5463_v56  ;;  %4059 = vmatpush1.bf16.msra.mxu1 %v5465_v57  ;;  %v975_v56 = vld [vmem:[#allocation8 + $0x7e0] sm:$0xff]  ;;  %v972_v57 = vld [vmem:[#allocation8 + $0x7c8] sm:$0xff] }
 0x1a0   :  { %3896 = vmatprep.subr.bf16.mxu0 %v5472_v60  ;;  %4060 = vmatprep.subr.bf16.mxu1 %v5474_v61  ;;  %v976_v60 = vld [vmem:[#allocation8 + $0x7e8] sm:$0xff]  ;;  %v206_v61 = vrot.slane %v6406_v19, %v205_v49  ;;  %v5520_v3 = vcombine.high %v971_v55, %v975_v56  ;;  %v709_v11 = vpack.c.bf16 %v619_v62, %v619_v62  ;;  %v1019_v62 = vld [vmem:[#allocation8 + $0x940] sm:$0xff] }
 0x1a1   :  { %v5522_v4 = vcombine.high %v972_v57, %v976_v60  ;;  %v5519_v12 = vcombine.low %v971_v55, %v975_v56  ;;  %v5521_v13 = vcombine.low %v972_v57, %v976_v60  ;;  %v1016_v55 = vld [vmem:[#allocation8 + $0x928] sm:$0xff]  ;;  %v5553_v57 = vcombine.low %v1004_v43, %v1008_v46 }
 0x1a2   :  { %v6455_v25 = vmax.bf16 %v6267_v0, %v709_v11  ;;  %v1028_v11 = vld [vmem:[#allocation8 + $0x988] sm:$0xff] }
 0x1a3   :  { %3897 = vmatpush1.bf16.msra.mxu0 %v5471_v7  ;;  %4061 = vmatpush1.bf16.msra.mxu1 %v5473_v8  ;;  %v983_v7 = vld [vmem:[#allocation8 + $0x820] sm:$0xff]  ;;  %v980_v8 = vld [vmem:[#allocation8 + $0x808] sm:$0xff] }
 0x1a4   :  { %3898 = vmatprep.subr.bf16.mxu0 %v5480_v9  ;;  %4062 = vmatprep.subr.bf16.mxu1 %v5482_v10  ;;  %v984_v9 = vld [vmem:[#allocation8 + $0x828] sm:$0xff]  ;;  %v662_v10 = vadd.f32 %v6438_v45, %v206_v61  ;;  %v5528_v38 = vcombine.high %v979_v5, %v983_v7  ;;  %v5527_v45 = vcombine.low %v979_v5, %v983_v7 }
 0x1a5   :  { %v5530_v14 = vcombine.high %v980_v8, %v984_v9  ;;  %v5529_v26 = vcombine.low %v980_v8, %v984_v9  ;;  %v1027_v9 = vld [vmem:[#allocation8 + $0x980] sm:$0xff] }
 0x1a6   :  { %v712_v23 = vpack.c.bf16 %v662_v10, %v662_v10  ;;  %v1031_v10 = vld [vmem:[#allocation8 + $0x9a0] sm:$0xff] }
 0x1a7   :  { %3899 = vmatpush1.bf16.msra.mxu0 %v5479_v15  ;;  %4063 = vmatpush1.bf16.msra.mxu1 %v5481_v16  ;;  %v987_v15 = vld [vmem:[#allocation8 + $0x840] sm:$0xff] }
 0x1a8   :  { %3900 = vmatprep.subr.bf16.mxu0 %v5488_v21  ;;  %4064 = vmatprep.subr.bf16.mxu1 %v5490_v22  ;;  %v991_v16 = vld [vmem:[#allocation8 + $0x860] sm:$0xff]  ;;  %v988_v21 = vld [vmem:[#allocation8 + $0x848] sm:$0xff]  ;;  %v6458_v33 = vmax.bf16 %v6267_v0, %v712_v23 }
 0x1a9   :  { %v992_v22 = vld [vmem:[#allocation8 + $0x868] sm:$0xff]  ;;  %v5536_v27 = vcombine.high %v987_v15, %v991_v16  ;;  %v5535_v34 = vcombine.low %v987_v15, %v991_v16  ;;  %v1035_v16 = vld [vmem:[#allocation8 + $0x9c0] sm:$0xff] }
 0x1aa   :  { %v5537_v35 = vcombine.low %v988_v21, %v992_v22  ;;  %v1040_v23 = vld [vmem:[#allocation8 + $0x9e8] sm:$0xff] }
 0x1ab   :  { %3901 = vmatpush1.bf16.msra.mxu0 %v5487_v28  ;;  %4065 = vmatpush1.bf16.msra.mxu1 %v5489_v29  ;;  %v5538_v28 = vcombine.high %v988_v21, %v992_v22  ;;  %v995_v29 = vld [vmem:[#allocation8 + $0x880] sm:$0xff]  ;;  %v1036_v22 = vld [vmem:[#allocation8 + $0x9c8] sm:$0xff] }
 0x1ac   :  { %3902 = vmatprep.subr.bf16.mxu0 %v5496_v30  ;;  %4066 = vmatprep.subr.bf16.mxu1 %v5498_v31  ;;  %v999_v30 = vld [vmem:[#allocation8 + $0x8a0] sm:$0xff]  ;;  %v996_v31 = vld [vmem:[#allocation8 + $0x888] sm:$0xff] }
 0x1ad   :  { %v5543_v47 = vcombine.low %v995_v29, %v999_v30  ;;  %v5545_v48 = vcombine.low %v996_v31, %v1000_v32  ;;  %v1039_v21 = vld [vmem:[#allocation8 + $0x9e0] sm:$0xff] }
 0x1af   :  { %3903 = vmatpush1.bf16.msra.mxu0 %v5495_v40  ;;  %4067 = vmatpush1.bf16.msra.mxu1 %v5497_v41  ;;  %v5544_v40 = vcombine.high %v995_v29, %v999_v30  ;;  %v5546_v41 = vcombine.high %v996_v31, %v1000_v32  ;;  %v1043_v29 = vld [vmem:[#allocation8 + $0xa00] sm:$0xff]  ;;  %v1044_v31 = vld [vmem:[#allocation8 + $0xa08] sm:$0xff] }
 0x1b0   :  { %3904 = vmatprep.subr.bf16.mxu0 %v5504_v42  ;;  %4068 = vmatprep.subr.bf16.mxu1 %v5506_v6  ;;  %v1003_v42 = vld [vmem:[#allocation8 + $0x8c0] sm:$0xff]  ;;  %v1048_v32 = vld [vmem:[#allocation8 + $0xa28] sm:$0xff] }
 0x1b1   :  { %v1007_v6 = vld [vmem:[#allocation8 + $0x8e0] sm:$0xff] }
 0x1b2   :  { %v5552_v50 = vcombine.high %v1003_v42, %v1007_v6  ;;  %v5551_v56 = vcombine.low %v1003_v42, %v1007_v6  ;;  %v1047_v30 = vld [vmem:[#allocation8 + $0xa20] sm:$0xff] }
 0x1b3   :  { %3905 = vmatpush1.bf16.msra.mxu0 %v5503_v51  ;;  %4069 = vmatpush1.bf16.msra.mxu1 %v5505_v52  ;;  %v5554_v51 = vcombine.high %v1004_v43, %v1008_v46  ;;  %v1011_v52 = vld [vmem:[#allocation8 + $0x900] sm:$0xff]  ;;  %v1052_v43 = vld [vmem:[#allocation8 + $0xa48] sm:$0xff] }
 0x1b4   :  { %3906 = vmatprep.subr.bf16.mxu0 %v5512_v53  ;;  %4070 = vmatprep.subr.bf16.mxu1 %v5514_v54  ;;  %v1015_v53 = vld [vmem:[#allocation8 + $0x920] sm:$0xff]  ;;  %v1012_v54 = vld [vmem:[#allocation8 + $0x908] sm:$0xff] }
 0x1b5   :  { %v5560_v60 = vcombine.high %v1011_v52, %v1015_v53  ;;  %v5562_v61 = vcombine.high %v1012_v54, %v1016_v55  ;;  %v5561_v5 = vcombine.low %v1012_v54, %v1016_v55  ;;  %v1051_v42 = vld [vmem:[#allocation8 + $0xa40] sm:$0xff]  ;;  %v1056_v46 = vld [vmem:[#allocation8 + $0xa68] sm:$0xff] }
 0x1b6   :  { %v1055_v6 = vld [vmem:[#allocation8 + $0xa60] sm:$0xff]  ;;  %v1060_v54 = vld [vmem:[#allocation8 + $0xa88] sm:$0xff] }
 0x1b7   :  { %3907 = vmatpush1.bf16.msra.mxu0 %v5511_v1  ;;  %4071 = vmatpush1.bf16.msra.mxu1 %v5513_v2  ;;  %v1023_v1 = vld [vmem:[#allocation8 + $0x960] sm:$0xff]  ;;  %v1020_v2 = vld [vmem:[#allocation8 + $0x948] sm:$0xff] }
 0x1b8   :  { %3908 = vmatprep.subr.bf16.mxu0 %v5520_v3  ;;  %4072 = vmatprep.subr.bf16.mxu1 %v5522_v4  ;;  %v1024_v3 = vld [vmem:[#allocation8 + $0x968] sm:$0xff]  ;;  %v5559_v4 = vcombine.low %v1011_v52, %v1015_v53  ;;  %v5568_v7 = vcombine.high %v1019_v62, %v1023_v1  ;;  %v1059_v52 = vld [vmem:[#allocation8 + $0xa80] sm:$0xff] }
 0x1b9   :  { %v5570_v8 = vcombine.high %v1020_v2, %v1024_v3  ;;  %v1063_v53 = vld [vmem:[#allocation8 + $0xaa0] sm:$0xff]  ;;  %v1064_v55 = vld [vmem:[#allocation8 + $0xaa8] sm:$0xff] }
 0x1bb   :  { %3909 = vmatpush1.bf16.msra.mxu0 %v5519_v12  ;;  %4073 = vmatpush1.bf16.msra.mxu1 %v5521_v13  ;;  %v1032_v12 = vld [vmem:[#allocation8 + $0x9a8] sm:$0xff]  ;;  %v5567_v13 = vcombine.low %v1019_v62, %v1023_v1  ;;  %v1067_v62 = vld [vmem:[#allocation8 + $0xac0] sm:$0xff] }
 0x1bc   :  { %3919 = vmatprep.subr.bf16.mxu0 %v5528_v38  ;;  %4083 = vmatprep.subr.bf16.mxu1 %v5530_v14  ;;  %v5569_v38 = vcombine.low %v1020_v2, %v1024_v3  ;;  %v5576_v14 = vcombine.high %v1027_v9, %v1031_v10  ;;  %v5578_v15 = vcombine.high %v1028_v11, %v1032_v12  ;;  %v1071_v1 = vld [vmem:[#allocation8 + $0xae0] sm:$0xff]  ;;  %v1068_v2 = vld [vmem:[#allocation8 + $0xac8] sm:$0xff] }
 0x1bd   :  { %v1072_v3 = vld [vmem:[#allocation8 + $0xae8] sm:$0xff] }
 0x1be   :  { %3911 = vmatmul.mubr.bf16.vlgmr.msra.gmra.mrb[8].mxu0 %v6455_v25  ;;  %4075 = vmatmul.mubr.bf16.vlgmr.msra.gmra.mrb[8].mxu1 %v6455_v25 }
 0x1bf   :  { %3920 = vmatpush1.bf16.msra.mxu0 %v5527_v45  ;;  %4084 = vmatpush1.bf16.msra.mxu1 %v5529_v26  ;;  %v5575_v45 = vcombine.low %v1027_v9, %v1031_v10  ;;  %v5577_v26 = vcombine.low %v1028_v11, %v1032_v12  ;;  %v1075_v9 = vld [vmem:[#allocation8 + $0xb00] sm:$0xff]  ;;  %v1076_v11 = vld [vmem:[#allocation8 + $0xb08] sm:$0xff] }
 0x1c0   :  { %3921 = vmatprep.subr.bf16.mxu0 %v5536_v27  ;;  %4085 = vmatprep.subr.bf16.mxu1 %v5538_v28  ;;  %v5584_v27 = vcombine.high %v1035_v16, %v1039_v21  ;;  %v5586_v28 = vcombine.high %v1036_v22, %v1040_v23  ;;  %v1079_v10 = vld [vmem:[#allocation8 + $0xb20] sm:$0xff]  ;;  %v1080_v12 = vld [vmem:[#allocation8 + $0xb28] sm:$0xff] }
 0x1c1   :  { %3951 = vmatprep.mubr.bf16.mxu0 %v6458_v33  ;;  %4115 = vmatprep.mubr.bf16.mxu1 %v6458_v33 }
 0x1c3   :  { %3922 = vmatpush1.bf16.msra.mxu0 %v5535_v34  ;;  %4086 = vmatpush1.bf16.msra.mxu1 %v5537_v35  ;;  %v5583_v34 = vcombine.low %v1035_v16, %v1039_v21  ;;  %v5585_v35 = vcombine.low %v1036_v22, %v1040_v23  ;;  %v1083_v16 = vld [vmem:[#allocation8 + $0xb40] sm:$0xff]  ;;  %v1084_v22 = vld [vmem:[#allocation8 + $0xb48] sm:$0xff] }
 0x1c4   :  { %3923 = vmatprep.subr.bf16.mxu0 %v5544_v40  ;;  %4087 = vmatprep.subr.bf16.mxu1 %v5546_v41  ;;  %v5592_v40 = vcombine.high %v1043_v29, %v1047_v30  ;;  %v5594_v41 = vcombine.high %v1044_v31, %v1048_v32  ;;  %v1087_v21 = vld [vmem:[#allocation8 + $0xb60] sm:$0xff]  ;;  %v1088_v23 = vld [vmem:[#allocation8 + $0xb68] sm:$0xff] }
 0x1c7   :  { %3924 = vmatpush1.bf16.msra.mxu0 %v5543_v47  ;;  %4088 = vmatpush1.bf16.msra.mxu1 %v5545_v48  ;;  %v5591_v47 = vcombine.low %v1043_v29, %v1047_v30  ;;  %v5593_v48 = vcombine.low %v1044_v31, %v1048_v32  ;;  %v5634_v29 = vcombine.high %v1084_v22, %v1088_v23  ;;  %v1091_v30 = vld [vmem:[#allocation8 + $0xb80] sm:$0xff]  ;;  %v1092_v32 = vld [vmem:[#allocation8 + $0xb88] sm:$0xff] }
 0x1c8   :  { %3925 = vmatprep.subr.bf16.mxu0 %v5552_v50  ;;  %4089 = vmatprep.subr.bf16.mxu1 %v5554_v51  ;;  %v5600_v50 = vcombine.high %v1051_v42, %v1055_v6  ;;  %v5602_v51 = vcombine.high %v1052_v43, %v1056_v46  ;;  %v1095_v31 = vld [vmem:[#allocation8 + $0xba0] sm:$0xff] }
 0x1cb   :  { %3926 = vmatpush1.bf16.msra.mxu0 %v5551_v56  ;;  %4090 = vmatpush1.bf16.msra.mxu1 %v5553_v57  ;;  %v5599_v56 = vcombine.low %v1051_v42, %v1055_v6  ;;  %v5601_v57 = vcombine.low %v1052_v43, %v1056_v46  ;;  %v5633_v42 = vcombine.low %v1084_v22, %v1088_v23  ;;  %v1099_v46 = vld [vmem:[#allocation8 + $0xbc0] sm:$0xff] }
 0x1cc   :  { %3927 = vmatprep.subr.bf16.mxu0 %v5560_v60  ;;  %4091 = vmatprep.subr.bf16.mxu1 %v5562_v61  ;;  %v5608_v60 = vcombine.high %v1059_v52, %v1063_v53  ;;  %v5610_v61 = vcombine.high %v1060_v54, %v1064_v55  ;;  %v5640_v6 = vcombine.high %v1091_v30, %v1095_v31 }
 0x1cf   :  { %3928 = vmatpush1.bf16.msra.mxu0 %v5559_v4  ;;  %4092 = vmatpush1.bf16.msra.mxu1 %v5561_v5  ;;  %v5607_v4 = vcombine.low %v1059_v52, %v1063_v53  ;;  %v5609_v5 = vcombine.low %v1060_v54, %v1064_v55  ;;  %v5639_v53 = vcombine.low %v1091_v30, %v1095_v31  ;;  %v1135_v30 = vld [vmem:[#allocation8 + $0xce0] sm:$0xff]  ;;  %v1132_v31 = vld [vmem:[#allocation8 + $0xcc8] sm:$0xff] }
 0x1d0   :  { %3929 = vmatprep.subr.bf16.mxu0 %v5568_v7  ;;  %4093 = vmatprep.subr.bf16.mxu1 %v5570_v8  ;;  %v5616_v7 = vcombine.high %v1067_v62, %v1071_v1  ;;  %v5618_v8 = vcombine.high %v1068_v2, %v1072_v3 }
 0x1d3   :  { %3930 = vmatpush1.bf16.msra.mxu0 %v5567_v13  ;;  %4094 = vmatpush1.bf16.msra.mxu1 %v5569_v38  ;;  %v5615_v13 = vcombine.low %v1067_v62, %v1071_v1  ;;  %v5617_v38 = vcombine.low %v1068_v2, %v1072_v3  ;;  %v1112_v62 = vld [vmem:[#allocation8 + $0xc28] sm:$0xff] }
 0x1d4   :  { %3931 = vmatprep.subr.bf16.mxu0 %v5576_v14  ;;  %4095 = vmatprep.subr.bf16.mxu1 %v5578_v15  ;;  %v5624_v14 = vcombine.high %v1075_v9, %v1079_v10  ;;  %v5626_v15 = vcombine.high %v1076_v11, %v1080_v12 }
 0x1d7   :  { %3932 = vmatpush1.bf16.msra.mxu0 %v5575_v45  ;;  %4096 = vmatpush1.bf16.msra.mxu1 %v5577_v26  ;;  %v201_v45 = vsub.s32 4, %v6403_v17  ;;  %v5623_v26 = vcombine.low %v1075_v9, %v1079_v10  ;;  %v1120_v9 = vld [vmem:[#allocation8 + $0xc68] sm:$0xff] }
 0x1d8   :  { %3933 = vmatprep.subr.bf16.mxu0 %v5584_v27  ;;  %4097 = vmatprep.subr.bf16.mxu1 %v5586_v28  ;;  %v5625_v27 = vcombine.low %v1076_v11, %v1080_v12  ;;  %v5632_v28 = vcombine.high %v1083_v16, %v1087_v21 }
 0x1db   :  { %3934 = vmatpush1.bf16.msra.mxu0 %v5583_v34  ;;  %4098 = vmatpush1.bf16.msra.mxu1 %v5585_v35  ;;  %v1096_v34 = vld [vmem:[#allocation8 + $0xba8] sm:$0xff]  ;;  %v213_v35 = vsub.s32 7, %v6403_v17 }
 0x1dc   :  { %3935 = vmatprep.subr.bf16.mxu0 %v5592_v40  ;;  %4099 = vmatprep.subr.bf16.mxu1 %v5594_v41  ;;  %v202_v40 = vrot.slane %v6406_v19, %v201_v45  ;;  %v5631_v41 = vcombine.low %v1083_v16, %v1087_v21  ;;  %v5642_v43 = vcombine.high %v1092_v32, %v1096_v34  ;;  %v1124_v16 = vld [vmem:[#allocation8 + $0xc88] sm:$0xff] }
 0x1dd   :  { %v5641_v54 = vcombine.low %v1092_v32, %v1096_v34  ;;  %v1128_v21 = vld [vmem:[#allocation8 + $0xca8] sm:$0xff] }
 0x1de   :  { %v660_v52 = vadd.f32 %v6436_v44, %v202_v40  ;;  %v1136_v32 = vld [vmem:[#allocation8 + $0xce8] sm:$0xff]  ;;  %v5673_v40 = vcombine.low %v1124_v16, %v1128_v21 }
 0x1df   :  { %3936 = vmatpush1.bf16.msra.mxu0 %v5591_v47  ;;  %4100 = vmatpush1.bf16.msra.mxu1 %v5593_v48  ;;  %v1103_v47 = vld [vmem:[#allocation8 + $0xbe0] sm:$0xff]  ;;  %v1100_v48 = vld [vmem:[#allocation8 + $0xbc8] sm:$0xff] }
 0x1e0   :  { %3937 = vmatprep.subr.bf16.mxu0 %v5600_v50  ;;  %4101 = vmatprep.subr.bf16.mxu1 %v5602_v51  ;;  %v1104_v50 = vld [vmem:[#allocation8 + $0xbe8] sm:$0xff]  ;;  %v214_v51 = vrot.slane %v6406_v19, %v213_v35  ;;  %v5648_v55 = vcombine.high %v1099_v46, %v1103_v47  ;;  %v711_v2 = vpack.c.bf16 %v660_v52, %v660_v52 }
 0x1e1   :  { %v5647_v19 = vcombine.low %v1099_v46, %v1103_v47  ;;  %v5649_v3 = vcombine.low %v1100_v48, %v1104_v50  ;;  %v1140_v46 = vld [vmem:[#allocation8 + $0xd08] sm:$0xff] }
 0x1e2   :  { %v703_v1 = vadd.f32 %v6442_v63, %v214_v51  ;;  %v6475_v11 = vmax.bf16 %v6267_v0, %v711_v2  ;;  %v1144_v47 = vld [vmem:[#allocation8 + $0xd28] sm:$0xff]  ;;  %v1159_v2 = vld [vmem:[#allocation8 + $0xda0] sm:$0xff] }
 0x1e3   :  { %3938 = vmatpush1.bf16.msra.mxu0 %v5599_v56  ;;  %4102 = vmatpush1.bf16.msra.mxu1 %v5601_v57  ;;  %v5650_v56 = vcombine.high %v1100_v48, %v1104_v50  ;;  %v1107_v57 = vld [vmem:[#allocation8 + $0xc00] sm:$0xff]  ;;  %v5681_v50 = vcombine.low %v1132_v31, %v1136_v32  ;;  %v5690_v52 = vcombine.high %v1140_v46, %v1144_v47 }
 0x1e4   :  { %3939 = vmatprep.subr.bf16.mxu0 %v5608_v60  ;;  %4103 = vmatprep.subr.bf16.mxu1 %v5610_v61  ;;  %v1111_v60 = vld [vmem:[#allocation8 + $0xc20] sm:$0xff]  ;;  %v1108_v61 = vld [vmem:[#allocation8 + $0xc08] sm:$0xff]  ;;  %v714_v10 = vpack.c.bf16 %v703_v1, %v703_v1 }
 0x1e5   :  { %v5656_v44 = vcombine.high %v1107_v57, %v1111_v60  ;;  %v5655_v63 = vcombine.low %v1107_v57, %v1111_v60  ;;  %v5657_v12 = vcombine.low %v1108_v61, %v1112_v62  ;;  %v5689_v60 = vcombine.low %v1140_v46, %v1144_v47  ;;  %v1155_v1 = vld [vmem:[#allocation8 + $0xd80] sm:$0xff]  ;;  %v1188_v47 = vld [vmem:[#allocation8 + $0xe88] sm:$0xff] }
 0x1e6   :  { %v6478_v22 = vmax.bf16 %v6267_v0, %v714_v10  ;;  %v1164_v10 = vld [vmem:[#allocation8 + $0xdc8] sm:$0xff]  ;;  %v1191_v46 = vld [vmem:[#allocation8 + $0xea0] sm:$0xff] }
 0x1e7   :  { %3940 = vmatpush1.bf16.msra.mxu0 %v5607_v4  ;;  %4104 = vmatpush1.bf16.msra.mxu1 %v5609_v5  ;;  %v5658_v4 = vcombine.high %v1108_v61, %v1112_v62  ;;  %v1115_v5 = vld [vmem:[#allocation8 + $0xc40] sm:$0xff] }
 0x1e8   :  { %3941 = vmatprep.subr.bf16.mxu0 %v5616_v7  ;;  %4105 = vmatprep.subr.bf16.mxu1 %v5618_v8  ;;  %v1119_v7 = vld [vmem:[#allocation8 + $0xc60] sm:$0xff]  ;;  %v1116_v8 = vld [vmem:[#allocation8 + $0xc48] sm:$0xff] }
 0x1e9   :  { %v5663_v23 = vcombine.low %v1115_v5, %v1119_v7 }
 0x1eb   :  { %3942 = vmatpush1.bf16.msra.mxu0 %v5615_v13  ;;  %4106 = vmatpush1.bf16.msra.mxu1 %v5617_v38  ;;  %v5664_v13 = vcombine.high %v1115_v5, %v1119_v7  ;;  %v5666_v38 = vcombine.high %v1116_v8, %v1120_v9  ;;  %v5704_v5 = vcombine.high %v1155_v1, %v1159_v2 }
 0x1ec   :  { %3943 = vmatprep.subr.bf16.mxu0 %v5624_v14  ;;  %4107 = vmatprep.subr.bf16.mxu1 %v5626_v15  ;;  %v1123_v14 = vld [vmem:[#allocation8 + $0xc80] sm:$0xff] }
 0x1ed   :  { %v1127_v15 = vld [vmem:[#allocation8 + $0xca0] sm:$0xff] }
 0x1ee   :  { %v5671_v34 = vcombine.low %v1123_v14, %v1127_v15 }
 0x1ef   :  { %3944 = vmatpush1.bf16.msra.mxu0 %v5623_v26  ;;  %4108 = vmatpush1.bf16.msra.mxu1 %v5625_v27  ;;  %v5665_v26 = vcombine.low %v1116_v8, %v1120_v9  ;;  %v5672_v27 = vcombine.high %v1123_v14, %v1127_v15  ;;  %v1163_v8 = vld [vmem:[#allocation8 + $0xdc0] sm:$0xff] }
 0x1f0   :  { %3945 = vmatprep.subr.bf16.mxu0 %v5632_v28  ;;  %4109 = vmatprep.subr.bf16.mxu1 %v5634_v29  ;;  %v5674_v28 = vcombine.high %v1124_v16, %v1128_v21  ;;  %v1131_v29 = vld [vmem:[#allocation8 + $0xcc0] sm:$0xff]  ;;  %v1172_v21 = vld [vmem:[#allocation8 + $0xe08] sm:$0xff] }
 0x1f1   :  { %v5679_v48 = vcombine.low %v1131_v29, %v1135_v30  ;;  %v1167_v9 = vld [vmem:[#allocation8 + $0xde0] sm:$0xff] }
 0x1f2   :  { %v1171_v15 = vld [vmem:[#allocation8 + $0xe00] sm:$0xff] }
 0x1f3   :  { %3946 = vmatpush1.bf16.msra.mxu0 %v5631_v41  ;;  %4110 = vmatpush1.bf16.msra.mxu1 %v5633_v42  ;;  %v5680_v41 = vcombine.high %v1131_v29, %v1135_v30  ;;  %v5682_v42 = vcombine.high %v1132_v31, %v1136_v32  ;;  %v1175_v16 = vld [vmem:[#allocation8 + $0xe20] sm:$0xff]  ;;  %v1180_v32 = vld [vmem:[#allocation8 + $0xe48] sm:$0xff] }
 0x1f4   :  { %3947 = vmatprep.subr.bf16.mxu0 %v5640_v6  ;;  %4111 = vmatprep.subr.bf16.mxu1 %v5642_v43  ;;  %v1139_v6 = vld [vmem:[#allocation8 + $0xd00] sm:$0xff] }
 0x1f5   :  { %v1143_v43 = vld [vmem:[#allocation8 + $0xd20] sm:$0xff] }
 0x1f6   :  { %v5688_v51 = vcombine.high %v1139_v6, %v1143_v43  ;;  %v5687_v57 = vcombine.low %v1139_v6, %v1143_v43  ;;  %v1179_v30 = vld [vmem:[#allocation8 + $0xe40] sm:$0xff] }
 0x1f7   :  { %3948 = vmatpush1.bf16.msra.mxu0 %v5639_v53  ;;  %4112 = vmatpush1.bf16.msra.mxu1 %v5641_v54  ;;  %v1147_v53 = vld [vmem:[#allocation8 + $0xd40] sm:$0xff] }
 0x1f8   :  { %3949 = vmatprep.subr.bf16.mxu0 %v5648_v55  ;;  %4113 = vmatprep.subr.bf16.mxu1 %v5650_v56  ;;  %v1151_v54 = vld [vmem:[#allocation8 + $0xd60] sm:$0xff]  ;;  %v1148_v55 = vld [vmem:[#allocation8 + $0xd48] sm:$0xff] }
 0x1f9   :  { %v1152_v56 = vld [vmem:[#allocation8 + $0xd68] sm:$0xff]  ;;  %v5696_v61 = vcombine.high %v1147_v53, %v1151_v54  ;;  %v1183_v31 = vld [vmem:[#allocation8 + $0xe60] sm:$0xff] }
 0x1fa   :  { %v5698_v62 = vcombine.high %v1148_v55, %v1152_v56  ;;  %v1187_v43 = vld [vmem:[#allocation8 + $0xe80] sm:$0xff] }
 0x1fb   :  { %3950 = vmatpush1.bf16.msra.mxu0 %v5647_v19  ;;  %4114 = vmatpush1.bf16.msra.mxu1 %v5649_v3  ;;  %v1156_v19 = vld [vmem:[#allocation8 + $0xd88] sm:$0xff] }
 0x1fc   :  { %3960 = vmatprep.subr.bf16.mxu0 %v5656_v44  ;;  %4124 = vmatprep.subr.bf16.mxu1 %v5658_v4  ;;  %v1160_v3 = vld [vmem:[#allocation8 + $0xda8] sm:$0xff]  ;;  %v5695_v44 = vcombine.low %v1147_v53, %v1151_v54  ;;  %v5697_v4 = vcombine.low %v1148_v55, %v1152_v56  ;;  %v1195_v54 = vld [vmem:[#allocation8 + $0xec0] sm:$0xff] }
 0x1fd   :  { %v5706_v7 = vcombine.high %v1156_v19, %v1160_v3  ;;  %v1199_v55 = vld [vmem:[#allocation8 + $0xee0] sm:$0xff]  ;;  %v1196_v56 = vld [vmem:[#allocation8 + $0xec8] sm:$0xff] }
 0x1fe   :  { %3952 = vmatmul.mubr.bf16.vlgmr.msra.gmra.mrb[8].mxu0 %v6475_v11  ;;  %4116 = vmatmul.mubr.bf16.vlgmr.msra.gmra.mrb[8].mxu1 %v6475_v11 }
 0x1ff   :  { %3961 = vmatpush1.bf16.msra.mxu0 %v5655_v63  ;;  %4125 = vmatpush1.bf16.msra.mxu1 %v5657_v12  ;;  %v1168_v63 = vld [vmem:[#allocation8 + $0xde8] sm:$0xff]  ;;  %v5703_v12 = vcombine.low %v1155_v1, %v1159_v2  ;;  %v1203_v2 = vld [vmem:[#allocation8 + $0xf00] sm:$0xff] }
 0x200   :  { %3962 = vmatprep.subr.bf16.mxu0 %v5664_v13  ;;  %4126 = vmatprep.subr.bf16.mxu1 %v5666_v38  ;;  %v5705_v13 = vcombine.low %v1156_v19, %v1160_v3  ;;  %v5712_v38 = vcombine.high %v1163_v8, %v1167_v9  ;;  %v5714_v14 = vcombine.high %v1164_v10, %v1168_v63  ;;  %v1207_v19 = vld [vmem:[#allocation8 + $0xf20] sm:$0xff]  ;;  %v1204_v3 = vld [vmem:[#allocation8 + $0xf08] sm:$0xff] }
 0x201   :  { %3992 = vmatprep.mubr.bf16.mxu0 %v6478_v22  ;;  %4156 = vmatprep.mubr.bf16.mxu1 %v6478_v22 }
 0x203   :  { %3963 = vmatpush1.bf16.msra.mxu0 %v5663_v23  ;;  %4127 = vmatpush1.bf16.msra.mxu1 %v5665_v26  ;;  %v1176_v23 = vld [vmem:[#allocation8 + $0xe28] sm:$0xff]  ;;  %v5711_v26 = vcombine.low %v1163_v8, %v1167_v9  ;;  %v1211_v9 = vld [vmem:[#allocation8 + $0xf40] sm:$0xff] }
 0x204   :  { %3964 = vmatprep.subr.bf16.mxu0 %v5672_v27  ;;  %4128 = vmatprep.subr.bf16.mxu1 %v5674_v28  ;;  %v5713_v27 = vcombine.low %v1164_v10, %v1168_v63  ;;  %v5720_v28 = vcombine.high %v1171_v15, %v1175_v16  ;;  %v5722_v29 = vcombine.high %v1172_v21, %v1176_v23  ;;  %v1215_v10 = vld [vmem:[#allocation8 + $0xf60] sm:$0xff]  ;;  %v1212_v63 = vld [vmem:[#allocation8 + $0xf48] sm:$0xff] }
 0x207   :  { %3965 = vmatpush1.bf16.msra.mxu0 %v5671_v34  ;;  %4129 = vmatpush1.bf16.msra.mxu1 %v5673_v40  ;;  %v1184_v34 = vld [vmem:[#allocation8 + $0xe68] sm:$0xff]  ;;  %v5719_v40 = vcombine.low %v1171_v15, %v1175_v16  ;;  %v5760_v15 = vcombine.high %v1211_v9, %v1215_v10 }
 0x208   :  { %3966 = vmatprep.subr.bf16.mxu0 %v5680_v41  ;;  %4130 = vmatprep.subr.bf16.mxu1 %v5682_v42  ;;  %v5721_v41 = vcombine.low %v1172_v21, %v1176_v23  ;;  %v5728_v42 = vcombine.high %v1179_v30, %v1183_v31  ;;  %v5730_v6 = vcombine.high %v1180_v32, %v1184_v34  ;;  %v1219_v21 = vld [vmem:[#allocation8 + $0xf80] sm:$0xff] }
 0x209   :  { %v1223_v23 = vld [vmem:[#allocation8 + $0xfa0] sm:$0xff] }
 0x20b   :  { %3967 = vmatpush1.bf16.msra.mxu0 %v5679_v48  ;;  %4131 = vmatpush1.bf16.msra.mxu1 %v5681_v50  ;;  %v1192_v48 = vld [vmem:[#allocation8 + $0xea8] sm:$0xff]  ;;  %v5727_v50 = vcombine.low %v1179_v30, %v1183_v31  ;;  %v6069_v30 = vld [vmem:[#allocation7] sm:$0xff] }
 0x20c   :  { %3968 = vmatprep.subr.bf16.mxu0 %v5688_v51  ;;  %4132 = vmatprep.subr.bf16.mxu1 %v5690_v52  ;;  %v5729_v51 = vcombine.low %v1180_v32, %v1184_v34  ;;  %v5736_v52 = vcombine.high %v1187_v43, %v1191_v46  ;;  %v5738_v53 = vcombine.high %v1188_v47, %v1192_v48 }
 0x20d   :  { %v5768_v32 = vcombine.high %v1219_v21, %v1223_v23 }
 0x20f   :  { %3969 = vmatpush1.bf16.msra.mxu0 %v5687_v57  ;;  %4133 = vmatpush1.bf16.msra.mxu1 %v5689_v60  ;;  %v1200_v57 = vld [vmem:[#allocation8 + $0xee8] sm:$0xff]  ;;  %v5735_v60 = vcombine.low %v1187_v43, %v1191_v46  ;;  %v5767_v43 = vcombine.low %v1219_v21, %v1223_v23  ;;  %v750_v21 = vld [vmem:[#allocation8 + $0xd8] sm:$0xff] }
 0x210   :  { %3970 = vmatprep.subr.bf16.mxu0 %v5696_v61  ;;  %4134 = vmatprep.subr.bf16.mxu1 %v5698_v62  ;;  %v5737_v61 = vcombine.low %v1188_v47, %v1192_v48  ;;  %v5744_v62 = vcombine.high %v1195_v54, %v1199_v55  ;;  %v5746_v1 = vcombine.high %v1196_v56, %v1200_v57  ;;  %v754_v23 = vld [vmem:[#allocation8 + $0xf8] sm:$0xff] }
 0x213   :  { %3971 = vmatpush1.bf16.msra.mxu0 %v5695_v44  ;;  %4135 = vmatpush1.bf16.msra.mxu1 %v5697_v4  ;;  %v1208_v44 = vld [vmem:[#allocation8 + $0xf28] sm:$0xff]  ;;  %v5743_v4 = vcombine.low %v1195_v54, %v1199_v55  ;;  %v730_v54 = vld [vmem:[#allocation8 + $0x38] sm:$0xff] }
 0x214   :  { %3972 = vmatprep.subr.bf16.mxu0 %v5704_v5  ;;  %4136 = vmatprep.subr.bf16.mxu1 %v5706_v7  ;;  %v5745_v5 = vcombine.low %v1196_v56, %v1200_v57  ;;  %v5752_v7 = vcombine.high %v1203_v2, %v1207_v19  ;;  %v5754_v8 = vcombine.high %v1204_v3, %v1208_v44 }
 0x217   :  { %3973 = vmatpush1.bf16.msra.mxu0 %v5703_v12  ;;  %4137 = vmatpush1.bf16.msra.mxu1 %v5705_v13  ;;  %v1216_v12 = vld [vmem:[#allocation8 + $0xf68] sm:$0xff]  ;;  %v5751_v13 = vcombine.low %v1203_v2, %v1207_v19  ;;  %v738_v2 = vld [vmem:[#allocation8 + $0x78] sm:$0xff] }
 0x218   :  { %3974 = vmatprep.subr.bf16.mxu0 %v5712_v38  ;;  %4138 = vmatprep.subr.bf16.mxu1 %v5714_v14  ;;  %v5753_v38 = vcombine.low %v1204_v3, %v1208_v44  ;;  %v209_v14 = vsub.s32 6, %v6403_v17  ;;  %v5762_v16 = vcombine.high %v1212_v63, %v1216_v12 }
 0x21a   :  { %v210_v31 = vrot.slane %v6069_v30, %v209_v14  ;;  %v757_v30 = vld [vmem:[#allocation8 + $0x110] sm:$0xff] }
 0x21b   :  { %3975 = vmatpush1.bf16.msra.mxu0 %v5711_v26  ;;  %4139 = vmatpush1.bf16.msra.mxu1 %v5713_v27  ;;  %v1220_v26 = vld [vmem:[#allocation8 + $0xf88] sm:$0xff] }
 0x21c   :  { %3976 = vmatprep.subr.bf16.mxu0 %v5720_v28  ;;  %4140 = vmatprep.subr.bf16.mxu1 %v5722_v29  ;;  %v1224_v27 = vld [vmem:[#allocation8 + $0xfa8] sm:$0xff]  ;;  %v5759_v28 = vcombine.low %v1211_v9, %v1215_v10  ;;  %v5761_v29 = vcombine.low %v1212_v63, %v1216_v12  ;;  %v701_v47 = vadd.f32 %v6440_v59, %v210_v31  ;;  %v734_v59 = vld [vmem:[#allocation8 + $0x58] sm:$0xff]  ;;  %v761_v31 = vld [vmem:[#allocation8 + $0x130] sm:$0xff] }
 0x21d   :  { %v5770_v34 = vcombine.high %v1220_v26, %v1224_v27  ;;  %v5769_v46 = vcombine.low %v1220_v26, %v1224_v27  ;;  %v742_v9 = vld [vmem:[#allocation8 + $0x98] sm:$0xff]  ;;  %v5285_v12 = vcombine.low %v734_v59, %v738_v2 }
 0x21e   :  { %v713_v57 = vpack.c.bf16 %v701_v47, %v701_v47  ;;  %v746_v10 = vld [vmem:[#allocation8 + $0xb8] sm:$0xff] }
 0x21f   :  { %3977 = vmatpush1.bf16.msra.mxu0 %v5719_v40  ;;  %4141 = vmatpush1.bf16.msra.mxu1 %v5721_v41  ;;  %v1227_v40 = vld [vmem:[#allocation8 + $0xfc0] sm:$0xff]  ;;  %v5293_v27 = vcombine.low %v742_v9, %v746_v10  ;;  %v770_v47 = vld [vmem:[#allocation8 + $0x178] sm:$0xff] }
 0x220   :  { %3978 = vmatprep.subr.bf16.mxu0 %v5728_v42  ;;  %4142 = vmatprep.subr.bf16.mxu1 %v5730_v6  ;;  %v1231_v41 = vld [vmem:[#allocation8 + $0xfe0] sm:$0xff]  ;;  %v1228_v42 = vld [vmem:[#allocation8 + $0xfc8] sm:$0xff]  ;;  %v6489_v3 = vmax.bf16 %v6267_v0, %v713_v57 }
 0x221   :  { %v1232_v6 = vld [vmem:[#allocation8 + $0xfe8] sm:$0xff]  ;;  %v5776_v48 = vcombine.high %v1227_v40, %v1231_v41  ;;  %v5775_v55 = vcombine.low %v1227_v40, %v1231_v41  ;;  %v5301_v40 = vcombine.low %v750_v21, %v754_v23  ;;  %v5308_v41 = vcombine.high %v757_v30, %v761_v31 }
 0x222   :  { %v5777_v56 = vcombine.low %v1228_v42, %v1232_v6 }
 0x223   :  { %3979 = vmatpush1.bf16.msra.mxu0 %v5727_v50  ;;  %4143 = vmatpush1.bf16.msra.mxu1 %v5729_v51  ;;  %v5778_v50 = vcombine.high %v1228_v42, %v1232_v6  ;;  %v725_v51 = vld [vmem:[#allocation8 + $0x10] sm:$0xff] }
 0x224   :  { %3980 = vmatprep.subr.bf16.mxu0 %v5736_v52  ;;  %4144 = vmatprep.subr.bf16.mxu1 %v5738_v53  ;;  %v729_v52 = vld [vmem:[#allocation8 + $0x30] sm:$0xff]  ;;  %v726_v53 = vld [vmem:[#allocation8 + $0x18] sm:$0xff] }
 0x225   :  { %v5275_v19 = vcombine.low %v725_v51, %v729_v52  ;;  %v5277_v44 = vcombine.low %v726_v53, %v730_v54  ;;  %v765_v6 = vld [vmem:[#allocation8 + $0x150] sm:$0xff] }
 0x227   :  { %3981 = vmatpush1.bf16.msra.mxu0 %v5735_v60  ;;  %4145 = vmatpush1.bf16.msra.mxu1 %v5737_v61  ;;  %v5276_v60 = vcombine.high %v725_v51, %v729_v52  ;;  %v5278_v61 = vcombine.high %v726_v53, %v730_v54  ;;  %v773_v53 = vld [vmem:[#allocation8 + $0x190] sm:$0xff] }
 0x228   :  { %3982 = vmatprep.subr.bf16.mxu0 %v5744_v62  ;;  %4146 = vmatprep.subr.bf16.mxu1 %v5746_v1  ;;  %v733_v62 = vld [vmem:[#allocation8 + $0x50] sm:$0xff] }
 0x229   :  { %v737_v1 = vld [vmem:[#allocation8 + $0x70] sm:$0xff] }
 0x22a   :  { %v5283_v63 = vcombine.low %v733_v62, %v737_v1  ;;  %v777_v54 = vld [vmem:[#allocation8 + $0x1b0] sm:$0xff] }
 0x22b   :  { %3983 = vmatpush1.bf16.msra.mxu0 %v5743_v4  ;;  %4147 = vmatpush1.bf16.msra.mxu1 %v5745_v5  ;;  %v5284_v4 = vcombine.high %v733_v62, %v737_v1  ;;  %v5286_v5 = vcombine.high %v734_v59, %v738_v2  ;;  %v781_v1 = vld [vmem:[#allocation8 + $0x1d0] sm:$0xff]  ;;  %v782_v2 = vld [vmem:[#allocation8 + $0x1d8] sm:$0xff] }
 0x22c   :  { %3984 = vmatprep.subr.bf16.mxu0 %v5752_v7  ;;  %4148 = vmatprep.subr.bf16.mxu1 %v5754_v8  ;;  %v741_v7 = vld [vmem:[#allocation8 + $0x90] sm:$0xff] }
 0x22d   :  { %v745_v8 = vld [vmem:[#allocation8 + $0xb0] sm:$0xff] }
 0x22e   :  { %v5291_v26 = vcombine.low %v741_v7, %v745_v8  ;;  %v785_v59 = vld [vmem:[#allocation8 + $0x1f0] sm:$0xff] }
 0x22f   :  { %3985 = vmatpush1.bf16.msra.mxu0 %v5751_v13  ;;  %4149 = vmatpush1.bf16.msra.mxu1 %v5753_v38  ;;  %v5292_v13 = vcombine.high %v741_v7, %v745_v8  ;;  %v5294_v38 = vcombine.high %v742_v9, %v746_v10  ;;  %v789_v8 = vld [vmem:[#allocation8 + $0x210] sm:$0xff]  ;;  %v790_v10 = vld [vmem:[#allocation8 + $0x218] sm:$0xff] }
 0x230   :  { %3986 = vmatprep.subr.bf16.mxu0 %v5760_v15  ;;  %4150 = vmatprep.subr.bf16.mxu1 %v5762_v16  ;;  %v749_v15 = vld [vmem:[#allocation8 + $0xd0] sm:$0xff] }
 0x231   :  { %v753_v16 = vld [vmem:[#allocation8 + $0xf0] sm:$0xff] }
 0x232   :  { %v793_v9 = vld [vmem:[#allocation8 + $0x230] sm:$0xff] }
 0x233   :  { %3987 = vmatpush1.bf16.msra.mxu0 %v5759_v28  ;;  %4151 = vmatpush1.bf16.msra.mxu1 %v5761_v29  ;;  %v5300_v28 = vcombine.high %v749_v15, %v753_v16  ;;  %v5302_v29 = vcombine.high %v750_v21, %v754_v23  ;;  %v801_v21 = vld [vmem:[#allocation8 + $0x270] sm:$0xff]  ;;  %v798_v23 = vld [vmem:[#allocation8 + $0x258] sm:$0xff] }
 0x234   :  { %3988 = vmatprep.subr.bf16.mxu0 %v5768_v32  ;;  %4152 = vmatprep.subr.bf16.mxu1 %v5770_v34  ;;  %v762_v32 = vld [vmem:[#allocation8 + $0x138] sm:$0xff]  ;;  %v5299_v34 = vcombine.low %v749_v15, %v753_v16  ;;  %v797_v16 = vld [vmem:[#allocation8 + $0x250] sm:$0xff] }
 0x237   :  { %3989 = vmatpush1.bf16.msra.mxu0 %v5767_v43  ;;  %4153 = vmatpush1.bf16.msra.mxu1 %v5769_v46  ;;  %v769_v43 = vld [vmem:[#allocation8 + $0x170] sm:$0xff]  ;;  %v766_v46 = vld [vmem:[#allocation8 + $0x158] sm:$0xff] }
 0x238   :  { %3990 = vmatprep.subr.bf16.mxu0 %v5776_v48  ;;  %4154 = vmatprep.subr.bf16.mxu1 %v5778_v50  ;;  %v5307_v48 = vcombine.low %v757_v30, %v761_v31  ;;  %v5316_v51 = vcombine.high %v765_v6, %v769_v43  ;;  %v5318_v52 = vcombine.high %v766_v46, %v770_v47  ;;  %v805_v31 = vld [vmem:[#allocation8 + $0x290] sm:$0xff] }
 0x239   :  { %v5315_v57 = vcombine.low %v765_v6, %v769_v43  ;;  %v813_v43 = vld [vmem:[#allocation8 + $0x2d0] sm:$0xff] }
 0x23b   :  { %3991 = vmatpush1.bf16.msra.mxu0 %v5775_v55  ;;  %4155 = vmatpush1.bf16.msra.mxu1 %v5777_v56  ;;  %v774_v55 = vld [vmem:[#allocation8 + $0x198] sm:$0xff] }
 0x23c   :  { %4165 = vmatprep.subr.bf16.mxu0 %v5276_v60  ;;  %4329 = vmatprep.subr.bf16.mxu1 %v5278_v61  ;;  %v778_v56 = vld [vmem:[#allocation8 + $0x1b8] sm:$0xff]  ;;  %v5317_v60 = vcombine.low %v766_v46, %v770_v47  ;;  %v5324_v61 = vcombine.high %v773_v53, %v777_v54  ;;  %v817_v46 = vld [vmem:[#allocation8 + $0x2f0] sm:$0xff] }
 0x23d   :  { %v5326_v62 = vcombine.high %v774_v55, %v778_v56  ;;  %v814_v47 = vld [vmem:[#allocation8 + $0x2d8] sm:$0xff] }
 0x23e   :  { %3993 = vmatmul.mubr.bf16.vlgmr.msra.gmra.mrb[8].mxu0 %v6489_v3  ;;  %4157 = vmatmul.mubr.bf16.vlgmr.msra.gmra.mrb[8].mxu1 %v6489_v3 }
 0x23f   :  { %4166 = vmatpush1.bf16.msra.mxu0 %v5275_v19  ;;  %4197 = vmatprep.mubr.bf16.mxu0 %v6420_v37  ;;  %v786_v19 = vld [vmem:[#allocation8 + $0x1f8] sm:$0xff] }
 0x240   :  { %4330 = vmatpush1.bf16.msra.mxu1 %v5277_v44  ;;  %4361 = vmatprep.mubr.bf16.mxu1 %v6420_v37  ;;  %v758_v37 = vld [vmem:[#allocation8 + $0x118] sm:$0xff]  ;;  %v5323_v44 = vcombine.low %v773_v53, %v777_v54  ;;  %v5334_v7 = vcombine.high %v782_v2, %v786_v19  ;;  %v821_v54 = vld [vmem:[#allocation8 + $0x310] sm:$0xff] }
 0x241   :  { %4167 = vmatprep.subr.bf16.mxu0 %v5284_v4  ;;  %4331 = vmatprep.subr.bf16.mxu1 %v5286_v5  ;;  %v5310_v42 = vcombine.high %v758_v37, %v762_v32  ;;  %v5309_v50 = vcombine.low %v758_v37, %v762_v32  ;;  %v5325_v4 = vcombine.low %v774_v55, %v778_v56  ;;  %v809_v37 = vld [vmem:[#allocation8 + $0x2b0] sm:$0xff]  ;;  %v806_v32 = vld [vmem:[#allocation8 + $0x298] sm:$0xff] }
 0x242   :  { %v5332_v5 = vcombine.high %v781_v1, %v785_v59  ;;  %v825_v55 = vld [vmem:[#allocation8 + $0x330] sm:$0xff]  ;;  %v822_v56 = vld [vmem:[#allocation8 + $0x318] sm:$0xff] }
 0x243   :  { %4168 = vmatpush1.bf16.msra.mxu0 %v5283_v63  ;;  %v794_v63 = vld [vmem:[#allocation8 + $0x238] sm:$0xff] }
 0x244   :  { %4332 = vmatpush1.bf16.msra.mxu1 %v5285_v12  ;;  %4169 = vmatprep.subr.bf16.mxu0 %v5292_v13  ;;  %v5331_v12 = vcombine.low %v781_v1, %v785_v59  ;;  %v5333_v13 = vcombine.low %v782_v2, %v786_v19  ;;  %v5342_v15 = vcombine.high %v790_v10, %v794_v63  ;;  %v829_v59 = vld [vmem:[#allocation8 + $0x350] sm:$0xff]  ;;  %v830_v19 = vld [vmem:[#allocation8 + $0x358] sm:$0xff] }
 0x245   :  { %4333 = vmatprep.subr.bf16.mxu1 %v5294_v38  ;;  %v5340_v38 = vcombine.high %v789_v8, %v793_v9  ;;  %v833_v2 = vld [vmem:[#allocation8 + $0x370] sm:$0xff] }
 0x247   :  { %4170 = vmatpush1.bf16.msra.mxu0 %v5291_v26  ;;  %v802_v26 = vld [vmem:[#allocation8 + $0x278] sm:$0xff] }
 0x248   :  { %4334 = vmatpush1.bf16.msra.mxu1 %v5293_v27  ;;  %4171 = vmatprep.subr.bf16.mxu0 %v5300_v28  ;;  %v5339_v27 = vcombine.low %v789_v8, %v793_v9  ;;  %v5341_v28 = vcombine.low %v790_v10, %v794_v63  ;;  %v5350_v30 = vcombine.high %v798_v23, %v802_v26  ;;  %v837_v9 = vld [vmem:[#allocation8 + $0x390] sm:$0xff]  ;;  %v838_v63 = vld [vmem:[#allocation8 + $0x398] sm:$0xff] }
 0x249   :  { %4335 = vmatprep.subr.bf16.mxu1 %v5302_v29  ;;  %v5348_v29 = vcombine.high %v797_v16, %v801_v21  ;;  %v841_v10 = vld [vmem:[#allocation8 + $0x3b0] sm:$0xff] }
 0x24b   :  { %4172 = vmatpush1.bf16.msra.mxu0 %v5299_v34  ;;  %v810_v34 = vld [vmem:[#allocation8 + $0x2b8] sm:$0xff] }
 0x24c   :  { %4336 = vmatpush1.bf16.msra.mxu1 %v5301_v40  ;;  %4173 = vmatprep.subr.bf16.mxu0 %v5308_v41  ;;  %v5347_v40 = vcombine.low %v797_v16, %v801_v21  ;;  %v5349_v41 = vcombine.low %v798_v23, %v802_v26  ;;  %v5358_v6 = vcombine.high %v806_v32, %v810_v34  ;;  %v845_v21 = vld [vmem:[#allocation8 + $0x3d0] sm:$0xff]  ;;  %v846_v26 = vld [vmem:[#allocation8 + $0x3d8] sm:$0xff] }
 0x24d   :  { %4337 = vmatprep.subr.bf16.mxu1 %v5310_v42  ;;  %v5356_v42 = vcombine.high %v805_v31, %v809_v37  ;;  %v849_v23 = vld [vmem:[#allocation8 + $0x3f0] sm:$0xff] }
 0x24f   :  { %4174 = vmatpush1.bf16.msra.mxu0 %v5307_v48  ;;  %v818_v48 = vld [vmem:[#allocation8 + $0x2f8] sm:$0xff] }
 0x250   :  { %4338 = vmatpush1.bf16.msra.mxu1 %v5309_v50  ;;  %4175 = vmatprep.subr.bf16.mxu0 %v5316_v51  ;;  %v5355_v50 = vcombine.low %v805_v31, %v809_v37  ;;  %v5357_v51 = vcombine.low %v806_v32, %v810_v34  ;;  %v5366_v53 = vcombine.high %v814_v47, %v818_v48  ;;  %v853_v37 = vld [vmem:[#allocation8 + $0x410] sm:$0xff]  ;;  %v854_v34 = vld [vmem:[#allocation8 + $0x418] sm:$0xff] }
 0x251   :  { %4339 = vmatprep.subr.bf16.mxu1 %v5318_v52  ;;  %v5364_v52 = vcombine.high %v813_v43, %v817_v46  ;;  %v857_v32 = vld [vmem:[#allocation8 + $0x430] sm:$0xff] }
 0x253   :  { %4176 = vmatpush1.bf16.msra.mxu0 %v5315_v57  ;;  %v826_v57 = vld [vmem:[#allocation8 + $0x338] sm:$0xff] }
 0x254   :  { %4340 = vmatpush1.bf16.msra.mxu1 %v5317_v60  ;;  %4177 = vmatprep.subr.bf16.mxu0 %v5324_v61  ;;  %v5363_v60 = vcombine.low %v813_v43, %v817_v46  ;;  %v5365_v61 = vcombine.low %v814_v47, %v818_v48  ;;  %v5374_v1 = vcombine.high %v822_v56, %v826_v57  ;;  %v861_v46 = vld [vmem:[#allocation8 + $0x450] sm:$0xff] }
 0x255   :  { %4341 = vmatprep.subr.bf16.mxu1 %v5326_v62  ;;  %v5372_v62 = vcombine.high %v821_v54, %v825_v55  ;;  %v865_v47 = vld [vmem:[#allocation8 + $0x470] sm:$0xff]  ;;  %v5403_v48 = vcombine.low %v853_v37, %v857_v32 }
 0x257   :  { %4178 = vmatpush1.bf16.msra.mxu0 %v5323_v44  ;;  %v834_v44 = vld [vmem:[#allocation8 + $0x378] sm:$0xff] }
 0x258   :  { %4342 = vmatpush1.bf16.msra.mxu1 %v5325_v4  ;;  %4179 = vmatprep.subr.bf16.mxu0 %v5332_v5  ;;  %v5371_v4 = vcombine.low %v821_v54, %v825_v55  ;;  %v5373_v5 = vcombine.low %v822_v56, %v826_v57  ;;  %v5382_v8 = vcombine.high %v830_v19, %v834_v44  ;;  %v869_v54 = vld [vmem:[#allocation8 + $0x490] sm:$0xff]  ;;  %v870_v57 = vld [vmem:[#allocation8 + $0x498] sm:$0xff] }
 0x259   :  { %4343 = vmatprep.subr.bf16.mxu1 %v5334_v7  ;;  %v5380_v7 = vcombine.high %v829_v59, %v833_v2  ;;  %v873_v55 = vld [vmem:[#allocation8 + $0x4b0] sm:$0xff] }
 0x25b   :  { %4180 = vmatpush1.bf16.msra.mxu0 %v5331_v12  ;;  %v842_v12 = vld [vmem:[#allocation8 + $0x3b8] sm:$0xff] }
 0x25c   :  { %4344 = vmatpush1.bf16.msra.mxu1 %v5333_v13  ;;  %4181 = vmatprep.subr.bf16.mxu0 %v5340_v38  ;;  %v5379_v13 = vcombine.low %v829_v59, %v833_v2  ;;  %v5381_v38 = vcombine.low %v830_v19, %v834_v44  ;;  %v5390_v16 = vcombine.high %v838_v63, %v842_v12  ;;  %v877_v2 = vld [vmem:[#allocation8 + $0x4d0] sm:$0xff]  ;;  %v878_v44 = vld [vmem:[#allocation8 + $0x4d8] sm:$0xff] }
 0x25d   :  { %4345 = vmatprep.subr.bf16.mxu1 %v5342_v15  ;;  %v5388_v15 = vcombine.high %v837_v9, %v841_v10  ;;  %v881_v19 = vld [vmem:[#allocation8 + $0x4f0] sm:$0xff] }
 0x25f   :  { %4182 = vmatpush1.bf16.msra.mxu0 %v5339_v27  ;;  %v850_v27 = vld [vmem:[#allocation8 + $0x3f8] sm:$0xff] }
 0x260   :  { %4346 = vmatpush1.bf16.msra.mxu1 %v5341_v28  ;;  %4183 = vmatprep.subr.bf16.mxu0 %v5348_v29  ;;  %v5387_v28 = vcombine.low %v837_v9, %v841_v10  ;;  %v5389_v29 = vcombine.low %v838_v63, %v842_v12  ;;  %v5398_v31 = vcombine.high %v846_v26, %v850_v27  ;;  %v885_v9 = vld [vmem:[#allocation8 + $0x510] sm:$0xff]  ;;  %v886_v63 = vld [vmem:[#allocation8 + $0x518] sm:$0xff] }
 0x261   :  { %4347 = vmatprep.subr.bf16.mxu1 %v5350_v30  ;;  %v5396_v30 = vcombine.high %v845_v21, %v849_v23  ;;  %v889_v10 = vld [vmem:[#allocation8 + $0x530] sm:$0xff]  ;;  %v890_v12 = vld [vmem:[#allocation8 + $0x538] sm:$0xff] }
 0x263   :  { %4184 = vmatpush1.bf16.msra.mxu0 %v5347_v40  ;;  %v858_v40 = vld [vmem:[#allocation8 + $0x438] sm:$0xff] }
 0x264   :  { %4348 = vmatpush1.bf16.msra.mxu1 %v5349_v41  ;;  %4185 = vmatprep.subr.bf16.mxu0 %v5356_v42  ;;  %v5395_v41 = vcombine.low %v845_v21, %v849_v23  ;;  %v5397_v42 = vcombine.low %v846_v26, %v850_v27  ;;  %v5406_v43 = vcombine.high %v854_v34, %v858_v40  ;;  %v897_v21 = vld [vmem:[#allocation8 + $0x570] sm:$0xff]  ;;  %v894_v23 = vld [vmem:[#allocation8 + $0x558] sm:$0xff] }
 0x265   :  { %4349 = vmatprep.subr.bf16.mxu1 %v5358_v6  ;;  %v5404_v6 = vcombine.high %v853_v37, %v857_v32  ;;  %v898_v26 = vld [vmem:[#allocation8 + $0x578] sm:$0xff]  ;;  %v5435_v27 = vcombine.low %v885_v9, %v889_v10  ;;  %v905_v37 = vld [vmem:[#allocation8 + $0x5b0] sm:$0xff] }
 0x266   :  { %v902_v32 = vld [vmem:[#allocation8 + $0x598] sm:$0xff] }
 0x267   :  { %4186 = vmatpush1.bf16.msra.mxu0 %v5355_v50  ;;  %v862_v50 = vld [vmem:[#allocation8 + $0x458] sm:$0xff] }
 0x268   :  { %4350 = vmatpush1.bf16.msra.mxu1 %v5357_v51  ;;  %4187 = vmatprep.subr.bf16.mxu0 %v5364_v52  ;;  %v866_v51 = vld [vmem:[#allocation8 + $0x478] sm:$0xff]  ;;  %v5405_v52 = vcombine.low %v854_v34, %v858_v40 }
 0x269   :  { %4351 = vmatprep.subr.bf16.mxu1 %v5366_v53  ;;  %v5412_v53 = vcombine.high %v861_v46, %v865_v47  ;;  %v5414_v56 = vcombine.high %v862_v50, %v866_v51  ;;  %v906_v34 = vld [vmem:[#allocation8 + $0x5b8] sm:$0xff] }
 0x26b   :  { %4188 = vmatpush1.bf16.msra.mxu0 %v5363_v60  ;;  %v874_v60 = vld [vmem:[#allocation8 + $0x4b8] sm:$0xff] }
 0x26c   :  { %4352 = vmatpush1.bf16.msra.mxu1 %v5365_v61  ;;  %4189 = vmatprep.subr.bf16.mxu0 %v5372_v62  ;;  %v5411_v61 = vcombine.low %v861_v46, %v865_v47  ;;  %v5413_v62 = vcombine.low %v862_v50, %v866_v51  ;;  %v5422_v59 = vcombine.high %v870_v57, %v874_v60  ;;  %v913_v46 = vld [vmem:[#allocation8 + $0x5f0] sm:$0xff]  ;;  %v910_v47 = vld [vmem:[#allocation8 + $0x5d8] sm:$0xff] }
 0x26d   :  { %4353 = vmatprep.subr.bf16.mxu1 %v5374_v1  ;;  %v5420_v1 = vcombine.high %v869_v54, %v873_v55  ;;  %v5453_v51 = vcombine.low %v902_v32, %v906_v34 }
 0x26f   :  { %4190 = vmatpush1.bf16.msra.mxu0 %v5371_v4  ;;  %v882_v4 = vld [vmem:[#allocation8 + $0x4f8] sm:$0xff] }
 0x270   :  { %4354 = vmatpush1.bf16.msra.mxu1 %v5373_v5  ;;  %4191 = vmatprep.subr.bf16.mxu0 %v5380_v7  ;;  %v5419_v5 = vcombine.low %v869_v54, %v873_v55  ;;  %v5428_v7 = vcombine.high %v877_v2, %v881_v19  ;;  %v917_v54 = vld [vmem:[#allocation8 + $0x610] sm:$0xff] }
 0x271   :  { %4355 = vmatprep.subr.bf16.mxu1 %v5382_v8  ;;  %v5430_v8 = vcombine.high %v878_v44, %v882_v4  ;;  %v921_v55 = vld [vmem:[#allocation8 + $0x630] sm:$0xff] }
 0x273   :  { %4192 = vmatpush1.bf16.msra.mxu0 %v5379_v13  ;;  %v5429_v13 = vcombine.low %v878_v44, %v882_v4  ;;  %v930_v44 = vld [vmem:[#allocation8 + $0x678] sm:$0xff]  ;;  %v5467_v4 = vcombine.low %v917_v54, %v921_v55 }
 0x274   :  { %4356 = vmatpush1.bf16.msra.mxu1 %v5381_v38  ;;  %4193 = vmatprep.subr.bf16.mxu0 %v5388_v15  ;;  %v5436_v38 = vcombine.high %v885_v9, %v889_v10  ;;  %v5438_v15 = vcombine.high %v886_v63, %v890_v12  ;;  %v937_v9 = vld [vmem:[#allocation8 + $0x6b0] sm:$0xff]  ;;  %v934_v10 = vld [vmem:[#allocation8 + $0x698] sm:$0xff] }
 0x275   :  { %4357 = vmatprep.subr.bf16.mxu1 %v5390_v16  ;;  %v893_v16 = vld [vmem:[#allocation8 + $0x550] sm:$0xff] }
 0x276   :  { %v5443_v40 = vcombine.low %v893_v16, %v897_v21 }
 0x277   :  { %4194 = vmatpush1.bf16.msra.mxu0 %v5387_v28  ;;  %v5437_v28 = vcombine.low %v886_v63, %v890_v12  ;;  %v938_v63 = vld [vmem:[#allocation8 + $0x6b8] sm:$0xff] }
 0x278   :  { %4358 = vmatpush1.bf16.msra.mxu1 %v5389_v29  ;;  %4195 = vmatprep.subr.bf16.mxu0 %v5396_v30  ;;  %v5444_v29 = vcombine.high %v893_v16, %v897_v21  ;;  %v5446_v30 = vcombine.high %v894_v23, %v898_v26  ;;  %v945_v16 = vld [vmem:[#allocation8 + $0x6f0] sm:$0xff]  ;;  %v942_v21 = vld [vmem:[#allocation8 + $0x6d8] sm:$0xff] }
 0x279   :  { %4359 = vmatprep.subr.bf16.mxu1 %v5398_v31  ;;  %v901_v31 = vld [vmem:[#allocation8 + $0x590] sm:$0xff] }
 0x27a   :  { %v5451_v50 = vcombine.low %v901_v31, %v905_v37 }
 0x27b   :  { %4196 = vmatpush1.bf16.msra.mxu0 %v5395_v41  ;;  %v5445_v41 = vcombine.low %v894_v23, %v898_v26  ;;  %v946_v23 = vld [vmem:[#allocation8 + $0x6f8] sm:$0xff] }
 0x27c   :  { %4360 = vmatpush1.bf16.msra.mxu1 %v5397_v42  ;;  %4206 = vmatprep.subr.bf16.mxu0 %v5404_v6  ;;  %v5452_v42 = vcombine.high %v901_v31, %v905_v37  ;;  %v5454_v6 = vcombine.high %v902_v32, %v906_v34  ;;  %v953_v31 = vld [vmem:[#allocation8 + $0x730] sm:$0xff]  ;;  %v950_v37 = vld [vmem:[#allocation8 + $0x718] sm:$0xff] }
 0x27d   :  { %4370 = vmatprep.subr.bf16.mxu1 %v5406_v43  ;;  %v909_v43 = vld [vmem:[#allocation8 + $0x5d0] sm:$0xff]  ;;  %v954_v32 = vld [vmem:[#allocation8 + $0x738] sm:$0xff] }
 0x27e   :  { %4198 = vmatmul.mubr.bf16.vlgmr.msra.gmra.mrb[12].mxu0 %v6425_v39 }
 0x27f   :  { %4362 = vmatmul.mubr.bf16.vlgmr.msra.gmra.mrb[12].mxu1 %v6425_v39  ;;  %4207 = vmatpush1.bf16.msra.mxu0 %v5403_v48  ;;  %v5421_v39 = vcombine.low %v870_v57, %v874_v60  ;;  %v914_v48 = vld [vmem:[#allocation8 + $0x5f8] sm:$0xff]  ;;  %v5459_v60 = vcombine.low %v909_v43, %v913_v46 }
 0x280   :  { %4238 = vmatprep.mubr.bf16.mxu0 %v6432_v58  ;;  %4371 = vmatpush1.bf16.msra.mxu1 %v5405_v52  ;;  %v5460_v52 = vcombine.high %v909_v43, %v913_v46  ;;  %v922_v57 = vld [vmem:[#allocation8 + $0x638] sm:$0xff]  ;;  %v961_v43 = vld [vmem:[#allocation8 + $0x770] sm:$0xff] }
 0x281   :  { %4402 = vmatprep.mubr.bf16.mxu1 %v6432_v58  ;;  %4208 = vmatprep.subr.bf16.mxu0 %v5412_v53  ;;  %v5427_v58 = vcombine.low %v877_v2, %v881_v19  ;;  %v5462_v53 = vcombine.high %v910_v47, %v914_v48  ;;  %v929_v2 = vld [vmem:[#allocation8 + $0x670] sm:$0xff]  ;;  %v926_v19 = vld [vmem:[#allocation8 + $0x658] sm:$0xff] }
 0x282   :  { %4372 = vmatprep.subr.bf16.mxu1 %v5414_v56  ;;  %v918_v56 = vld [vmem:[#allocation8 + $0x618] sm:$0xff] }
 0x283   :  { %4209 = vmatpush1.bf16.msra.mxu0 %v5411_v61  ;;  %v5461_v61 = vcombine.low %v910_v47, %v914_v48  ;;  %v958_v46 = vld [vmem:[#allocation8 + $0x758] sm:$0xff] }
 0x284   :  { %4373 = vmatpush1.bf16.msra.mxu1 %v5413_v62  ;;  %4210 = vmatprep.subr.bf16.mxu0 %v5420_v1  ;;  %v5468_v62 = vcombine.high %v917_v54, %v921_v55  ;;  %v5470_v1 = vcombine.high %v918_v56, %v922_v57  ;;  %v962_v47 = vld [vmem:[#allocation8 + $0x778] sm:$0xff]  ;;  %v969_v54 = vld [vmem:[#allocation8 + $0x7b0] sm:$0xff] }
 0x285   :  { %4374 = vmatprep.subr.bf16.mxu1 %v5422_v59  ;;  %v925_v59 = vld [vmem:[#allocation8 + $0x650] sm:$0xff]  ;;  %v966_v55 = vld [vmem:[#allocation8 + $0x798] sm:$0xff] }
 0x286   :  { %v5475_v12 = vcombine.low %v925_v59, %v929_v2 }
 0x287   :  { %4211 = vmatpush1.bf16.msra.mxu0 %v5419_v5  ;;  %v5469_v5 = vcombine.low %v918_v56, %v922_v57  ;;  %v970_v56 = vld [vmem:[#allocation8 + $0x7b8] sm:$0xff] }
 0x288   :  { %4375 = vmatpush1.bf16.msra.mxu1 %v5421_v39  ;;  %4212 = vmatprep.subr.bf16.mxu0 %v5428_v7  ;;  %v5476_v39 = vcombine.high %v925_v59, %v929_v2  ;;  %v5478_v7 = vcombine.high %v926_v19, %v930_v44  ;;  %v977_v59 = vld [vmem:[#allocation8 + $0x7f0] sm:$0xff]  ;;  %v974_v2 = vld [vmem:[#allocation8 + $0x7d8] sm:$0xff] }
 0x289   :  { %4376 = vmatprep.subr.bf16.mxu1 %v5430_v8  ;;  %v933_v8 = vld [vmem:[#allocation8 + $0x690] sm:$0xff] }
 0x28a   :  { %v5483_v26 = vcombine.low %v933_v8, %v937_v9 }
 0x28b   :  { %4213 = vmatpush1.bf16.msra.mxu0 %v5427_v58  ;;  %v5477_v58 = vcombine.low %v926_v19, %v930_v44  ;;  %v978_v19 = vld [vmem:[#allocation8 + $0x7f8] sm:$0xff] }
 0x28c   :  { %4377 = vmatpush1.bf16.msra.mxu1 %v5429_v13  ;;  %4214 = vmatprep.subr.bf16.mxu0 %v5436_v38  ;;  %v5484_v13 = vcombine.high %v933_v8, %v937_v9  ;;  %v5486_v38 = vcombine.high %v934_v10, %v938_v63  ;;  %v985_v8 = vld [vmem:[#allocation8 + $0x830] sm:$0xff]  ;;  %v982_v9 = vld [vmem:[#allocation8 + $0x818] sm:$0xff] }
 0x28d   :  { %4378 = vmatprep.subr.bf16.mxu1 %v5438_v15  ;;  %v941_v15 = vld [vmem:[#allocation8 + $0x6d0] sm:$0xff] }
 0x28e   :  { %v5491_v34 = vcombine.low %v941_v15, %v945_v16 }
 0x28f   :  { %4215 = vmatpush1.bf16.msra.mxu0 %v5435_v27  ;;  %v5485_v27 = vcombine.low %v934_v10, %v938_v63  ;;  %v986_v10 = vld [vmem:[#allocation8 + $0x838] sm:$0xff] }
 0x290   :  { %4379 = vmatpush1.bf16.msra.mxu1 %v5437_v28  ;;  %4216 = vmatprep.subr.bf16.mxu0 %v5444_v29  ;;  %v5492_v28 = vcombine.high %v941_v15, %v945_v16  ;;  %v5494_v29 = vcombine.high %v942_v21, %v946_v23  ;;  %v993_v15 = vld [vmem:[#allocation8 + $0x870] sm:$0xff] }
 0x291   :  { %4380 = vmatprep.subr.bf16.mxu1 %v5446_v30  ;;  %v949_v30 = vld [vmem:[#allocation8 + $0x710] sm:$0xff] }
 0x292   :  { %v5499_v48 = vcombine.low %v949_v30, %v953_v31 }
 0x293   :  { %4217 = vmatpush1.bf16.msra.mxu0 %v5443_v40  ;;  %v5493_v40 = vcombine.low %v942_v21, %v946_v23  ;;  %v990_v21 = vld [vmem:[#allocation8 + $0x858] sm:$0xff] }
 0x294   :  { %4381 = vmatpush1.bf16.msra.mxu1 %v5445_v41  ;;  %4218 = vmatprep.subr.bf16.mxu0 %v5452_v42  ;;  %v5500_v41 = vcombine.high %v949_v30, %v953_v31  ;;  %v5502_v42 = vcombine.high %v950_v37, %v954_v32  ;;  %v994_v23 = vld [vmem:[#allocation8 + $0x878] sm:$0xff] }
 0x295   :  { %4382 = vmatprep.subr.bf16.mxu1 %v5454_v6  ;;  %v957_v6 = vld [vmem:[#allocation8 + $0x750] sm:$0xff]  ;;  %v5542_v30 = vcombine.high %v990_v21, %v994_v23  ;;  %v998_v31 = vld [vmem:[#allocation8 + $0x898] sm:$0xff] }
 0x296   :  { %v5507_v57 = vcombine.low %v957_v6, %v961_v43 }
 0x297   :  { %4219 = vmatpush1.bf16.msra.mxu0 %v5451_v50  ;;  %v5501_v50 = vcombine.low %v950_v37, %v954_v32  ;;  %v1002_v37 = vld [vmem:[#allocation8 + $0x8b8] sm:$0xff] }
 0x298   :  { %4383 = vmatpush1.bf16.msra.mxu1 %v5453_v51  ;;  %4220 = vmatprep.subr.bf16.mxu0 %v5460_v52  ;;  %v5508_v51 = vcombine.high %v957_v6, %v961_v43  ;;  %v5510_v52 = vcombine.high %v958_v46, %v962_v47  ;;  %v1009_v6 = vld [vmem:[#allocation8 + $0x8f0] sm:$0xff]  ;;  %v1006_v43 = vld [vmem:[#allocation8 + $0x8d8] sm:$0xff] }
 0x299   :  { %4384 = vmatprep.subr.bf16.mxu1 %v5462_v53  ;;  %v965_v53 = vld [vmem:[#allocation8 + $0x790] sm:$0xff] }
 0x29a   :  { %v5515_v44 = vcombine.low %v965_v53, %v969_v54 }
 0x29b   :  { %4221 = vmatpush1.bf16.msra.mxu0 %v5459_v60  ;;  %v5509_v60 = vcombine.low %v958_v46, %v962_v47  ;;  %v1010_v46 = vld [vmem:[#allocation8 + $0x8f8] sm:$0xff] }
 0x29c   :  { %4385 = vmatpush1.bf16.msra.mxu1 %v5461_v61  ;;  %4222 = vmatprep.subr.bf16.mxu0 %v5468_v62  ;;  %v5516_v61 = vcombine.high %v965_v53, %v969_v54  ;;  %v5518_v62 = vcombine.high %v966_v55, %v970_v56  ;;  %v1014_v53 = vld [vmem:[#allocation8 + $0x918] sm:$0xff] }
 0x29d   :  { %4386 = vmatprep.subr.bf16.mxu1 %v5470_v1  ;;  %v973_v1 = vld [vmem:[#allocation8 + $0x7d0] sm:$0xff]  ;;  %v1018_v54 = vld [vmem:[#allocation8 + $0x938] sm:$0xff] }
 0x29e   :  { %v5523_v63 = vcombine.low %v973_v1, %v977_v59 }
 0x29f   :  { %4223 = vmatpush1.bf16.msra.mxu0 %v5467_v4  ;;  %v5517_v4 = vcombine.low %v966_v55, %v970_v56  ;;  %v5557_v55 = vcombine.low %v1006_v43, %v1010_v46 }
 0x2a0   :  { %4387 = vmatpush1.bf16.msra.mxu1 %v5469_v5  ;;  %4224 = vmatprep.subr.bf16.mxu0 %v5476_v39  ;;  %v5524_v5 = vcombine.high %v973_v1, %v977_v59  ;;  %v5526_v39 = vcombine.high %v974_v2, %v978_v19  ;;  %v1026_v1 = vld [vmem:[#allocation8 + $0x978] sm:$0xff] }
 0x2a1   :  { %4388 = vmatprep.subr.bf16.mxu1 %v5478_v7  ;;  %v981_v7 = vld [vmem:[#allocation8 + $0x810] sm:$0xff] }
 0x2a2   :  { %v5531_v16 = vcombine.low %v981_v7, %v985_v8 }
 0x2a3   :  { %4225 = vmatpush1.bf16.msra.mxu0 %v5475_v12  ;;  %v5525_v12 = vcombine.low %v974_v2, %v978_v19  ;;  %v5565_v2 = vcombine.low %v1014_v53, %v1018_v54 }
 0x2a4   :  { %4389 = vmatpush1.bf16.msra.mxu1 %v5477_v58  ;;  %4226 = vmatprep.subr.bf16.mxu0 %v5484_v13  ;;  %v5532_v58 = vcombine.high %v981_v7, %v985_v8  ;;  %v5534_v13 = vcombine.high %v982_v9, %v986_v10  ;;  %v1034_v7 = vld [vmem:[#allocation8 + $0x9b8] sm:$0xff] }
 0x2a5   :  { %4390 = vmatprep.subr.bf16.mxu1 %v5486_v38  ;;  %v989_v38 = vld [vmem:[#allocation8 + $0x850] sm:$0xff] }
 0x2a6   :  { %v5539_v32 = vcombine.low %v989_v38, %v993_v15 }
 0x2a7   :  { %4227 = vmatpush1.bf16.msra.mxu0 %v5483_v26  ;;  %v5533_v26 = vcombine.low %v982_v9, %v986_v10 }
 0x2a8   :  { %4391 = vmatpush1.bf16.msra.mxu1 %v5485_v27  ;;  %4228 = vmatprep.subr.bf16.mxu0 %v5492_v28  ;;  %v5540_v27 = vcombine.high %v989_v38, %v993_v15  ;;  %v997_v28 = vld [vmem:[#allocation8 + $0x890] sm:$0xff]  ;;  %v1042_v38 = vld [vmem:[#allocation8 + $0x9f8] sm:$0xff] }
 0x2a9   :  { %4392 = vmatprep.subr.bf16.mxu1 %v5494_v29  ;;  %v1001_v29 = vld [vmem:[#allocation8 + $0x8b0] sm:$0xff] }
 0x2aa   :  { %v5547_v47 = vcombine.low %v997_v28, %v1001_v29 }
 0x2ab   :  { %4229 = vmatpush1.bf16.msra.mxu0 %v5491_v34  ;;  %v5541_v34 = vcombine.low %v990_v21, %v994_v23 }
 0x2ac   :  { %4393 = vmatpush1.bf16.msra.mxu1 %v5493_v40  ;;  %4230 = vmatprep.subr.bf16.mxu0 %v5500_v41  ;;  %v5548_v40 = vcombine.high %v997_v28, %v1001_v29  ;;  %v5550_v41 = vcombine.high %v998_v31, %v1002_v37  ;;  %v1046_v28 = vld [vmem:[#allocation8 + $0xa18] sm:$0xff] }
 0x2ad   :  { %4394 = vmatprep.subr.bf16.mxu1 %v5502_v42  ;;  %v1005_v42 = vld [vmem:[#allocation8 + $0x8d0] sm:$0xff]  ;;  %v1050_v29 = vld [vmem:[#allocation8 + $0xa38] sm:$0xff] }
 0x2af   :  { %4231 = vmatpush1.bf16.msra.mxu0 %v5499_v48  ;;  %v5556_v48 = vcombine.high %v1005_v42, %v1009_v6 }
 0x2b0   :  { %4395 = vmatpush1.bf16.msra.mxu1 %v5501_v50  ;;  %4232 = vmatprep.subr.bf16.mxu0 %v5508_v51  ;;  %v5558_v50 = vcombine.high %v1006_v43, %v1010_v46  ;;  %v1013_v51 = vld [vmem:[#allocation8 + $0x910] sm:$0xff]  ;;  %v5597_v43 = vcombine.low %v1046_v28, %v1050_v29 }
 0x2b1   :  { %4396 = vmatprep.subr.bf16.mxu1 %v5510_v52  ;;  %v1017_v52 = vld [vmem:[#allocation8 + $0x930] sm:$0xff] }
 0x2b2   :  { %v5564_v56 = vcombine.high %v1013_v51, %v1017_v52  ;;  %v5563_v59 = vcombine.low %v1013_v51, %v1017_v52  ;;  %v1066_v51 = vld [vmem:[#allocation8 + $0xab8] sm:$0xff] }
 0x2b3   :  { %4233 = vmatpush1.bf16.msra.mxu0 %v5507_v57  ;;  %v5566_v57 = vcombine.high %v1014_v53, %v1018_v54 }
 0x2b4   :  { %4397 = vmatpush1.bf16.msra.mxu1 %v5509_v60  ;;  %4234 = vmatprep.subr.bf16.mxu0 %v5516_v61  ;;  %v1021_v60 = vld [vmem:[#allocation8 + $0x950] sm:$0xff] }
 0x2b5   :  { %4398 = vmatprep.subr.bf16.mxu1 %v5518_v62  ;;  %v1025_v61 = vld [vmem:[#allocation8 + $0x970] sm:$0xff]  ;;  %v1022_v62 = vld [vmem:[#allocation8 + $0x958] sm:$0xff] }
 0x2b6   :  { %v5572_v19 = vcombine.high %v1021_v60, %v1025_v61  ;;  %v5571_v8 = vcombine.low %v1021_v60, %v1025_v61  ;;  %v5573_v9 = vcombine.low %v1022_v62, %v1026_v1  ;;  %v1074_v60 = vld [vmem:[#allocation8 + $0xaf8] sm:$0xff] }
 0x2b7   :  { %4235 = vmatpush1.bf16.msra.mxu0 %v5515_v44  ;;  %v5574_v44 = vcombine.high %v1022_v62, %v1026_v1 }
 0x2b8   :  { %4399 = vmatpush1.bf16.msra.mxu1 %v5517_v4  ;;  %4236 = vmatprep.subr.bf16.mxu0 %v5524_v5  ;;  %v1029_v4 = vld [vmem:[#allocation8 + $0x990] sm:$0xff] }
 0x2b9   :  { %4400 = vmatprep.subr.bf16.mxu1 %v5526_v39  ;;  %v1033_v5 = vld [vmem:[#allocation8 + $0x9b0] sm:$0xff]  ;;  %v1030_v39 = vld [vmem:[#allocation8 + $0x998] sm:$0xff] }
 0x2ba   :  { %v5580_v10 = vcombine.high %v1029_v4, %v1033_v5  ;;  %v5579_v15 = vcombine.low %v1029_v4, %v1033_v5  ;;  %v1082_v4 = vld [vmem:[#allocation8 + $0xb38] sm:$0xff] }
 0x2bb   :  { %4237 = vmatpush1.bf16.msra.mxu0 %v5523_v63  ;;  %v5582_v63 = vcombine.high %v1030_v39, %v1034_v7 }
 0x2bc   :  { %4401 = vmatpush1.bf16.msra.mxu1 %v5525_v12  ;;  %4247 = vmatprep.subr.bf16.mxu0 %v5532_v58  ;;  %v1037_v12 = vld [vmem:[#allocation8 + $0x9d0] sm:$0xff] }
 0x2bd   :  { %4411 = vmatprep.subr.bf16.mxu1 %v5534_v13  ;;  %v1041_v58 = vld [vmem:[#allocation8 + $0x9f0] sm:$0xff]  ;;  %v1038_v13 = vld [vmem:[#allocation8 + $0x9d8] sm:$0xff] }
 0x2be   :  { %4239 = vmatmul.mubr.bf16.vlgmr.msra.gmra.mrb[12].mxu0 %v6455_v25  ;;  %v5588_v21 = vcombine.high %v1037_v12, %v1041_v58  ;;  %v5590_v23 = vcombine.high %v1038_v13, %v1042_v38 }
 0x2bf   :  { %4403 = vmatmul.mubr.bf16.vlgmr.msra.gmra.mrb[12].mxu1 %v6455_v25  ;;  %4248 = vmatpush1.bf16.msra.mxu0 %v5531_v16  ;;  %v5549_v25 = vcombine.low %v998_v31, %v1002_v37  ;;  %v5581_v16 = vcombine.low %v1030_v39, %v1034_v7  ;;  %v5589_v31 = vcombine.low %v1038_v13, %v1042_v38 }
 0x2c0   :  { %4279 = vmatprep.mubr.bf16.mxu0 %v6458_v33  ;;  %4412 = vmatpush1.bf16.msra.mxu1 %v5533_v26  ;;  %v1045_v26 = vld [vmem:[#allocation8 + $0xa10] sm:$0xff] }
 0x2c1   :  { %4443 = vmatprep.mubr.bf16.mxu1 %v6458_v33  ;;  %4249 = vmatprep.subr.bf16.mxu0 %v5540_v27  ;;  %v5555_v33 = vcombine.low %v1005_v42, %v1009_v6  ;;  %v1049_v27 = vld [vmem:[#allocation8 + $0xa30] sm:$0xff]  ;;  %v1058_v42 = vld [vmem:[#allocation8 + $0xa78] sm:$0xff] }
 0x2c2   :  { %4413 = vmatprep.subr.bf16.mxu1 %v5542_v30  ;;  %v5587_v30 = vcombine.low %v1037_v12, %v1041_v58  ;;  %v5596_v37 = vcombine.high %v1045_v26, %v1049_v27  ;;  %v5595_v6 = vcombine.low %v1045_v26, %v1049_v27  ;;  %v1090_v12 = vld [vmem:[#allocation8 + $0xb78] sm:$0xff] }
 0x2c3   :  { %4250 = vmatpush1.bf16.msra.mxu0 %v5539_v32  ;;  %v5598_v32 = vcombine.high %v1046_v28, %v1050_v29  ;;  %v1098_v26 = vld [vmem:[#allocation8 + $0xbb8] sm:$0xff] }
 0x2c4   :  { %4414 = vmatpush1.bf16.msra.mxu1 %v5541_v34  ;;  %4251 = vmatprep.subr.bf16.mxu0 %v5548_v40  ;;  %v1053_v34 = vld [vmem:[#allocation8 + $0xa50] sm:$0xff] }
 0x2c5   :  { %4415 = vmatprep.subr.bf16.mxu1 %v5550_v41  ;;  %v1057_v40 = vld [vmem:[#allocation8 + $0xa70] sm:$0xff]  ;;  %v1054_v41 = vld [vmem:[#allocation8 + $0xa58] sm:$0xff] }
 0x2c6   :  { %v5604_v46 = vcombine.high %v1053_v34, %v1057_v40  ;;  %v5603_v52 = vcombine.low %v1053_v34, %v1057_v40  ;;  %v5605_v53 = vcombine.low %v1054_v41, %v1058_v42  ;;  %v1106_v34 = vld [vmem:[#allocation8 + $0xbf8] sm:$0xff] }
 0x2c7   :  { %4252 = vmatpush1.bf16.msra.mxu0 %v5547_v47  ;;  %v5606_v47 = vcombine.high %v1054_v41, %v1058_v42 }
 0x2c8   :  { %4416 = vmatpush1.bf16.msra.mxu1 %v5549_v25  ;;  %4253 = vmatprep.subr.bf16.mxu0 %v5556_v48  ;;  %v1061_v25 = vld [vmem:[#allocation8 + $0xa90] sm:$0xff] }
 0x2c9   :  { %4417 = vmatprep.subr.bf16.mxu1 %v5558_v50  ;;  %v1065_v48 = vld [vmem:[#allocation8 + $0xab0] sm:$0xff]  ;;  %v1062_v50 = vld [vmem:[#allocation8 + $0xa98] sm:$0xff] }
 0x2ca   :  { %v5612_v54 = vcombine.high %v1061_v25, %v1065_v48  ;;  %v5611_v61 = vcombine.low %v1061_v25, %v1065_v48  ;;  %v5613_v62 = vcombine.low %v1062_v50, %v1066_v51  ;;  %v1114_v25 = vld [vmem:[#allocation8 + $0xc38] sm:$0xff] }
 0x2cb   :  { %4254 = vmatpush1.bf16.msra.mxu0 %v5555_v33  ;;  %v5614_v33 = vcombine.high %v1062_v50, %v1066_v51 }
 0x2cc   :  { %4418 = vmatpush1.bf16.msra.mxu1 %v5557_v55  ;;  %4255 = vmatprep.subr.bf16.mxu0 %v5564_v56  ;;  %v1069_v55 = vld [vmem:[#allocation8 + $0xad0] sm:$0xff] }
 0x2cd   :  { %4419 = vmatprep.subr.bf16.mxu1 %v5566_v57  ;;  %v1073_v56 = vld [vmem:[#allocation8 + $0xaf0] sm:$0xff]  ;;  %v1070_v57 = vld [vmem:[#allocation8 + $0xad8] sm:$0xff] }
 0x2ce   :  { %v5620_v1 = vcombine.high %v1069_v55, %v1073_v56  ;;  %v5619_v5 = vcombine.low %v1069_v55, %v1073_v56  ;;  %v5621_v39 = vcombine.low %v1070_v57, %v1074_v60  ;;  %v1118_v55 = vld [vmem:[#allocation8 + $0xc58] sm:$0xff] }
 0x2cf   :  { %4256 = vmatpush1.bf16.msra.mxu0 %v5563_v59  ;;  %v5622_v59 = vcombine.high %v1070_v57, %v1074_v60  ;;  %v1122_v56 = vld [vmem:[#allocation8 + $0xc78] sm:$0xff] }
 0x2d0   :  { %4420 = vmatpush1.bf16.msra.mxu1 %v5565_v2  ;;  %4257 = vmatprep.subr.bf16.mxu0 %v5572_v19  ;;  %v1077_v2 = vld [vmem:[#allocation8 + $0xb10] sm:$0xff] }
 0x2d1   :  { %4421 = vmatprep.subr.bf16.mxu1 %v5574_v44  ;;  %v1081_v19 = vld [vmem:[#allocation8 + $0xb30] sm:$0xff]  ;;  %v1078_v44 = vld [vmem:[#allocation8 + $0xb18] sm:$0xff] }
 0x2d2   :  { %v5628_v7 = vcombine.high %v1077_v2, %v1081_v19  ;;  %v5627_v58 = vcombine.low %v1077_v2, %v1081_v19  ;;  %v5629_v13 = vcombine.low %v1078_v44, %v1082_v4  ;;  %v1130_v2 = vld [vmem:[#allocation8 + $0xcb8] sm:$0xff] }
 0x2d3   :  { %4258 = vmatpush1.bf16.msra.mxu0 %v5571_v8  ;;  %v5630_v8 = vcombine.high %v1078_v44, %v1082_v4  ;;  %v5669_v44 = vcombine.low %v1118_v55, %v1122_v56 }
 0x2d4   :  { %4422 = vmatpush1.bf16.msra.mxu1 %v5573_v9  ;;  %4259 = vmatprep.subr.bf16.mxu0 %v5580_v10  ;;  %v1085_v9 = vld [vmem:[#allocation8 + $0xb50] sm:$0xff] }
 0x2d5   :  { %4423 = vmatprep.subr.bf16.mxu1 %v5582_v63  ;;  %v1089_v10 = vld [vmem:[#allocation8 + $0xb70] sm:$0xff]  ;;  %v1086_v63 = vld [vmem:[#allocation8 + $0xb58] sm:$0xff] }
 0x2d6   :  { %v5636_v38 = vcombine.high %v1085_v9, %v1089_v10  ;;  %v5635_v27 = vcombine.low %v1085_v9, %v1089_v10  ;;  %v5637_v28 = vcombine.low %v1086_v63, %v1090_v12  ;;  %v1138_v9 = vld [vmem:[#allocation8 + $0xcf8] sm:$0xff] }
 0x2d7   :  { %4260 = vmatpush1.bf16.msra.mxu0 %v5579_v15  ;;  %v5638_v15 = vcombine.high %v1086_v63, %v1090_v12 }
 0x2d8   :  { %4424 = vmatpush1.bf16.msra.mxu1 %v5581_v16  ;;  %4261 = vmatprep.subr.bf16.mxu0 %v5588_v21  ;;  %v1093_v16 = vld [vmem:[#allocation8 + $0xb90] sm:$0xff] }
 0x2d9   :  { %4425 = vmatprep.subr.bf16.mxu1 %v5590_v23  ;;  %v1097_v21 = vld [vmem:[#allocation8 + $0xbb0] sm:$0xff]  ;;  %v1094_v23 = vld [vmem:[#allocation8 + $0xb98] sm:$0xff] }
 0x2da   :  { %v5644_v29 = vcombine.high %v1093_v16, %v1097_v21  ;;  %v5643_v40 = vcombine.low %v1093_v16, %v1097_v21  ;;  %v5645_v41 = vcombine.low %v1094_v23, %v1098_v26 }
 0x2db   :  { %4262 = vmatpush1.bf16.msra.mxu0 %v5587_v30  ;;  %v5646_v30 = vcombine.high %v1094_v23, %v1098_v26  ;;  %v1149_v26 = vld [vmem:[#allocation8 + $0xd50] sm:$0xff] }
 0x2dc   :  { %4426 = vmatpush1.bf16.msra.mxu1 %v5589_v31  ;;  %4263 = vmatprep.subr.bf16.mxu0 %v5596_v37  ;;  %v1101_v31 = vld [vmem:[#allocation8 + $0xbd0] sm:$0xff] }
 0x2dd   :  { %4427 = vmatprep.subr.bf16.mxu1 %v5598_v32  ;;  %v1105_v37 = vld [vmem:[#allocation8 + $0xbf0] sm:$0xff]  ;;  %v1102_v32 = vld [vmem:[#allocation8 + $0xbd8] sm:$0xff] }
 0x2de   :  { %v5652_v42 = vcombine.high %v1101_v31, %v1105_v37  ;;  %v5651_v48 = vcombine.low %v1101_v31, %v1105_v37  ;;  %v5653_v50 = vcombine.low %v1102_v32, %v1106_v34 }
 0x2df   :  { %4264 = vmatpush1.bf16.msra.mxu0 %v5595_v6  ;;  %v5654_v6 = vcombine.high %v1102_v32, %v1106_v34  ;;  %v1157_v34 = vld [vmem:[#allocation8 + $0xd90] sm:$0xff] }
 0x2e0   :  { %4428 = vmatpush1.bf16.msra.mxu1 %v5597_v43  ;;  %4265 = vmatprep.subr.bf16.mxu0 %v5604_v46  ;;  %v1109_v43 = vld [vmem:[#allocation8 + $0xc10] sm:$0xff] }
 0x2e1   :  { %4429 = vmatprep.subr.bf16.mxu1 %v5606_v47  ;;  %v1113_v46 = vld [vmem:[#allocation8 + $0xc30] sm:$0xff]  ;;  %v1110_v47 = vld [vmem:[#allocation8 + $0xc18] sm:$0xff] }
 0x2e2   :  { %v5660_v51 = vcombine.high %v1109_v43, %v1113_v46  ;;  %v5661_v57 = vcombine.low %v1110_v47, %v1114_v25 }
 0x2e3   :  { %4266 = vmatpush1.bf16.msra.mxu0 %v5603_v52  ;;  %v5662_v52 = vcombine.high %v1110_v47, %v1114_v25 }
 0x2e4   :  { %4430 = vmatpush1.bf16.msra.mxu1 %v5605_v53  ;;  %4267 = vmatprep.subr.bf16.mxu0 %v5612_v54  ;;  %v1117_v53 = vld [vmem:[#allocation8 + $0xc50] sm:$0xff] }
 0x2e5   :  { %4431 = vmatprep.subr.bf16.mxu1 %v5614_v33  ;;  %v1121_v54 = vld [vmem:[#allocation8 + $0xc70] sm:$0xff]  ;;  %v5659_v33 = vcombine.low %v1109_v43, %v1113_v46 }
 0x2e6   :  { %v5668_v60 = vcombine.high %v1117_v53, %v1121_v54  ;;  %v5667_v19 = vcombine.low %v1117_v53, %v1121_v54  ;;  %v1166_v54 = vld [vmem:[#allocation8 + $0xdd8] sm:$0xff] }
 0x2e7   :  { %4268 = vmatpush1.bf16.msra.mxu0 %v5611_v61  ;;  %v1125_v61 = vld [vmem:[#allocation8 + $0xc90] sm:$0xff] }
 0x2e8   :  { %4432 = vmatpush1.bf16.msra.mxu1 %v5613_v62  ;;  %4269 = vmatprep.subr.bf16.mxu0 %v5620_v1  ;;  %v1129_v62 = vld [vmem:[#allocation8 + $0xcb0] sm:$0xff]  ;;  %v5670_v1 = vcombine.high %v1118_v55, %v1122_v56 }
 0x2e9   :  { %4433 = vmatprep.subr.bf16.mxu1 %v5622_v59  ;;  %v1126_v59 = vld [vmem:[#allocation8 + $0xc98] sm:$0xff]  ;;  %v5676_v4 = vcombine.high %v1125_v61, %v1129_v62  ;;  %v5675_v10 = vcombine.low %v1125_v61, %v1129_v62 }
 0x2eb   :  { %4270 = vmatpush1.bf16.msra.mxu0 %v5619_v5  ;;  %v5678_v5 = vcombine.high %v1126_v59, %v1130_v2 }
 0x2ec   :  { %4434 = vmatpush1.bf16.msra.mxu1 %v5621_v39  ;;  %4271 = vmatprep.subr.bf16.mxu0 %v5628_v7  ;;  %v1133_v39 = vld [vmem:[#allocation8 + $0xcd0] sm:$0xff] }
 0x2ed   :  { %4435 = vmatprep.subr.bf16.mxu1 %v5630_v8  ;;  %v1137_v7 = vld [vmem:[#allocation8 + $0xcf0] sm:$0xff]  ;;  %v1134_v8 = vld [vmem:[#allocation8 + $0xcd8] sm:$0xff] }
 0x2ee   :  { %v5684_v63 = vcombine.high %v1133_v39, %v1137_v7  ;;  %v5686_v12 = vcombine.high %v1134_v8, %v1138_v9  ;;  %v5685_v16 = vcombine.low %v1134_v8, %v1138_v9  ;;  %v1181_v9 = vld [vmem:[#allocation8 + $0xe50] sm:$0xff] }
 0x2ef   :  { %4272 = vmatpush1.bf16.msra.mxu0 %v5627_v58  ;;  %v1141_v58 = vld [vmem:[#allocation8 + $0xd10] sm:$0xff] }
 0x2f0   :  { %4436 = vmatpush1.bf16.msra.mxu1 %v5629_v13  ;;  %4273 = vmatprep.subr.bf16.mxu0 %v5636_v38  ;;  %v1145_v13 = vld [vmem:[#allocation8 + $0xd30] sm:$0xff]  ;;  %v1142_v38 = vld [vmem:[#allocation8 + $0xd18] sm:$0xff] }
 0x2f1   :  { %4437 = vmatprep.subr.bf16.mxu1 %v5638_v15  ;;  %v1146_v15 = vld [vmem:[#allocation8 + $0xd38] sm:$0xff]  ;;  %v5692_v21 = vcombine.high %v1141_v58, %v1145_v13 }
 0x2f2   :  { %v5694_v23 = vcombine.high %v1142_v38, %v1146_v15  ;;  %v5693_v31 = vcombine.low %v1142_v38, %v1146_v15  ;;  %v1189_v15 = vld [vmem:[#allocation8 + $0xe90] sm:$0xff] }
 0x2f3   :  { %4274 = vmatpush1.bf16.msra.mxu0 %v5635_v27  ;;  %v1153_v27 = vld [vmem:[#allocation8 + $0xd70] sm:$0xff] }
 0x2f4   :  { %4438 = vmatpush1.bf16.msra.mxu1 %v5637_v28  ;;  %4275 = vmatprep.subr.bf16.mxu0 %v5644_v29  ;;  %v1150_v28 = vld [vmem:[#allocation8 + $0xd58] sm:$0xff]  ;;  %v5700_v37 = vcombine.high %v1149_v26, %v1153_v27 }
 0x2f5   :  { %4439 = vmatprep.subr.bf16.mxu1 %v5646_v30  ;;  %v1154_v29 = vld [vmem:[#allocation8 + $0xd78] sm:$0xff]  ;;  %v5691_v30 = vcombine.low %v1141_v58, %v1145_v13 }
 0x2f6   :  { %v5702_v32 = vcombine.high %v1150_v28, %v1154_v29  ;;  %v5701_v43 = vcombine.low %v1150_v28, %v1154_v29  ;;  %v1197_v29 = vld [vmem:[#allocation8 + $0xed0] sm:$0xff] }
 0x2f7   :  { %4276 = vmatpush1.bf16.msra.mxu0 %v5643_v40  ;;  %v1161_v40 = vld [vmem:[#allocation8 + $0xdb0] sm:$0xff] }
 0x2f8   :  { %4440 = vmatpush1.bf16.msra.mxu1 %v5645_v41  ;;  %4277 = vmatprep.subr.bf16.mxu0 %v5652_v42  ;;  %v1158_v41 = vld [vmem:[#allocation8 + $0xd98] sm:$0xff]  ;;  %v5708_v46 = vcombine.high %v1157_v34, %v1161_v40 }
 0x2f9   :  { %4441 = vmatprep.subr.bf16.mxu1 %v5654_v6  ;;  %v1162_v42 = vld [vmem:[#allocation8 + $0xdb8] sm:$0xff]  ;;  %v5699_v6 = vcombine.low %v1149_v26, %v1153_v27 }
 0x2fa   :  { %v5709_v62 = vcombine.low %v1158_v41, %v1162_v42 }
 0x2fb   :  { %4278 = vmatpush1.bf16.msra.mxu0 %v5651_v48  ;;  %v5710_v48 = vcombine.high %v1158_v41, %v1162_v42  ;;  %v1205_v42 = vld [vmem:[#allocation8 + $0xf10] sm:$0xff] }
 0x2fc   :  { %4442 = vmatpush1.bf16.msra.mxu1 %v5653_v50  ;;  %4288 = vmatprep.subr.bf16.mxu0 %v5660_v51  ;;  %v1165_v50 = vld [vmem:[#allocation8 + $0xdd0] sm:$0xff] }
 0x2fd   :  { %4452 = vmatprep.subr.bf16.mxu1 %v5662_v52  ;;  %v1169_v51 = vld [vmem:[#allocation8 + $0xdf0] sm:$0xff] }
 0x2fe   :  { %4280 = vmatmul.mubr.bf16.vlgmr.msra.gmra.mrb[12].mxu0 %v6475_v11 }
 0x2ff   :  { %4444 = vmatmul.mubr.bf16.vlgmr.msra.gmra.mrb[12].mxu1 %v6475_v11  ;;  %4289 = vmatpush1.bf16.msra.mxu0 %v5659_v33  ;;  %v5677_v11 = vcombine.low %v1126_v59, %v1130_v2  ;;  %v1170_v33 = vld [vmem:[#allocation8 + $0xdf8] sm:$0xff]  ;;  %v1173_v2 = vld [vmem:[#allocation8 + $0xe10] sm:$0xff] }
 0x300   :  { %4320 = vmatprep.mubr.bf16.mxu0 %v6478_v22  ;;  %4453 = vmatpush1.bf16.msra.mxu1 %v5661_v57  ;;  %v5707_v57 = vcombine.low %v1157_v34, %v1161_v40  ;;  %v5718_v59 = vcombine.high %v1166_v54, %v1170_v33 }
 0x301   :  { %4484 = vmatprep.mubr.bf16.mxu1 %v6478_v22  ;;  %4290 = vmatprep.subr.bf16.mxu0 %v5668_v60  ;;  %v5683_v22 = vcombine.low %v1133_v39, %v1137_v7  ;;  %v5717_v39 = vcombine.low %v1166_v54, %v1170_v33  ;;  %v1213_v33 = vld [vmem:[#allocation8 + $0xf50] sm:$0xff] }
 0x302   :  { %4454 = vmatprep.subr.bf16.mxu1 %v5670_v1  ;;  %v5716_v1 = vcombine.high %v1165_v50, %v1169_v51 }
 0x303   :  { %4291 = vmatpush1.bf16.msra.mxu0 %v5667_v19  ;;  %v1177_v19 = vld [vmem:[#allocation8 + $0xe30] sm:$0xff] }
 0x304   :  { %4455 = vmatpush1.bf16.msra.mxu1 %v5669_v44  ;;  %4292 = vmatprep.subr.bf16.mxu0 %v5676_v4  ;;  %v1174_v44 = vld [vmem:[#allocation8 + $0xe18] sm:$0xff]  ;;  %v5724_v7 = vcombine.high %v1173_v2, %v1177_v19 }
 0x305   :  { %4456 = vmatprep.subr.bf16.mxu1 %v5678_v5  ;;  %v1178_v4 = vld [vmem:[#allocation8 + $0xe38] sm:$0xff]  ;;  %v5715_v5 = vcombine.low %v1165_v50, %v1169_v51 }
 0x306   :  { %v5726_v8 = vcombine.high %v1174_v44, %v1178_v4  ;;  %v5725_v58 = vcombine.low %v1174_v44, %v1178_v4  ;;  %v1226_v44 = vld [vmem:[#allocation8 + $0xfb8] sm:$0xff]  ;;  %v6515_v4 = vld [vmem:[#allocation10] sm:$0xff] }
 0x307   :  { %4293 = vmatpush1.bf16.msra.mxu0 %v5675_v10  ;;  %v1185_v10 = vld [vmem:[#allocation8 + $0xe70] sm:$0xff] }
 0x308   :  { %4457 = vmatpush1.bf16.msra.mxu1 %v5677_v11  ;;  %4294 = vmatprep.subr.bf16.mxu0 %v5684_v63  ;;  %v1182_v11 = vld [vmem:[#allocation8 + $0xe58] sm:$0xff]  ;;  %v5732_v13 = vcombine.high %v1181_v9, %v1185_v10 }
 0x309   :  { %4458 = vmatprep.subr.bf16.mxu1 %v5686_v12  ;;  %v1186_v63 = vld [vmem:[#allocation8 + $0xe78] sm:$0xff]  ;;  %v5723_v12 = vcombine.low %v1173_v2, %v1177_v19  ;;  %v1225_v2 = vld [vmem:[#allocation8 + $0xfb0] sm:$0xff] }
 0x30a   :  { %v5734_v38 = vcombine.high %v1182_v11, %v1186_v63  ;;  %v5733_v26 = vcombine.low %v1182_v11, %v1186_v63  ;;  %v1222_v19 = vld [vmem:[#allocation8 + $0xf98] sm:$0xff]  ;;  %v1244_v11 = vrot.slane %v6515_v4, %v189_v20 }
 0x30b   :  { %4295 = vmatpush1.bf16.msra.mxu0 %v5683_v22  ;;  %v1193_v22 = vld [vmem:[#allocation8 + $0xeb0] sm:$0xff]  ;;  %v1230_v63 = vld [vmem:[#allocation8 + $0xfd8] sm:$0xff] }
 0x30c   :  { %4459 = vmatpush1.bf16.msra.mxu1 %v5685_v16  ;;  %4296 = vmatprep.subr.bf16.mxu0 %v5692_v21  ;;  %v1190_v16 = vld [vmem:[#allocation8 + $0xe98] sm:$0xff]  ;;  %v5740_v27 = vcombine.high %v1189_v15, %v1193_v22 }
 0x30d   :  { %4460 = vmatprep.subr.bf16.mxu1 %v5694_v23  ;;  %v1194_v21 = vld [vmem:[#allocation8 + $0xeb8] sm:$0xff]  ;;  %v5731_v23 = vcombine.low %v1181_v9, %v1185_v10  ;;  %v1229_v9 = vld [vmem:[#allocation8 + $0xfd0] sm:$0xff] }
 0x30e   :  { %v5742_v28 = vcombine.high %v1190_v16, %v1194_v21  ;;  %v5741_v34 = vcombine.low %v1190_v16, %v1194_v21  ;;  %v1233_v10 = vld [vmem:[#allocation8 + $0xff0] sm:$0xff] }
 0x30f   :  { %4297 = vmatpush1.bf16.msra.mxu0 %v5691_v30  ;;  %v1201_v30 = vld [vmem:[#allocation8 + $0xef0] sm:$0xff]  ;;  %v5779_v20 = vcombine.low %v1229_v9, %v1233_v10 }
 0x310   :  { %4461 = vmatpush1.bf16.msra.mxu1 %v5693_v31  ;;  %4298 = vmatprep.subr.bf16.mxu0 %v5700_v37  ;;  %v1198_v31 = vld [vmem:[#allocation8 + $0xed8] sm:$0xff]  ;;  %v5748_v40 = vcombine.high %v1197_v29, %v1201_v30 }
 0x311   :  { %v6507_v47 = vpop.f32.mrb[8].mxu0  ;;  %v6509_v25 = vpop.f32.mrb[8].mxu1  ;;  %4462 = vmatprep.subr.bf16.mxu1 %v5702_v32  ;;  %v1202_v37 = vld [vmem:[#allocation8 + $0xef8] sm:$0xff]  ;;  %v5739_v32 = vcombine.low %v1189_v15, %v1193_v22  ;;  %v5780_v15 = vcombine.high %v1229_v9, %v1233_v10  ;;  %v6037_v9 = vld [vmem:[#allocation11 + $0x140] sm:$0xff]  }
 0x312   :  { %v6511_v52 = vpop.f32.mrb[9].mxu0  ;;  %v6513_v53 = vpop.f32.mrb[9].mxu1  ;;  %v5750_v41 = vcombine.high %v1198_v31, %v1202_v37  ;;  %v5749_v50 = vcombine.low %v1198_v31, %v1202_v37  ;;  %v6009_v31 = vld [vmem:[#allocation11 + $0x48] sm:$0xff]  }
 0x313   :  { %v3998_v55 = vpop.f32.mrb[10].mxu0  ;;  %v4162_v56 = vpop.f32.mrb[10].mxu1  ;;  %4299 = vmatpush1.bf16.msra.mxu0 %v5699_v6  ;;  %v1209_v6 = vld [vmem:[#allocation8 + $0xf30] sm:$0xff]  ;;  %v5937_v16 = vadd.f32 %v6511_v52, %v1244_v11  ;;  %v6038_v11 = vld [vmem:[#allocation11 + $0x1c0] sm:$0xff]  }
 0x314   :  { %4463 = vmatpush1.bf16.msra.mxu1 %v5701_v43  ;;  %v3999_v60 = vpop.f32.mrb[11].mxu0  ;;  %v4163_v61 = vpop.f32.mrb[11].mxu1  ;;  %4300 = vmatprep.subr.bf16.mxu0 %v5708_v46  ;;  %v1206_v43 = vld [vmem:[#allocation8 + $0xf18] sm:$0xff]  ;;  %v5756_v51 = vcombine.high %v1205_v42, %v1209_v6  ;;  %v1217_v55 = vld [vmem:[#allocation8 + $0xf70] sm:$0xff] }
 0x315   :  { %4464 = vmatprep.subr.bf16.mxu1 %v5710_v48  ;;  %v1210_v46 = vld [vmem:[#allocation8 + $0xf38] sm:$0xff]  ;;  %v5747_v48 = vcombine.low %v1197_v29, %v1201_v30  ;;  %v5755_v60 = vcombine.low %v1205_v42, %v1209_v6  ;;  %v6007_v29 = vld [vmem:[#allocation11] sm:$0xff]  }
 0x316   :  { %v5758_v54 = vcombine.high %v1206_v43, %v1210_v46  ;;  %v1214_v56 = vld [vmem:[#allocation8 + $0xf58] sm:$0xff]  ;;  %v5757_v61 = vcombine.low %v1206_v43, %v1210_v46  ;;  %v6008_v30 = vld [vmem:[#allocation11 + $0x80] sm:$0xff]   ;;  %v6017_v43 = vld [vmem:[#allocation11 + $0x58] sm:$0xff]  }
 0x317   :  { %4301 = vmatpush1.bf16.msra.mxu0 %v5707_v57  ;;  %v1218_v57 = vld [vmem:[#allocation8 + $0xf78] sm:$0xff]  ;;  %v6018_v46 = vld [vmem:[#allocation11 + $0xd8] sm:$0xff]  }
 0x318   :  { %4465 = vmatpush1.bf16.msra.mxu1 %v5709_v62  ;;  %4302 = vmatprep.subr.bf16.mxu0 %v5716_v1  ;;  %v5764_v62 = vcombine.high %v1213_v33, %v1217_v55  ;;  %v5766_v1 = vcombine.high %v1214_v56, %v1218_v57  ;;  %v6015_v42 = vld [vmem:[#allocation11 + $0x10] sm:$0xff]  }
 0x319   :  { %4466 = vmatprep.subr.bf16.mxu1 %v5718_v59  ;;  %v1221_v59 = vld [vmem:[#allocation8 + $0xf90] sm:$0xff]  ;;  %v6016_v6 = vld [vmem:[#allocation11 + $0x90] sm:$0xff]  }
 0x31b   :  { %4303 = vmatpush1.bf16.msra.mxu0 %v5715_v5  ;;  %v5763_v5 = vcombine.low %v1213_v33, %v1217_v55  ;;  %v6024_v33 = vld [vmem:[#allocation11 + $0xa0] sm:$0xff]   ;;  %v6025_v55 = vld [vmem:[#allocation11 + $0x68] sm:$0xff]  }
 0x31c   :  { %4467 = vmatpush1.bf16.msra.mxu1 %v5717_v39  ;;  %4304 = vmatprep.subr.bf16.mxu0 %v5724_v7  ;;  %v5765_v39 = vcombine.low %v1214_v56, %v1218_v57  ;;  %v5772_v7 = vcombine.high %v1221_v59, %v1225_v2  ;;  %v6026_v56 = vld [vmem:[#allocation11 + $0xe8] sm:$0xff]  }
 0x31d   :  { %4468 = vmatprep.subr.bf16.mxu1 %v5726_v8  ;;  %v5774_v8 = vcombine.high %v1222_v19, %v1226_v44  ;;  %v6027_v57 = vld [vmem:[#allocation11 + $0x28] sm:$0xff]  }
 0x31f   :  { %4305 = vmatpush1.bf16.msra.mxu0 %v5723_v12  ;;  %v1234_v12 = vld [vmem:[#allocation8 + $0xff8] sm:$0xff] }
 0x320   :  { %4469 = vmatpush1.bf16.msra.mxu1 %v5725_v58  ;;  %4306 = vmatprep.subr.bf16.mxu0 %v5732_v13  ;;  %v1252_v58 = vrot.slane %v6515_v4, %v197_v24  ;;  %v5771_v13 = vcombine.low %v1221_v59, %v1225_v2  ;;  %v5782_v22 = vcombine.high %v1230_v63, %v1234_v12  ;;  %v6006_v24 = vld [vmem:[#allocation11 + $0xc0] sm:$0xff]   ;;  %v6030_v59 = vld [vmem:[#allocation11 + $0xf0] sm:$0xff]  }
 0x321   :  { %4470 = vmatprep.subr.bf16.mxu1 %v5734_v38  ;;  %v5773_v38 = vcombine.low %v1222_v19, %v1226_v44  ;;  %v6031_v2 = vld [vmem:[#allocation11 + $0x30] sm:$0xff]  }
 0x322   :  { %v5939_v21 = vadd.f32 %v6513_v53, %v1252_v58  ;;  %v6010_v53 = vld [vmem:[#allocation11 + $0xc8] sm:$0xff]   ;;  %v6032_v44 = vld [vmem:[#allocation11 + $0xb0] sm:$0xff]  }
 0x323   :  { %4307 = vmatpush1.bf16.msra.mxu0 %v5731_v23  ;;  %v5781_v23 = vcombine.low %v1230_v63, %v1234_v12  ;;  %v6040_v12 = vld [vmem:[#allocation11 + $0x180] sm:$0xff]  }
 0x324   :  { %4471 = vmatpush1.bf16.msra.mxu1 %v5733_v26  ;;  %4308 = vmatprep.subr.bf16.mxu0 %v5740_v27  ;;  %v6005_v26 = vld [vmem:[#allocation11 + $0x40] sm:$0xff]   ;;  %v4494_v27 = vpack.c.bf16 %v5937_v16, %v5937_v16  ;;  %v6046_v16 = vld [vmem:[#allocation11 + $0x1d0] sm:$0xff]  }
 0x325   :  { %4472 = vmatprep.subr.bf16.mxu1 %v5742_v28  ;;  %v4496_v28 = vpack.c.bf16 %v5939_v21, %v5939_v21  ;;  %v6047_v21 = vld [vmem:[#allocation11 + $0x110] sm:$0xff]  }
 0x326   :  { %v4502_v52 = vmax.bf16 %v6267_v0, %v4494_v27  ;;  %v6052_v27 = vld [vmem:[#allocation11 + $0x198] sm:$0xff]  }
 0x327   :  { %4309 = vmatpush1.bf16.msra.mxu0 %v5739_v32  ;;  %v4504_v37 = vmax.bf16 %v6267_v0, %v4496_v28  ;;  %v6011_v32 = vld [vmem:[#allocation11 + $0x8] sm:$0xff]   ;;  %v6053_v28 = vld [vmem:[#allocation11 + $0x160] sm:$0xff]  }
 0x328   :  { %4473 = vmatpush1.bf16.msra.mxu1 %v5741_v34  ;;  %4310 = vmatprep.subr.bf16.mxu0 %v5748_v40  ;;  %v6012_v34 = vld [vmem:[#allocation11 + $0x88] sm:$0xff]   ;;  %v6013_v40 = vld [vmem:[#allocation11 + $0x50] sm:$0xff]  }
 0x329   :  { %4474 = vmatprep.subr.bf16.mxu1 %v5750_v41  ;;  %v6014_v41 = vld [vmem:[#allocation11 + $0xd0] sm:$0xff]  }
 0x32b   :  { %4311 = vmatpush1.bf16.msra.mxu0 %v5747_v48  ;;  %v6020_v48 = vld [vmem:[#allocation11 + $0x98] sm:$0xff]  }
 0x32c   :  { %4475 = vmatpush1.bf16.msra.mxu1 %v5749_v50  ;;  %4312 = vmatprep.subr.bf16.mxu0 %v5756_v51  ;;  %v6021_v50 = vld [vmem:[#allocation11 + $0x60] sm:$0xff]  }
 0x32d   :  { %4476 = vmatprep.subr.bf16.mxu1 %v5758_v54  ;;  %v6022_v51 = vld [vmem:[#allocation11 + $0xe0] sm:$0xff]  }
 0x32e   :  { %v6023_v54 = vld [vmem:[#allocation11 + $0x20] sm:$0xff]  }
 0x32f   :  { %4313 = vmatpush1.bf16.msra.mxu0 %v5755_v60  ;;  %v1240_v60 = vrot.slane %v6515_v4, %v185_v18 }
 0x330   :  { %4477 = vmatpush1.bf16.msra.mxu1 %v5757_v61  ;;  %4314 = vmatprep.subr.bf16.mxu0 %v5764_v62  ;;  %v6028_v61 = vld [vmem:[#allocation11 + $0xa8] sm:$0xff]   ;;  %v6029_v62 = vld [vmem:[#allocation11 + $0x70] sm:$0xff]  }
 0x331   :  { %4478 = vmatprep.subr.bf16.mxu1 %v5766_v1  ;;  %v1248_v1 = vrot.slane %v6515_v4, %v193_v36  ;;  %v5936_v19 = vadd.f32 %v6507_v47, %v1240_v60  ;;  %v6036_v36 = vld [vmem:[#allocation11 + $0xb8] sm:$0xff]   ;;  %v6039_v47 = vld [vmem:[#allocation11 + $0x100] sm:$0xff]  }
 0x333   :  { %4315 = vmatpush1.bf16.msra.mxu0 %v5763_v5  ;;  %v6033_v5 = vld [vmem:[#allocation11 + $0x78] sm:$0xff]   ;;  %v5938_v18 = vadd.f32 %v6509_v25, %v1248_v1  ;;  %v6041_v25 = vld [vmem:[#allocation11 + $0x148] sm:$0xff]  }
 0x334   :  { %4479 = vmatpush1.bf16.msra.mxu1 %v5765_v39  ;;  %4316 = vmatprep.subr.bf16.mxu0 %v5772_v7  ;;  %v6034_v39 = vld [vmem:[#allocation11 + $0xf8] sm:$0xff]  }
 0x335   :  { %4480 = vmatprep.subr.bf16.mxu1 %v5774_v8  ;;  %v6035_v7 = vld [vmem:[#allocation11 + $0x38] sm:$0xff]   ;;  %v4493_v8 = vpack.c.bf16 %v5936_v19, %v5936_v19  ;;  %v4495_v10 = vpack.c.bf16 %v5938_v18, %v5938_v18 }
 0x337   :  { %4317 = vmatpush1.bf16.msra.mxu0 %v5771_v13  ;;  %v4501_v63 = vmax.bf16 %v6267_v0, %v4493_v8  ;;  %v4503_v58 = vmax.bf16 %v6267_v0, %v4495_v10  ;;  %v6042_v13 = vld [vmem:[#allocation11 + $0x1c8] sm:$0xff]   ;;  %v5783_v8 = vld [vmem:[#allocation13] ss:$0 sm:$0xff] }
 0x338   :  { %4481 = vmatpush1.bf16.msra.mxu1 %v5773_v38  ;;  %4318 = vmatprep.subr.bf16.mxu0 %v5780_v15  ;;  %v6043_v38 = vld [vmem:[#allocation11 + $0x108] sm:$0xff]  }
 0x339   :  { %4482 = vmatprep.subr.bf16.mxu1 %v5782_v22  ;;  %v6044_v15 = vld [vmem:[#allocation11 + $0x188] sm:$0xff]   ;;  %v6045_v22 = vld [vmem:[#allocation11 + $0x150] sm:$0xff]  }
 0x33b   :  { %4319 = vmatpush1.bf16.msra.mxu0 %v5779_v20  ;;  %v6048_v20 = vld [vmem:[#allocation11 + $0x190] sm:$0xff]  }
 0x33c   :  { %4483 = vmatpush1.bf16.msra.mxu1 %v5781_v23  ;;  %5848 = vmatprep.subr.bf16.mxu0 %v6005_v26  ;;  %v6049_v23 = vld [vmem:[#allocation11 + $0x158] sm:$0xff]  }
 0x33d   :  { %5870 = vmatprep.subr.bf16.mxu1 %v6006_v24  ;;  %v6050_v26 = vld [vmem:[#allocation11 + $0x1d8] sm:$0xff]  }
 0x33e   :  { %4321 = vmatmul.mubr.bf16.vlgmr.msra.gmra.mrb[12].mxu0 %v6489_v3  ;;  %v6051_v24 = vld [vmem:[#allocation11 + $0x118] sm:$0xff]  }
 0x33f   :  { %4485 = vmatmul.mubr.bf16.vlgmr.msra.gmra.mrb[12].mxu1 %v6489_v3  ;;  %5849 = vmatpush3.bf16.msra.mxu0 %v6007_v29  ;;  %v6019_v3 = vld [vmem:[#allocation11 + $0x18] sm:$0xff]   ;;  %v6054_v29 = vld [vmem:[#allocation11 + $0x1e0] sm:$0xff]  }
 0x340   :  { %5060 = vmatprep.mubr.bf16.mxu0 %v4502_v52  ;;  %5871 = vmatpush3.bf16.msra.mxu1 %v6008_v30  ;;  %v6055_v30 = vld [vmem:[#allocation11 + $0x120] sm:$0xff]   ;;  %v6057_v52 = vld [vmem:[#allocation11 + $0x168] sm:$0xff]  }
 0x341   :  { %5100 = vmatprep.mubr.bf16.mxu1 %v4504_v37  ;;  %5850 = vmatprep.subr.bf16.mxu0 %v6009_v31  ;;  %v6056_v31 = vld [vmem:[#allocation11 + $0x1a0] sm:$0xff]   ;;  %v6059_v37 = vld [vmem:[#allocation11 + $0x128] sm:$0xff]  }
 0x342   :  { %5872 = vmatprep.subr.bf16.mxu1 %v6010_v53  ;;  %v6058_v53 = vld [vmem:[#allocation11 + $0x1e8] sm:$0xff]  }
 0x343   :  { %5851 = vmatpush3.bf16.msra.mxu0 %v6011_v32  ;;  %v6060_v32 = vld [vmem:[#allocation11 + $0x1a8] sm:$0xff]  }
 0x344   :  { %5873 = vmatpush3.bf16.msra.mxu1 %v6012_v34  ;;  %5852 = vmatprep.subr.bf16.mxu0 %v6013_v40  ;;  %v6061_v34 = vld [vmem:[#allocation11 + $0x170] sm:$0xff]  }
 0x345   :  { %5874 = vmatprep.subr.bf16.mxu1 %v6014_v41  ;;  %v6062_v40 = vld [vmem:[#allocation11 + $0x1f0] sm:$0xff]  }
 0x346   :  { %v6063_v41 = vld [vmem:[#allocation11 + $0x130] sm:$0xff]  }
 0x347   :  { %5853 = vmatpush3.bf16.msra.mxu0 %v6015_v42  ;;  %v6064_v42 = vld [vmem:[#allocation11 + $0x1b0] sm:$0xff]  }
 0x348   :  { %5875 = vmatpush3.bf16.msra.mxu1 %v6016_v6  ;;  %5854 = vmatprep.subr.bf16.mxu0 %v6017_v43  ;;  %v6065_v6 = vld [vmem:[#allocation11 + $0x178] sm:$0xff]  }
 0x349   :  { %5876 = vmatprep.subr.bf16.mxu1 %v6018_v46  ;;  %v6066_v43 = vld [vmem:[#allocation11 + $0x1f8] sm:$0xff]  }
 0x34a   :  { %v6067_v46 = vld [vmem:[#allocation11 + $0x138] sm:$0xff]  }
 0x34b   :  { %5855 = vmatpush3.bf16.msra.mxu0 %v6019_v3  ;;  %v6068_v3 = vld [vmem:[#allocation11 + $0x1b8] sm:$0xff]  }
 0x34c   :  { %5877 = vmatpush3.bf16.msra.mxu1 %v6020_v48  ;;  %5856 = vmatprep.subr.bf16.mxu0 %v6021_v50  ;;  %v1256_v48 = vrot.slane %v6515_v4, %v201_v45  ;;  %v1264_v50 = vrot.slane %v6515_v4, %v209_v14 }
 0x34d   :  { %5878 = vmatprep.subr.bf16.mxu1 %v6022_v51  ;;  %v1260_v51 = vrot.slane %v6515_v4, %v205_v49 }
 0x34f   :  { %5857 = vmatpush3.bf16.msra.mxu0 %v6023_v54  ;;  %v1268_v54 = vrot.slane %v6515_v4, %v213_v35 }
 0x350   :  { %5879 = vmatpush3.bf16.msra.mxu1 %v6024_v33  ;;  %5858 = vmatprep.subr.bf16.mxu0 %v6025_v55 }
 0x351   :  { %5880 = vmatprep.subr.bf16.mxu1 %v6026_v56 }
 0x353   :  { %5859 = vmatpush3.bf16.msra.mxu0 %v6027_v57 }
 0x354   :  { %5881 = vmatpush3.bf16.msra.mxu1 %v6028_v61  ;;  %5860 = vmatprep.subr.bf16.mxu0 %v6029_v62 }
 0x355   :  { %5882 = vmatprep.subr.bf16.mxu1 %v6030_v59 }
 0x357   :  { %5861 = vmatpush3.bf16.msra.mxu0 %v6031_v2 }
 0x358   :  { %5883 = vmatpush3.bf16.msra.mxu1 %v6032_v44  ;;  %5862 = vmatprep.subr.bf16.mxu0 %v6033_v5 }
 0x359   :  { %5884 = vmatprep.subr.bf16.mxu1 %v6034_v39 }
 0x35b   :  { %5863 = vmatpush3.bf16.msra.mxu0 %v6035_v7 }
 0x35c   :  { %5885 = vmatpush3.bf16.msra.mxu1 %v6036_v36  ;;  %5892 = vmatprep.subr.bf16.mxu0 %v6037_v9 }
 0x35d   :  { %5914 = vmatprep.subr.bf16.mxu1 %v6038_v11 }
 0x35e   :  { %5061 = vmatmul.mubr.bf16.vlgmr.msra.gmra.mrb[16].mxu0 %v4501_v63 }
 0x35f   :  { %5101 = vmatmul.mubr.bf16.vlgmr.msra.gmra.mrb[16].mxu1 %v4503_v58  ;;  %5893 = vmatpush3.bf16.msra.mxu0 %v6039_v47 }
 0x360   :  { %5915 = vmatpush3.bf16.msra.mxu1 %v6040_v12  ;;  %5894 = vmatprep.subr.bf16.mxu0 %v6041_v25 }
 0x361   :  { %5916 = vmatprep.subr.bf16.mxu1 %v6042_v13 }
 0x363   :  { %5895 = vmatpush3.bf16.msra.mxu0 %v6043_v38 }
 0x364   :  { %5917 = vmatpush3.bf16.msra.mxu1 %v6044_v15  ;;  %5896 = vmatprep.subr.bf16.mxu0 %v6045_v22 }
 0x365   :  { %5918 = vmatprep.subr.bf16.mxu1 %v6046_v16 }
 0x367   :  { %5897 = vmatpush3.bf16.msra.mxu0 %v6047_v21 }
 0x368   :  { %5919 = vmatpush3.bf16.msra.mxu1 %v6048_v20  ;;  %5898 = vmatprep.subr.bf16.mxu0 %v6049_v23 }
 0x369   :  { %5920 = vmatprep.subr.bf16.mxu1 %v6050_v26 }
 0x36b   :  { %5899 = vmatpush3.bf16.msra.mxu0 %v6051_v24 }
 0x36c   :  { %5921 = vmatpush3.bf16.msra.mxu1 %v6052_v27  ;;  %5900 = vmatprep.subr.bf16.mxu0 %v6053_v28 }
 0x36d   :  { %5922 = vmatprep.subr.bf16.mxu1 %v6054_v29 }
 0x36f   :  { %5901 = vmatpush3.bf16.msra.mxu0 %v6055_v30 }
 0x370   :  { %5923 = vmatpush3.bf16.msra.mxu1 %v6056_v31  ;;  %5902 = vmatprep.subr.bf16.mxu0 %v6057_v52 }
 0x371   :  { %5924 = vmatprep.subr.bf16.mxu1 %v6058_v53 }
 0x373   :  { %5903 = vmatpush3.bf16.msra.mxu0 %v6059_v37 }
 0x374   :  { %5925 = vmatpush3.bf16.msra.mxu1 %v6060_v32  ;;  %5904 = vmatprep.subr.bf16.mxu0 %v6061_v34 }
 0x375   :  { %5926 = vmatprep.subr.bf16.mxu1 %v6062_v40 }
 0x377   :  { %5905 = vmatpush3.bf16.msra.mxu0 %v6063_v41 }
 0x378   :  { %5927 = vmatpush3.bf16.msra.mxu1 %v6064_v42  ;;  %5906 = vmatprep.subr.bf16.mxu0 %v6065_v6 }
 0x379   :  { %5928 = vmatprep.subr.bf16.mxu1 %v6066_v43 }
 0x37b   :  { %5907 = vmatpush3.bf16.msra.mxu0 %v6067_v46 }
 0x37c   :  { %5929 = vmatpush3.bf16.msra.mxu1 %v6068_v3 }
 0x411   :  { %v4322_v33 = vpop.f32.mrb[12].mxu0 }
 0x412   :  { %v5940_v55 = vadd.f32 %v4322_v33, %v1256_v48  ;;  %v4486_v56 = vpop.f32.mrb[12].mxu1  ;;  %v4324_v57 = vpop.f32.mrb[13].mxu0 }
 0x413   :  { %v5942_v60 = vadd.f32 %v4486_v56, %v1264_v50  ;;  %v5941_v61 = vadd.f32 %v4324_v57, %v1260_v51  ;;  %v4488_v62 = vpop.f32.mrb[13].mxu1  ;;  %v4326_v45 = vpop.f32.mrb[14].mxu0 }
 0x414   :  { %v4497_v1 = vpack.c.bf16 %v5940_v55, %v5940_v55  ;;  %v5943_v59 = vadd.f32 %v4488_v62, %v1268_v54  ;;  %v4490_v2 = vpop.f32.mrb[14].mxu1  ;;  %v4327_v14 = vpop.f32.mrb[15].mxu0 }
 0x415   :  { %v4499_v19 = vpack.c.bf16 %v5942_v60, %v5942_v60  ;;  %v4498_v44 = vpack.c.bf16 %v5941_v61, %v5941_v61  ;;  %v4491_v5 = vpop.f32.mrb[15].mxu1 }
 0x416   :  { %v4500_v49 = vpack.c.bf16 %v5943_v59, %v5943_v59  ;;  %v4505_v35 = vmax.bf16 %v6267_v0, %v4497_v1 }
 0x417   :  { %v4506_v17 = vmax.bf16 %v6267_v0, %v4498_v44  ;;  %v4507_v18 = vmax.bf16 %v6267_v0, %v4499_v19 }
 0x418   :  { %v4508_v4 = vmax.bf16 %v6267_v0, %v4500_v49 }
 0x419   :  { %5140 = vmatprep.mubr.bf16.mxu0 %v4506_v17 }
 0x41a   :  { %5180 = vmatprep.mubr.bf16.mxu1 %v4508_v4  ;;  %5141 = vmatmul.mubr.bf16.vlgmr.msra.gmra.mrb[20].mxu0 %v4505_v35 }
 0x41b   :  { %5181 = vmatmul.mubr.bf16.vlgmr.msra.gmra.mrb[20].mxu1 %v4507_v18 }
 0x431   :  { %v5864_v39 = vpop.f32.mrb[16].mxu0 }
 0x432   :  { %v5886_v7 = vpop.f32.mrb[16].mxu1  ;;  %v5865_v36 = vpop.f32.mrb[17].mxu0 }
 0x433   :  { %v5866_v9 = vadd.f32 %v5865_v36, %v5864_v39  ;;  %v5887_v10 = vpop.f32.mrb[17].mxu1  ;;  %v5867_v11 = vpop.f32.mrb[18].mxu0 }
 0x434   :  { %v5888_v47 = vadd.f32 %v5887_v10, %v5886_v7  ;;  %v5889_v63 = vpop.f32.mrb[18].mxu1  ;;  %v5868_v12 = vpop.f32.mrb[19].mxu0 }
 0x435   :  { %v5063_v25 = vadd.f32 %v5866_v9, %v5783_v8  ;;  %v5890_v58 = vpop.f32.mrb[19].mxu1 }
 0x437   :  { %v5103_v13 = vadd.f32 %v5888_v47, %v5063_v25 }
 0x4ed   :  { %v5908_v38 = vpop.f32.mrb[20].mxu0 }
 0x4ee   :  { %v5930_v15 = vpop.f32.mrb[20].mxu1  ;;  %v5909_v0 = vpop.f32.mrb[21].mxu0 }
 0x4ef   :  { %v5910_v22 = vadd.f32 %v5909_v0, %v5908_v38  ;;  %v5931_v16 = vpop.f32.mrb[21].mxu1  ;;  %v5911_v21 = vpop.f32.mrb[22].mxu0 }
 0x4f0   :  { %v5932_v20 = vadd.f32 %v5931_v16, %v5930_v15  ;;  %v5933_v23 = vpop.f32.mrb[22].mxu1  ;;  %v5912_v26 = vpop.f32.mrb[23].mxu0 }
 0x4f1   :  { %v5143_v24 = vadd.f32 %v5910_v22, %v5103_v13  ;;  %v5934_v27 = vpop.f32.mrb[23].mxu1 }
 0x4f3   :  { %v5183_v28 = vadd.f32 %v5932_v20, %v5143_v24 }
 0x4f5   :  { %5188 = vst [vmem:[#allocation14] sm:$0xff] %v5183_v28 }
 0x4f6   :  { %6235 = shalt.err (!%p6232_p4)
}
 0x4f7   :  { %s6236_s11 = scalar_lea.hbm %s6574_s7, 128 }
 0x4f8   :  { %p6237_p5 = scmp.ne.s32.totalorder %s6574_s7, %s6236_s11  ;;  %p6240_p6 = scmp.lt.u32.totalorder %s6236_s11, %s6574_s7 }
 0x4fa   :  { %p6242_p7 = pnand %p6240_p6, %p6237_p5 }
 0x4fc   :  { %6245 = shalt.err (!%p6242_p7)
}
 0x4fd   :  { %5198 = dma.vmem_to_hbm [thread:$0]  %s5196_s13, 128, %s6574_s7, [#allocation4]  }
 0x4fe   :  { %6254 = dma.done.wait [#allocation4], 128  }
 0x4ff   :  { %6255 = vsyncadd [#allocation4], 4294967168 }
 0x500   :  { %5202 = vsyncpa [#allocation3], 1 }
 0x501   :  { %5203 = vsyncpa [#allocation6], 1 }
 0x502   :  { %5204 = vsyncpa [#allocation9], 1 }
 0x503   :  { %5205 = vsyncpa [#allocation12], 1 }
 0x504   :  { %5206 = vsyncpa [#allocation4], 1 }

</bundles_post_ra>
